<compile_context>
chip_gen: v7x
topology: tpu7x:2x2x1
jax: 0.10.0
libtpu: 0.0.40
codegen_flags: <defaults>
</compile_context>

<pallas_src>
import numpy as np
import jax
import jax.numpy as jnp
from jax.experimental import pallas as pl
from jax.experimental.pallas import tpu as pltpu


# ----------------------------------------------------------------------------
# Static helpers (trace-time only).
# ----------------------------------------------------------------------------
def _bilinear_taps(n_in, n_out):
    """Static (lo, hi, w_lo, w_hi) taps for 1-D bilinear resize, align_corners=True."""
    if n_in == 1 or n_out == 1:
        lo = np.zeros(n_out, np.int64)
        return lo, lo, np.ones(n_out, np.float64), np.zeros(n_out, np.float64)
    pos = np.arange(n_out, dtype=np.float64) * (n_in - 1) / (n_out - 1)
    lo = np.clip(np.floor(pos).astype(np.int64), 0, n_in - 1)
    hi = np.minimum(lo + 1, n_in - 1)
    w_hi = pos - lo
    return lo, hi, 1.0 - w_hi, w_hi


# ----------------------------------------------------------------------------
# Fused Up-block kernel factory.
# ----------------------------------------------------------------------------
def _make_up_kernel(H1, W1, C1, H2, W2, Cmid, Cout, pad_top, Wp):
    Ctot = 2 * C1                       # channels of concat([x2, x1_up])
    Hup = 2 * H1
    h_lo, h_hi, h_wlo, h_whi = _bilinear_taps(H1, Hup)

    def conv3x3_bias_relu(xpad_ref, w_ref, b_ref, cin, cout):
        # 3x3 conv (pad already materialised in xpad_ref) as 9 accumulated MXU matmuls.
        acc = jnp.zeros((H2 * W2, cout), jnp.float32)
        for dy in range(3):
            for dx in range(3):
                patch = xpad_ref[dy:dy + H2, 7 + dx:7 + dx + W2, :]   # (H2, W2, cin)
                acc = acc + jnp.dot(
                    patch.reshape(H2 * W2, cin),
                    w_ref[dy * 3 + dx],
                    preferred_element_type=jnp.float32,
                )
        return jnp.maximum(acc + b_ref[...], 0.0)                     # bias + ReLU

    def kernel(x1_ref, x2_ref, wmat_ref, w1_ref, b1_ref, w2_ref, b2_ref,
               o_ref, xpad1, xpad2):
        # ---- stage 1: upsample(x1) + F.pad + concat([x2, x1]) into VMEM scratch ----
        # xpad1 layout: (H2+2, Wp, Ctot); image columns live at [8, 8+W2).
        xpad1[...] = jnp.zeros((H2 + 2, Wp, Ctot), jnp.float32)

        # W-direction bilinear upsample + pad as one small matmul per input row.
        wmat = wmat_ref[...]                                          # (Wp, W1)
        rows_w = [jnp.dot(wmat, x1_ref[0, hp],
                          preferred_element_type=jnp.float32)         # (Wp, Ctot)
                  for hp in range(H1)]
        # H-direction: statically-unrolled 2-tap blend per upsampled output row.
        # (x1 arrives channel-padded so its data sits in lanes [C1, Ctot); lanes
        #  [0, C1) of these rows are zero and get overwritten by x2 below.)
        for ho in range(Hup):
            r = float(h_wlo[ho]) * rows_w[int(h_lo[ho])]
            if float(h_whi[ho]) != 0.0:
                r = r + float(h_whi[ho]) * rows_w[int(h_hi[ho])]
            xpad1[1 + pad_top + ho, :, :] = r

        # Skip connection x2 -> channels [0, C1) of the interior.
        xpad1[1:H2 + 1, 8:8 + W2, 0:C1] = x2_ref[0]

        # ---- stage 2: conv1 + folded BN1 + ReLU (stays in VMEM) ----
        h = conv3x3_bias_relu(xpad1, w1_ref, b1_ref, Ctot, Cmid)      # (H2*W2, Cmid)

        # ---- stage 3: conv2 + folded BN2 + ReLU ----
        xpad2[...] = jnp.zeros((H2 + 2, Wp, Cmid), jnp.float32)
        xpad2[1:H2 + 1, 8:8 + W2, :] = h.reshape(H2, W2, Cmid)
        y = conv3x3_bias_relu(xpad2, w2_ref, b2_ref, Cmid, Cout)      # (H2*W2, Cout)
        o_ref[0] = y.reshape(H2, W2, Cout)

    return kernel


# ----------------------------------------------------------------------------
# Wrapper: layout conversion at the NCHW boundary + single fused pallas_call.
# ----------------------------------------------------------------------------
def up_forward(x1_nchw, x2_nchw, w1, b1, w2, b2):
    """Forward pass of `Up` (bilinear). Inputs/outputs are NCHW (PyTorch convention)."""
    N, C1, H1, W1 = x1_nchw.shape
    N2, C1b, H2, W2 = x2_nchw.shape
    assert N == N2 and C1 == C1b
    Ctot = 2 * C1
    Cmid = w1.shape[2]
    Cout = w2.shape[2]

    Hup, Wup = 2 * H1, 2 * W1
    diffY, diffX = H2 - Hup, W2 - Wup
    assert diffY >= 0 and diffX >= 0   # TODO(synk): negative pad (cropping) not implemented
    pad_top, pad_left = diffY // 2, diffX // 2
    Wp = W2 + 16                       # image at cols [8, 8+W2): aligned + >=1 halo col

    # Static W-direction (bilinear 2x + F.pad + conv halo) matrix: maps the W1 input
    # columns to the Wp padded scratch columns; pad / halo columns are zero rows.
    w_lo, w_hi, w_wlo, w_whi = _bilinear_taps(W1, Wup)
    wmat_np = np.zeros((Wp, W1), np.float32)
    for wo in range(Wup):
        r = 8 + pad_left + wo
        wmat_np[r, w_lo[wo]] += w_wlo[wo]
        wmat_np[r, w_hi[wo]] += w_whi[wo]
    wmat = jnp.asarray(wmat_np)

    # Boundary layout conversion (NCHW -> NHWC) stays in XLA (few KB).  x1 is also
    # channel-padded so its channels land directly in lanes [C1, Ctot) of the concat.
    x1 = jnp.transpose(x1_nchw, (0, 2, 3, 1))
    x1 = jnp.pad(x1, ((0, 0), (0, 0), (0, 0), (C1, 0)))
    x2 = jnp.transpose(x2_nchw, (0, 2, 3, 1))

    kernel = _make_up_kernel(H1, W1, C1, H2, W2, Cmid, Cout, pad_top, Wp)
    out_nhwc = pl.pallas_call(
        kernel,
        out_shape=jax.ShapeDtypeStruct((N, H2, W2, Cout), jnp.float32),
        grid=(N,),
        in_specs=[
            pl.BlockSpec((1, H1, W1, Ctot), lambda n: (n, 0, 0, 0)),   # x1 (chan-padded)
            pl.BlockSpec((1, H2, W2, C1), lambda n: (n, 0, 0, 0)),     # x2 (skip)
            pl.BlockSpec((Wp, W1), lambda n: (0, 0)),                  # upsample matrix
            pl.BlockSpec((9, Ctot, Cmid), lambda n: (0, 0, 0)),        # conv1+BN1 weights
            pl.BlockSpec((1, Cmid), lambda n: (0, 0)),                 # conv1+BN1 bias
            pl.BlockSpec((9, Cmid, Cout), lambda n: (0, 0, 0)),        # conv2+BN2 weights
            pl.BlockSpec((1, Cout), lambda n: (0, 0)),                 # conv2+BN2 bias
        ],
        out_specs=pl.BlockSpec((1, H2, W2, Cout), lambda n: (n, 0, 0, 0)),
        scratch_shapes=[
            pltpu.VMEM((H2 + 2, Wp, Ctot), jnp.float32),               # padded concat
            pltpu.VMEM((H2 + 2, Wp, Cmid), jnp.float32),               # padded conv1 out
        ],
        compiler_params=pltpu.CompilerParams(dimension_semantics=("parallel",)),
    )(x1, x2, wmat, w1, b1, w2, b2)

    return jnp.transpose(out_nhwc, (0, 3, 1, 2))                       # -> NCHW


def fold_conv_bn(w_oihw, b_conv, gamma, beta, running_mean, running_var, eps=1e-5):
    """Fold inference-mode BN into conv. Returns (w9 (9,Cin,Cout), bias (1,Cout))."""
    scale = gamma / jnp.sqrt(running_var + eps)            # (Cout,)
    w = jnp.transpose(w_oihw, (2, 3, 1, 0))                # (3, 3, Cin, Cout)
    w = w * scale                                          # scale output channels
    w9 = w.reshape(9, w.shape[2], w.shape[3])
    bias = (b_conv - running_mean) * scale + beta
    return w9, bias.reshape(1, -1)


# ----------------------------------------------------------------------------
# Main: deterministic parameters + example inputs, run once.
# ----------------------------------------------------------------------------
if __name__ == "__main__":
    key = jax.random.PRNGKey(0)
    ks = jax.random.split(key, 16)

    N = 2
    in_ch, out_ch = 8, 8               # Up(in_channels=8, out_channels=8, bilinear=True)
    mid_ch = in_ch // 2                # DoubleConv(in_ch, out_ch, mid=in_ch//2)

    # x1: coarse feature map (in_ch//2 channels, half resolution)
    # x2: skip connection   (in_ch//2 channels, full resolution)
    x1 = jax.random.normal(ks[0], (N, in_ch // 2, 8, 8), jnp.float32)
    x2 = jax.random.normal(ks[1], (N, in_ch // 2, 16, 16), jnp.float32)

    # Conv1 (in_ch -> mid_ch) + BN1 parameters
    w1 = 0.2 * jax.random.normal(ks[2], (mid_ch, in_ch, 3, 3), jnp.float32)
    bc1 = 0.1 * jax.random.normal(ks[3], (mid_ch,), jnp.float32)
    g1 = 1.0 + 0.1 * jax.random.normal(ks[4], (mid_ch,), jnp.float32)
    be1 = 0.1 * jax.random.normal(ks[5], (mid_ch,), jnp.float32)
    m1 = 0.1 * jax.random.normal(ks[6], (mid_ch,), jnp.float32)
    v1 = jax.random.uniform(ks[7], (mid_ch,), jnp.float32, 0.5, 1.5)

    # Conv2 (mid_ch -> out_ch) + BN2 parameters
    w2 = 0.2 * jax.random.normal(ks[8], (out_ch, mid_ch, 3, 3), jnp.float32)
    bc2 = 0.1 * jax.random.normal(ks[9], (out_ch,), jnp.float32)
    g2 = 1.0 + 0.1 * jax.random.normal(ks[10], (out_ch,), jnp.float32)
    be2 = 0.1 * jax.random.normal(ks[11], (out_ch,), jnp.float32)
    m2 = 0.1 * jax.random.normal(ks[12], (out_ch,), jnp.float32)
    v2 = jax.random.uniform(ks[13], (out_ch,), jnp.float32, 0.5, 1.5)

    wf1, bf1 = fold_conv_bn(w1, bc1, g1, be1, m1, v1)
    wf2, bf2 = fold_conv_bn(w2, bc2, g2, be2, m2, v2)

    out = jax.jit(up_forward)(x1, x2, wf1, bf1, wf2, bf2)
    jax.block_until_ready(out)

    assert out.shape == (N, out_ch, 16, 16)
    assert bool(jnp.all(jnp.isfinite(out)))
    assert bool(jnp.all(out >= 0.0))   # final ReLU
    print("KERNEL_OK")
</pallas_src>

<mosaic_0001>
module attributes {stable_mosaic.version = 11 : i64} {
  func.func @kernel(%arg0: i32, %arg1: memref<1x8x8x8xf32, #tpu.memory_space<vmem>>, %arg2: memref<1x16x16x4xf32, #tpu.memory_space<vmem>>, %arg3: memref<32x8xf32, #tpu.memory_space<vmem>>, %arg4: memref<9x8x4xf32, #tpu.memory_space<vmem>>, %arg5: memref<1x4xf32, #tpu.memory_space<vmem>>, %arg6: memref<9x4x8xf32, #tpu.memory_space<vmem>>, %arg7: memref<1x8xf32, #tpu.memory_space<vmem>>, %arg8: memref<1x16x16x8xf32, #tpu.memory_space<vmem>>, %arg9: memref<18x32x8xf32, #tpu.memory_space<vmem>>, %arg10: memref<18x32x4xf32, #tpu.memory_space<vmem>>) attributes {dimension_semantics = [#tpu.dimension_semantics<parallel>], iteration_bounds = array<i64: 2>, scalar_prefetch = 0 : i64, scratch_operands = 2 : i64, tpu.core_type = #tpu.core_type<tc>, window_params = [{transform_indices = @transform_0, window_bounds = array<i64: 1, 8, 8, 8>}, {transform_indices = @transform_1, window_bounds = array<i64: 1, 16, 16, 4>}, {pipeline_mode = #tpu.pipeline_mode<synchronous>, transform_indices = @transform_2, window_bounds = array<i64: 32, 8>}, {pipeline_mode = #tpu.pipeline_mode<synchronous>, transform_indices = @transform_3, window_bounds = array<i64: 9, 8, 4>}, {pipeline_mode = #tpu.pipeline_mode<synchronous>, transform_indices = @transform_4, window_bounds = array<i64: 1, 4>}, {pipeline_mode = #tpu.pipeline_mode<synchronous>, transform_indices = @transform_5, window_bounds = array<i64: 9, 4, 8>}, {pipeline_mode = #tpu.pipeline_mode<synchronous>, transform_indices = @transform_6, window_bounds = array<i64: 1, 8>}, {transform_indices = @transform_7, window_bounds = array<i64: 1, 16, 16, 8>}]} {
    %cst = arith.constant 0.000000e+00 : f32
    %0 = vector.broadcast %cst : f32 to vector<18x32x8xf32>
    %c0 = arith.constant 0 : index
    %c0_0 = arith.constant 0 : index
    %c0_1 = arith.constant 0 : index
    %1 = vector.load %arg9[%c0, %c0_0, %c0_1] : memref<18x32x8xf32, #tpu.memory_space<vmem>>, vector<18x32x8xf32>
    tpu.vector_store %arg9[%c0, %c0_0, %c0_1], %0 {strides = array<i32>} : memref<18x32x8xf32, #tpu.memory_space<vmem>>, vector<18x32x8xf32>,
    %c0_2 = arith.constant 0 : index
    %c0_3 = arith.constant 0 : index
    %2 = vector.load %arg3[%c0_2, %c0_3] : memref<32x8xf32, #tpu.memory_space<vmem>>, vector<32x8xf32>
    %c0_4 = arith.constant 0 : index
    %c0_5 = arith.constant 0 : index
    %c0_6 = arith.constant 0 : index
    %c0_7 = arith.constant 0 : index
    %3 = vector.load %arg1[%c0_4, %c0_5, %c0_6, %c0_7] : memref<1x8x8x8xf32, #tpu.memory_space<vmem>>, vector<1x1x8x8xf32>
    %4 = vector.shape_cast %3 : vector<1x1x8x8xf32> to vector<8x8xf32>
    %cst_8 = arith.constant dense<0.000000e+00> : vector<32x8xf32>
    %5 = tpu.matmul %2, %4, %cst_8 {dimension_numbers = #tpu.dot_dimension_numbers<[1], [0], [0], [1], [0, 0, 1, 1], [], []>} : vector<32x8xf32>, vector<8x8xf32>, vector<32x8xf32> -> vector<32x8xf32>
    %c0_9 = arith.constant 0 : index
    %c1 = arith.constant 1 : index
    %c0_10 = arith.constant 0 : index
    %c0_11 = arith.constant 0 : index
    %6 = vector.load %arg1[%c0_9, %c1, %c0_10, %c0_11] : memref<1x8x8x8xf32, #tpu.memory_space<vmem>>, vector<1x1x8x8xf32>
    %7 = vector.shape_cast %6 : vector<1x1x8x8xf32> to vector<8x8xf32>
    %cst_12 = arith.constant dense<0.000000e+00> : vector<32x8xf32>
    %8 = tpu.matmul %2, %7, %cst_12 {dimension_numbers = #tpu.dot_dimension_numbers<[1], [0], [0], [1], [0, 0, 1, 1], [], []>} : vector<32x8xf32>, vector<8x8xf32>, vector<32x8xf32> -> vector<32x8xf32>
    %c0_13 = arith.constant 0 : index
    %c2 = arith.constant 2 : index
    %c0_14 = arith.constant 0 : index
    %c0_15 = arith.constant 0 : index
    %9 = vector.load %arg1[%c0_13, %c2, %c0_14, %c0_15] : memref<1x8x8x8xf32, #tpu.memory_space<vmem>>, vector<1x1x8x8xf32>
    %10 = vector.shape_cast %9 : vector<1x1x8x8xf32> to vector<8x8xf32>
    %cst_16 = arith.constant dense<0.000000e+00> : vector<32x8xf32>
    %11 = tpu.matmul %2, %10, %cst_16 {dimension_numbers = #tpu.dot_dimension_numbers<[1], [0], [0], [1], [0, 0, 1, 1], [], []>} : vector<32x8xf32>, vector<8x8xf32>, vector<32x8xf32> -> vector<32x8xf32>
    %c0_17 = arith.constant 0 : index
    %c3 = arith.constant 3 : index
    %c0_18 = arith.constant 0 : index
    %c0_19 = arith.constant 0 : index
    %12 = vector.load %arg1[%c0_17, %c3, %c0_18, %c0_19] : memref<1x8x8x8xf32, #tpu.memory_space<vmem>>, vector<1x1x8x8xf32>
    %13 = vector.shape_cast %12 : vector<1x1x8x8xf32> to vector<8x8xf32>
    %cst_20 = arith.constant dense<0.000000e+00> : vector<32x8xf32>
    %14 = tpu.matmul %2, %13, %cst_20 {dimension_numbers = #tpu.dot_dimension_numbers<[1], [0], [0], [1], [0, 0, 1, 1], [], []>} : vector<32x8xf32>, vector<8x8xf32>, vector<32x8xf32> -> vector<32x8xf32>
    %c0_21 = arith.constant 0 : index
    %c4 = arith.constant 4 : index
    %c0_22 = arith.constant 0 : index
    %c0_23 = arith.constant 0 : index
    %15 = vector.load %arg1[%c0_21, %c4, %c0_22, %c0_23] : memref<1x8x8x8xf32, #tpu.memory_space<vmem>>, vector<1x1x8x8xf32>
    %16 = vector.shape_cast %15 : vector<1x1x8x8xf32> to vector<8x8xf32>
    %cst_24 = arith.constant dense<0.000000e+00> : vector<32x8xf32>
    %17 = tpu.matmul %2, %16, %cst_24 {dimension_numbers = #tpu.dot_dimension_numbers<[1], [0], [0], [1], [0, 0, 1, 1], [], []>} : vector<32x8xf32>, vector<8x8xf32>, vector<32x8xf32> -> vector<32x8xf32>
    %c0_25 = arith.constant 0 : index
    %c5 = arith.constant 5 : index
    %c0_26 = arith.constant 0 : index
    %c0_27 = arith.constant 0 : index
    %18 = vector.load %arg1[%c0_25, %c5, %c0_26, %c0_27] : memref<1x8x8x8xf32, #tpu.memory_space<vmem>>, vector<1x1x8x8xf32>
    %19 = vector.shape_cast %18 : vector<1x1x8x8xf32> to vector<8x8xf32>
    %cst_28 = arith.constant dense<0.000000e+00> : vector<32x8xf32>
    %20 = tpu.matmul %2, %19, %cst_28 {dimension_numbers = #tpu.dot_dimension_numbers<[1], [0], [0], [1], [0, 0, 1, 1], [], []>} : vector<32x8xf32>, vector<8x8xf32>, vector<32x8xf32> -> vector<32x8xf32>
    %c0_29 = arith.constant 0 : index
    %c6 = arith.constant 6 : index
    %c0_30 = arith.constant 0 : index
    %c0_31 = arith.constant 0 : index
    %21 = vector.load %arg1[%c0_29, %c6, %c0_30, %c0_31] : memref<1x8x8x8xf32, #tpu.memory_space<vmem>>, vector<1x1x8x8xf32>
    %22 = vector.shape_cast %21 : vector<1x1x8x8xf32> to vector<8x8xf32>
    %cst_32 = arith.constant dense<0.000000e+00> : vector<32x8xf32>
    %23 = tpu.matmul %2, %22, %cst_32 {dimension_numbers = #tpu.dot_dimension_numbers<[1], [0], [0], [1], [0, 0, 1, 1], [], []>} : vector<32x8xf32>, vector<8x8xf32>, vector<32x8xf32> -> vector<32x8xf32>
    %c0_33 = arith.constant 0 : index
    %c7 = arith.constant 7 : index
    %c0_34 = arith.constant 0 : index
    %c0_35 = arith.constant 0 : index
    %24 = vector.load %arg1[%c0_33, %c7, %c0_34, %c0_35] : memref<1x8x8x8xf32, #tpu.memory_space<vmem>>, vector<1x1x8x8xf32>
    %25 = vector.shape_cast %24 : vector<1x1x8x8xf32> to vector<8x8xf32>
    %cst_36 = arith.constant dense<0.000000e+00> : vector<32x8xf32>
    %26 = tpu.matmul %2, %25, %cst_36 {dimension_numbers = #tpu.dot_dimension_numbers<[1], [0], [0], [1], [0, 0, 1, 1], [], []>} : vector<32x8xf32>, vector<8x8xf32>, vector<32x8xf32> -> vector<32x8xf32>
    %cst_37 = arith.constant 1.000000e+00 : f32
    %27 = vector.broadcast %cst_37 : f32 to vector<32x8xf32>
    %28 = arith.mulf %27, %5 : vector<32x8xf32>
    %c1_38 = arith.constant 1 : index
    %c0_39 = arith.constant 0 : index
    %c0_40 = arith.constant 0 : index
    %29 = vector.load %arg9[%c1_38, %c0_39, %c0_40] : memref<18x32x8xf32, #tpu.memory_space<vmem>>, vector<1x32x8xf32>
    %30 = vector.shape_cast %29 : vector<1x32x8xf32> to vector<32x8xf32>
    %31 = vector.shape_cast %28 : vector<32x8xf32> to vector<1x32x8xf32>
    tpu.vector_store %arg9[%c1_38, %c0_39, %c0_40], %31 {strides = array<i32>} : memref<18x32x8xf32, #tpu.memory_space<vmem>>, vector<1x32x8xf32>,
    %cst_41 = arith.constant 0.533333361 : f32
    %32 = vector.broadcast %cst_41 : f32 to vector<32x8xf32>
    %33 = arith.mulf %32, %5 : vector<32x8xf32>
    %cst_42 = arith.constant 0.466666669 : f32
    %34 = vector.broadcast %cst_42 : f32 to vector<32x8xf32>
    %35 = arith.mulf %34, %8 : vector<32x8xf32>
    %36 = arith.addf %33, %35 : vector<32x8xf32>
    %c2_43 = arith.constant 2 : index
    %c0_44 = arith.constant 0 : index
    %c0_45 = arith.constant 0 : index
    %37 = vector.load %arg9[%c2_43, %c0_44, %c0_45] : memref<18x32x8xf32, #tpu.memory_space<vmem>>, vector<1x32x8xf32>
    %38 = vector.shape_cast %37 : vector<1x32x8xf32> to vector<32x8xf32>
    %39 = vector.shape_cast %36 : vector<32x8xf32> to vector<1x32x8xf32>
    tpu.vector_store %arg9[%c2_43, %c0_44, %c0_45], %39 {strides = array<i32>} : memref<18x32x8xf32, #tpu.memory_space<vmem>>, vector<1x32x8xf32>,
    %cst_46 = arith.constant 0.0666666701 : f32
    %40 = vector.broadcast %cst_46 : f32 to vector<32x8xf32>
    %41 = arith.mulf %40, %5 : vector<32x8xf32>
    %cst_47 = arith.constant 0.933333337 : f32
    %42 = vector.broadcast %cst_47 : f32 to vector<32x8xf32>
    %43 = arith.mulf %42, %8 : vector<32x8xf32>
    %44 = arith.addf %41, %43 : vector<32x8xf32>
    %c3_48 = arith.constant 3 : index
    %c0_49 = arith.constant 0 : index
    %c0_50 = arith.constant 0 : index
    %45 = vector.load %arg9[%c3_48, %c0_49, %c0_50] : memref<18x32x8xf32, #tpu.memory_space<vmem>>, vector<1x32x8xf32>
    %46 = vector.shape_cast %45 : vector<1x32x8xf32> to vector<32x8xf32>
    %47 = vector.shape_cast %44 : vector<32x8xf32> to vector<1x32x8xf32>
    tpu.vector_store %arg9[%c3_48, %c0_49, %c0_50], %47 {strides = array<i32>} : memref<18x32x8xf32, #tpu.memory_space<vmem>>, vector<1x32x8xf32>,
    %cst_51 = arith.constant 6.000000e-01 : f32
    %48 = vector.broadcast %cst_51 : f32 to vector<32x8xf32>
    %49 = arith.mulf %48, %8 : vector<32x8xf32>
    %cst_52 = arith.constant 4.000000e-01 : f32
    %50 = vector.broadcast %cst_52 : f32 to vector<32x8xf32>
    %51 = arith.mulf %50, %11 : vector<32x8xf32>
    %52 = arith.addf %49, %51 : vector<32x8xf32>
    %c4_53 = arith.constant 4 : index
    %c0_54 = arith.constant 0 : index
    %c0_55 = arith.constant 0 : index
    %53 = vector.load %arg9[%c4_53, %c0_54, %c0_55] : memref<18x32x8xf32, #tpu.memory_space<vmem>>, vector<1x32x8xf32>
    %54 = vector.shape_cast %53 : vector<1x32x8xf32> to vector<32x8xf32>
    %55 = vector.shape_cast %52 : vector<32x8xf32> to vector<1x32x8xf32>
    tpu.vector_store %arg9[%c4_53, %c0_54, %c0_55], %55 {strides = array<i32>} : memref<18x32x8xf32, #tpu.memory_space<vmem>>, vector<1x32x8xf32>,
    %cst_56 = arith.constant 0.13333334 : f32
    %56 = vector.broadcast %cst_56 : f32 to vector<32x8xf32>
    %57 = arith.mulf %56, %8 : vector<32x8xf32>
    %cst_57 = arith.constant 0.866666674 : f32
    %58 = vector.broadcast %cst_57 : f32 to vector<32x8xf32>
    %59 = arith.mulf %58, %11 : vector<32x8xf32>
    %60 = arith.addf %57, %59 : vector<32x8xf32>
    %c5_58 = arith.constant 5 : index
    %c0_59 = arith.constant 0 : index
    %c0_60 = arith.constant 0 : index
    %61 = vector.load %arg9[%c5_58, %c0_59, %c0_60] : memref<18x32x8xf32, #tpu.memory_space<vmem>>, vector<1x32x8xf32>
    %62 = vector.shape_cast %61 : vector<1x32x8xf32> to vector<32x8xf32>
    %63 = vector.shape_cast %60 : vector<32x8xf32> to vector<1x32x8xf32>
    tpu.vector_store %arg9[%c5_58, %c0_59, %c0_60], %63 {strides = array<i32>} : memref<18x32x8xf32, #tpu.memory_space<vmem>>, vector<1x32x8xf32>,
    %cst_61 = arith.constant 0.666666686 : f32
    %64 = vector.broadcast %cst_61 : f32 to vector<32x8xf32>
    %65 = arith.mulf %64, %11 : vector<32x8xf32>
    %cst_62 = arith.constant 0.333333343 : f32
    %66 = vector.broadcast %cst_62 : f32 to vector<32x8xf32>
    %67 = arith.mulf %66, %14 : vector<32x8xf32>
    %68 = arith.addf %65, %67 : vector<32x8xf32>
    %c6_63 = arith.constant 6 : index
    %c0_64 = arith.constant 0 : index
    %c0_65 = arith.constant 0 : index
    %69 = vector.load %arg9[%c6_63, %c0_64, %c0_65] : memref<18x32x8xf32, #tpu.memory_space<vmem>>, vector<1x32x8xf32>
    %70 = vector.shape_cast %69 : vector<1x32x8xf32> to vector<32x8xf32>
    %71 = vector.shape_cast %68 : vector<32x8xf32> to vector<1x32x8xf32>
    tpu.vector_store %arg9[%c6_63, %c0_64, %c0_65], %71 {strides = array<i32>} : memref<18x32x8xf32, #tpu.memory_space<vmem>>, vector<1x32x8xf32>,
    %cst_66 = arith.constant 2.000000e-01 : f32
    %72 = vector.broadcast %cst_66 : f32 to vector<32x8xf32>
    %73 = arith.mulf %72, %11 : vector<32x8xf32>
    %cst_67 = arith.constant 8.000000e-01 : f32
    %74 = vector.broadcast %cst_67 : f32 to vector<32x8xf32>
    %75 = arith.mulf %74, %14 : vector<32x8xf32>
    %76 = arith.addf %73, %75 : vector<32x8xf32>
    %c7_68 = arith.constant 7 : index
    %c0_69 = arith.constant 0 : index
    %c0_70 = arith.constant 0 : index
    %77 = vector.load %arg9[%c7_68, %c0_69, %c0_70] : memref<18x32x8xf32, #tpu.memory_space<vmem>>, vector<1x32x8xf32>
    %78 = vector.shape_cast %77 : vector<1x32x8xf32> to vector<32x8xf32>
    %79 = vector.shape_cast %76 : vector<32x8xf32> to vector<1x32x8xf32>
    tpu.vector_store %arg9[%c7_68, %c0_69, %c0_70], %79 {strides = array<i32>} : memref<18x32x8xf32, #tpu.memory_space<vmem>>, vector<1x32x8xf32>,
    %cst_71 = arith.constant 0.733333349 : f32
    %80 = vector.broadcast %cst_71 : f32 to vector<32x8xf32>
    %81 = arith.mulf %80, %14 : vector<32x8xf32>
    %cst_72 = arith.constant 0.266666681 : f32
    %82 = vector.broadcast %cst_72 : f32 to vector<32x8xf32>
    %83 = arith.mulf %82, %17 : vector<32x8xf32>
    %84 = arith.addf %81, %83 : vector<32x8xf32>
    %c8 = arith.constant 8 : index
    %c0_73 = arith.constant 0 : index
    %c0_74 = arith.constant 0 : index
    %85 = vector.load %arg9[%c8, %c0_73, %c0_74] : memref<18x32x8xf32, #tpu.memory_space<vmem>>, vector<1x32x8xf32>
    %86 = vector.shape_cast %85 : vector<1x32x8xf32> to vector<32x8xf32>
    %87 = vector.shape_cast %84 : vector<32x8xf32> to vector<1x32x8xf32>
    tpu.vector_store %arg9[%c8, %c0_73, %c0_74], %87 {strides = array<i32>} : memref<18x32x8xf32, #tpu.memory_space<vmem>>, vector<1x32x8xf32>,
    %cst_75 = arith.constant 0.266666681 : f32
    %88 = vector.broadcast %cst_75 : f32 to vector<32x8xf32>
    %89 = arith.mulf %88, %14 : vector<32x8xf32>
    %cst_76 = arith.constant 0.733333349 : f32
    %90 = vector.broadcast %cst_76 : f32 to vector<32x8xf32>
    %91 = arith.mulf %90, %17 : vector<32x8xf32>
    %92 = arith.addf %89, %91 : vector<32x8xf32>
    %c9 = arith.constant 9 : index
    %c0_77 = arith.constant 0 : index
    %c0_78 = arith.constant 0 : index
    %93 = vector.load %arg9[%c9, %c0_77, %c0_78] : memref<18x32x8xf32, #tpu.memory_space<vmem>>, vector<1x32x8xf32>
    %94 = vector.shape_cast %93 : vector<1x32x8xf32> to vector<32x8xf32>
    %95 = vector.shape_cast %92 : vector<32x8xf32> to vector<1x32x8xf32>
    tpu.vector_store %arg9[%c9, %c0_77, %c0_78], %95 {strides = array<i32>} : memref<18x32x8xf32, #tpu.memory_space<vmem>>, vector<1x32x8xf32>,
    %cst_79 = arith.constant 8.000000e-01 : f32
    %96 = vector.broadcast %cst_79 : f32 to vector<32x8xf32>
    %97 = arith.mulf %96, %17 : vector<32x8xf32>
    %cst_80 = arith.constant 2.000000e-01 : f32
    %98 = vector.broadcast %cst_80 : f32 to vector<32x8xf32>
    %99 = arith.mulf %98, %20 : vector<32x8xf32>
    %100 = arith.addf %97, %99 : vector<32x8xf32>
    %c10 = arith.constant 10 : index
    %c0_81 = arith.constant 0 : index
    %c0_82 = arith.constant 0 : index
    %101 = vector.load %arg9[%c10, %c0_81, %c0_82] : memref<18x32x8xf32, #tpu.memory_space<vmem>>, vector<1x32x8xf32>
    %102 = vector.shape_cast %101 : vector<1x32x8xf32> to vector<32x8xf32>
    %103 = vector.shape_cast %100 : vector<32x8xf32> to vector<1x32x8xf32>
    tpu.vector_store %arg9[%c10, %c0_81, %c0_82], %103 {strides = array<i32>} : memref<18x32x8xf32, #tpu.memory_space<vmem>>, vector<1x32x8xf32>,
    %cst_83 = arith.constant 0.333333343 : f32
    %104 = vector.broadcast %cst_83 : f32 to vector<32x8xf32>
    %105 = arith.mulf %104, %17 : vector<32x8xf32>
    %cst_84 = arith.constant 0.666666686 : f32
    %106 = vector.broadcast %cst_84 : f32 to vector<32x8xf32>
    %107 = arith.mulf %106, %20 : vector<32x8xf32>
    %108 = arith.addf %105, %107 : vector<32x8xf32>
    %c11 = arith.constant 11 : index
    %c0_85 = arith.constant 0 : index
    %c0_86 = arith.constant 0 : index
    %109 = vector.load %arg9[%c11, %c0_85, %c0_86] : memref<18x32x8xf32, #tpu.memory_space<vmem>>, vector<1x32x8xf32>
    %110 = vector.shape_cast %109 : vector<1x32x8xf32> to vector<32x8xf32>
    %111 = vector.shape_cast %108 : vector<32x8xf32> to vector<1x32x8xf32>
    tpu.vector_store %arg9[%c11, %c0_85, %c0_86], %111 {strides = array<i32>} : memref<18x32x8xf32, #tpu.memory_space<vmem>>, vector<1x32x8xf32>,
    %cst_87 = arith.constant 0.866666674 : f32
    %112 = vector.broadcast %cst_87 : f32 to vector<32x8xf32>
    %113 = arith.mulf %112, %20 : vector<32x8xf32>
    %cst_88 = arith.constant 0.13333334 : f32
    %114 = vector.broadcast %cst_88 : f32 to vector<32x8xf32>
    %115 = arith.mulf %114, %23 : vector<32x8xf32>
    %116 = arith.addf %113, %115 : vector<32x8xf32>
    %c12 = arith.constant 12 : index
    %c0_89 = arith.constant 0 : index
    %c0_90 = arith.constant 0 : index
    %117 = vector.load %arg9[%c12, %c0_89, %c0_90] : memref<18x32x8xf32, #tpu.memory_space<vmem>>, vector<1x32x8xf32>
    %118 = vector.shape_cast %117 : vector<1x32x8xf32> to vector<32x8xf32>
    %119 = vector.shape_cast %116 : vector<32x8xf32> to vector<1x32x8xf32>
    tpu.vector_store %arg9[%c12, %c0_89, %c0_90], %119 {strides = array<i32>} : memref<18x32x8xf32, #tpu.memory_space<vmem>>, vector<1x32x8xf32>,
    %cst_91 = arith.constant 4.000000e-01 : f32
    %120 = vector.broadcast %cst_91 : f32 to vector<32x8xf32>
    %121 = arith.mulf %120, %20 : vector<32x8xf32>
    %cst_92 = arith.constant 6.000000e-01 : f32
    %122 = vector.broadcast %cst_92 : f32 to vector<32x8xf32>
    %123 = arith.mulf %122, %23 : vector<32x8xf32>
    %124 = arith.addf %121, %123 : vector<32x8xf32>
    %c13 = arith.constant 13 : index
    %c0_93 = arith.constant 0 : index
    %c0_94 = arith.constant 0 : index
    %125 = vector.load %arg9[%c13, %c0_93, %c0_94] : memref<18x32x8xf32, #tpu.memory_space<vmem>>, vector<1x32x8xf32>
    %126 = vector.shape_cast %125 : vector<1x32x8xf32> to vector<32x8xf32>
    %127 = vector.shape_cast %124 : vector<32x8xf32> to vector<1x32x8xf32>
    tpu.vector_store %arg9[%c13, %c0_93, %c0_94], %127 {strides = array<i32>} : memref<18x32x8xf32, #tpu.memory_space<vmem>>, vector<1x32x8xf32>,
    %cst_95 = arith.constant 0.933333337 : f32
    %128 = vector.broadcast %cst_95 : f32 to vector<32x8xf32>
    %129 = arith.mulf %128, %23 : vector<32x8xf32>
    %cst_96 = arith.constant 0.0666666701 : f32
    %130 = vector.broadcast %cst_96 : f32 to vector<32x8xf32>
    %131 = arith.mulf %130, %26 : vector<32x8xf32>
    %132 = arith.addf %129, %131 : vector<32x8xf32>
    %c14 = arith.constant 14 : index
    %c0_97 = arith.constant 0 : index
    %c0_98 = arith.constant 0 : index
    %133 = vector.load %arg9[%c14, %c0_97, %c0_98] : memref<18x32x8xf32, #tpu.memory_space<vmem>>, vector<1x32x8xf32>
    %134 = vector.shape_cast %133 : vector<1x32x8xf32> to vector<32x8xf32>
    %135 = vector.shape_cast %132 : vector<32x8xf32> to vector<1x32x8xf32>
    tpu.vector_store %arg9[%c14, %c0_97, %c0_98], %135 {strides = array<i32>} : memref<18x32x8xf32, #tpu.memory_space<vmem>>, vector<1x32x8xf32>,
    %cst_99 = arith.constant 0.466666669 : f32
    %136 = vector.broadcast %cst_99 : f32 to vector<32x8xf32>
    %137 = arith.mulf %136, %23 : vector<32x8xf32>
    %cst_100 = arith.constant 0.533333361 : f32
    %138 = vector.broadcast %cst_100 : f32 to vector<32x8xf32>
    %139 = arith.mulf %138, %26 : vector<32x8xf32>
    %140 = arith.addf %137, %139 : vector<32x8xf32>
    %c15 = arith.constant 15 : index
    %c0_101 = arith.constant 0 : index
    %c0_102 = arith.constant 0 : index
    %141 = vector.load %arg9[%c15, %c0_101, %c0_102] : memref<18x32x8xf32, #tpu.memory_space<vmem>>, vector<1x32x8xf32>
    %142 = vector.shape_cast %141 : vector<1x32x8xf32> to vector<32x8xf32>
    %143 = vector.shape_cast %140 : vector<32x8xf32> to vector<1x32x8xf32>
    tpu.vector_store %arg9[%c15, %c0_101, %c0_102], %143 {strides = array<i32>} : memref<18x32x8xf32, #tpu.memory_space<vmem>>, vector<1x32x8xf32>,
    %cst_103 = arith.constant 1.000000e+00 : f32
    %144 = vector.broadcast %cst_103 : f32 to vector<32x8xf32>
    %145 = arith.mulf %144, %26 : vector<32x8xf32>
    %c16 = arith.constant 16 : index
    %c0_104 = arith.constant 0 : index
    %c0_105 = arith.constant 0 : index
    %146 = vector.load %arg9[%c16, %c0_104, %c0_105] : memref<18x32x8xf32, #tpu.memory_space<vmem>>, vector<1x32x8xf32>
    %147 = vector.shape_cast %146 : vector<1x32x8xf32> to vector<32x8xf32>
    %148 = vector.shape_cast %145 : vector<32x8xf32> to vector<1x32x8xf32>
    tpu.vector_store %arg9[%c16, %c0_104, %c0_105], %148 {strides = array<i32>} : memref<18x32x8xf32, #tpu.memory_space<vmem>>, vector<1x32x8xf32>,
    %c0_106 = arith.constant 0 : index
    %c0_107 = arith.constant 0 : index
    %c0_108 = arith.constant 0 : index
    %c0_109 = arith.constant 0 : index
    %149 = vector.load %arg2[%c0_106, %c0_107, %c0_108, %c0_109] : memref<1x16x16x4xf32, #tpu.memory_space<vmem>>, vector<1x16x16x4xf32>
    %150 = vector.shape_cast %149 : vector<1x16x16x4xf32> to vector<16x16x4xf32>
    %c1_110 = arith.constant 1 : index
    %c8_111 = arith.constant 8 : index
    %c0_112 = arith.constant 0 : index
    %151 = vector.load %arg9[%c1_110, %c8_111, %c0_112] : memref<18x32x8xf32, #tpu.memory_space<vmem>>, vector<16x16x4xf32>
    tpu.vector_store %arg9[%c1_110, %c8_111, %c0_112], %150 {strides = array<i32>} : memref<18x32x8xf32, #tpu.memory_space<vmem>>, vector<16x16x4xf32>,
    %cst_113 = arith.constant 0.000000e+00 : f32
    %152 = vector.broadcast %cst_113 : f32 to vector<256x4xf32>
    %c0_114 = arith.constant 0 : index
    %c7_115 = arith.constant 7 : index
    %c0_116 = arith.constant 0 : index
    %153 = vector.load %arg9[%c0_114, %c7_115, %c0_116] : memref<18x32x8xf32, #tpu.memory_space<vmem>>, vector<16x16x8xf32>
    %154 = vector.shape_cast %153 : vector<16x16x8xf32> to vector<256x8xf32>
    %c0_117 = arith.constant 0 : index
    %c0_118 = arith.constant 0 : index
    %c0_119 = arith.constant 0 : index
    %155 = vector.load %arg4[%c0_117, %c0_118, %c0_119] : memref<9x8x4xf32, #tpu.memory_space<vmem>>, vector<1x8x4xf32>
    %156 = vector.shape_cast %155 : vector<1x8x4xf32> to vector<8x4xf32>
    %cst_120 = arith.constant dense<0.000000e+00> : vector<256x4xf32>
    %157 = tpu.matmul %154, %156, %cst_120 {dimension_numbers = #tpu.dot_dimension_numbers<[1], [0], [0], [1], [0, 0, 1, 1], [], []>} : vector<256x8xf32>, vector<8x4xf32>, vector<256x4xf32> -> vector<256x4xf32>
    %158 = arith.addf %152, %157 : vector<256x4xf32>
    %c0_121 = arith.constant 0 : index
    %c8_122 = arith.constant 8 : index
    %c0_123 = arith.constant 0 : index
    %159 = vector.load %arg9[%c0_121, %c8_122, %c0_123] : memref<18x32x8xf32, #tpu.memory_space<vmem>>, vector<16x16x8xf32>
    %160 = vector.shape_cast %159 : vector<16x16x8xf32> to vector<256x8xf32>
    %c1_124 = arith.constant 1 : index
    %c0_125 = arith.constant 0 : index
    %c0_126 = arith.constant 0 : index
    %161 = vector.load %arg4[%c1_124, %c0_125, %c0_126] : memref<9x8x4xf32, #tpu.memory_space<vmem>>, vector<1x8x4xf32>
    %162 = vector.shape_cast %161 : vector<1x8x4xf32> to vector<8x4xf32>
    %cst_127 = arith.constant dense<0.000000e+00> : vector<256x4xf32>
    %163 = tpu.matmul %160, %162, %cst_127 {dimension_numbers = #tpu.dot_dimension_numbers<[1], [0], [0], [1], [0, 0, 1, 1], [], []>} : vector<256x8xf32>, vector<8x4xf32>, vector<256x4xf32> -> vector<256x4xf32>
    %164 = arith.addf %158, %163 : vector<256x4xf32>
    %c0_128 = arith.constant 0 : index
    %c9_129 = arith.constant 9 : index
    %c0_130 = arith.constant 0 : index
    %165 = vector.load %arg9[%c0_128, %c9_129, %c0_130] : memref<18x32x8xf32, #tpu.memory_space<vmem>>, vector<16x16x8xf32>
    %166 = vector.shape_cast %165 : vector<16x16x8xf32> to vector<256x8xf32>
    %c2_131 = arith.constant 2 : index
    %c0_132 = arith.constant 0 : index
    %c0_133 = arith.constant 0 : index
    %167 = vector.load %arg4[%c2_131, %c0_132, %c0_133] : memref<9x8x4xf32, #tpu.memory_space<vmem>>, vector<1x8x4xf32>
    %168 = vector.shape_cast %167 : vector<1x8x4xf32> to vector<8x4xf32>
    %cst_134 = arith.constant dense<0.000000e+00> : vector<256x4xf32>
    %169 = tpu.matmul %166, %168, %cst_134 {dimension_numbers = #tpu.dot_dimension_numbers<[1], [0], [0], [1], [0, 0, 1, 1], [], []>} : vector<256x8xf32>, vector<8x4xf32>, vector<256x4xf32> -> vector<256x4xf32>
    %170 = arith.addf %164, %169 : vector<256x4xf32>
    %c1_135 = arith.constant 1 : index
    %c7_136 = arith.constant 7 : index
    %c0_137 = arith.constant 0 : index
    %171 = vector.load %arg9[%c1_135, %c7_136, %c0_137] : memref<18x32x8xf32, #tpu.memory_space<vmem>>, vector<16x16x8xf32>
    %172 = vector.shape_cast %171 : vector<16x16x8xf32> to vector<256x8xf32>
    %c3_138 = arith.constant 3 : index
    %c0_139 = arith.constant 0 : index
    %c0_140 = arith.constant 0 : index
    %173 = vector.load %arg4[%c3_138, %c0_139, %c0_140] : memref<9x8x4xf32, #tpu.memory_space<vmem>>, vector<1x8x4xf32>
    %174 = vector.shape_cast %173 : vector<1x8x4xf32> to vector<8x4xf32>
    %cst_141 = arith.constant dense<0.000000e+00> : vector<256x4xf32>
    %175 = tpu.matmul %172, %174, %cst_141 {dimension_numbers = #tpu.dot_dimension_numbers<[1], [0], [0], [1], [0, 0, 1, 1], [], []>} : vector<256x8xf32>, vector<8x4xf32>, vector<256x4xf32> -> vector<256x4xf32>
    %176 = arith.addf %170, %175 : vector<256x4xf32>
    %c1_142 = arith.constant 1 : index
    %c8_143 = arith.constant 8 : index
    %c0_144 = arith.constant 0 : index
    %177 = vector.load %arg9[%c1_142, %c8_143, %c0_144] : memref<18x32x8xf32, #tpu.memory_space<vmem>>, vector<16x16x8xf32>
    %178 = vector.shape_cast %177 : vector<16x16x8xf32> to vector<256x8xf32>
    %c4_145 = arith.constant 4 : index
    %c0_146 = arith.constant 0 : index
    %c0_147 = arith.constant 0 : index
    %179 = vector.load %arg4[%c4_145, %c0_146, %c0_147] : memref<9x8x4xf32, #tpu.memory_space<vmem>>, vector<1x8x4xf32>
    %180 = vector.shape_cast %179 : vector<1x8x4xf32> to vector<8x4xf32>
    %cst_148 = arith.constant dense<0.000000e+00> : vector<256x4xf32>
    %181 = tpu.matmul %178, %180, %cst_148 {dimension_numbers = #tpu.dot_dimension_numbers<[1], [0], [0], [1], [0, 0, 1, 1], [], []>} : vector<256x8xf32>, vector<8x4xf32>, vector<256x4xf32> -> vector<256x4xf32>
    %182 = arith.addf %176, %181 : vector<256x4xf32>
    %c1_149 = arith.constant 1 : index
    %c9_150 = arith.constant 9 : index
    %c0_151 = arith.constant 0 : index
    %183 = vector.load %arg9[%c1_149, %c9_150, %c0_151] : memref<18x32x8xf32, #tpu.memory_space<vmem>>, vector<16x16x8xf32>
    %184 = vector.shape_cast %183 : vector<16x16x8xf32> to vector<256x8xf32>
    %c5_152 = arith.constant 5 : index
    %c0_153 = arith.constant 0 : index
    %c0_154 = arith.constant 0 : index
    %185 = vector.load %arg4[%c5_152, %c0_153, %c0_154] : memref<9x8x4xf32, #tpu.memory_space<vmem>>, vector<1x8x4xf32>
    %186 = vector.shape_cast %185 : vector<1x8x4xf32> to vector<8x4xf32>
    %cst_155 = arith.constant dense<0.000000e+00> : vector<256x4xf32>
    %187 = tpu.matmul %184, %186, %cst_155 {dimension_numbers = #tpu.dot_dimension_numbers<[1], [0], [0], [1], [0, 0, 1, 1], [], []>} : vector<256x8xf32>, vector<8x4xf32>, vector<256x4xf32> -> vector<256x4xf32>
    %188 = arith.addf %182, %187 : vector<256x4xf32>
    %c2_156 = arith.constant 2 : index
    %c7_157 = arith.constant 7 : index
    %c0_158 = arith.constant 0 : index
    %189 = vector.load %arg9[%c2_156, %c7_157, %c0_158] : memref<18x32x8xf32, #tpu.memory_space<vmem>>, vector<16x16x8xf32>
    %190 = vector.shape_cast %189 : vector<16x16x8xf32> to vector<256x8xf32>
    %c6_159 = arith.constant 6 : index
    %c0_160 = arith.constant 0 : index
    %c0_161 = arith.constant 0 : index
    %191 = vector.load %arg4[%c6_159, %c0_160, %c0_161] : memref<9x8x4xf32, #tpu.memory_space<vmem>>, vector<1x8x4xf32>
    %192 = vector.shape_cast %191 : vector<1x8x4xf32> to vector<8x4xf32>
    %cst_162 = arith.constant dense<0.000000e+00> : vector<256x4xf32>
    %193 = tpu.matmul %190, %192, %cst_162 {dimension_numbers = #tpu.dot_dimension_numbers<[1], [0], [0], [1], [0, 0, 1, 1], [], []>} : vector<256x8xf32>, vector<8x4xf32>, vector<256x4xf32> -> vector<256x4xf32>
    %194 = arith.addf %188, %193 : vector<256x4xf32>
    %c2_163 = arith.constant 2 : index
    %c8_164 = arith.constant 8 : index
    %c0_165 = arith.constant 0 : index
    %195 = vector.load %arg9[%c2_163, %c8_164, %c0_165] : memref<18x32x8xf32, #tpu.memory_space<vmem>>, vector<16x16x8xf32>
    %196 = vector.shape_cast %195 : vector<16x16x8xf32> to vector<256x8xf32>
    %c7_166 = arith.constant 7 : index
    %c0_167 = arith.constant 0 : index
    %c0_168 = arith.constant 0 : index
    %197 = vector.load %arg4[%c7_166, %c0_167, %c0_168] : memref<9x8x4xf32, #tpu.memory_space<vmem>>, vector<1x8x4xf32>
    %198 = vector.shape_cast %197 : vector<1x8x4xf32> to vector<8x4xf32>
    %cst_169 = arith.constant dense<0.000000e+00> : vector<256x4xf32>
    %199 = tpu.matmul %196, %198, %cst_169 {dimension_numbers = #tpu.dot_dimension_numbers<[1], [0], [0], [1], [0, 0, 1, 1], [], []>} : vector<256x8xf32>, vector<8x4xf32>, vector<256x4xf32> -> vector<256x4xf32>
    %200 = arith.addf %194, %199 : vector<256x4xf32>
    %c2_170 = arith.constant 2 : index
    %c9_171 = arith.constant 9 : index
    %c0_172 = arith.constant 0 : index
    %201 = vector.load %arg9[%c2_170, %c9_171, %c0_172] : memref<18x32x8xf32, #tpu.memory_space<vmem>>, vector<16x16x8xf32>
    %202 = vector.shape_cast %201 : vector<16x16x8xf32> to vector<256x8xf32>
    %c8_173 = arith.constant 8 : index
    %c0_174 = arith.constant 0 : index
    %c0_175 = arith.constant 0 : index
    %203 = vector.load %arg4[%c8_173, %c0_174, %c0_175] : memref<9x8x4xf32, #tpu.memory_space<vmem>>, vector<1x8x4xf32>
    %204 = vector.shape_cast %203 : vector<1x8x4xf32> to vector<8x4xf32>
    %cst_176 = arith.constant dense<0.000000e+00> : vector<256x4xf32>
    %205 = tpu.matmul %202, %204, %cst_176 {dimension_numbers = #tpu.dot_dimension_numbers<[1], [0], [0], [1], [0, 0, 1, 1], [], []>} : vector<256x8xf32>, vector<8x4xf32>, vector<256x4xf32> -> vector<256x4xf32>
    %206 = arith.addf %200, %205 : vector<256x4xf32>
    %c0_177 = arith.constant 0 : index
    %c0_178 = arith.constant 0 : index
    %207 = vector.load %arg5[%c0_177, %c0_178] : memref<1x4xf32, #tpu.memory_space<vmem>>, vector<1x4xf32>
    %208 = vector.broadcast %207 : vector<1x4xf32> to vector<256x4xf32>
    %209 = arith.addf %206, %208 : vector<256x4xf32>
    %cst_179 = arith.constant 0.000000e+00 : f32
    %210 = vector.broadcast %cst_179 : f32 to vector<256x4xf32>
    %211 = arith.maximumf %209, %210 : vector<256x4xf32>
    %cst_180 = arith.constant 0.000000e+00 : f32
    %212 = vector.broadcast %cst_180 : f32 to vector<18x32x4xf32>
    %c0_181 = arith.constant 0 : index
    %c0_182 = arith.constant 0 : index
    %c0_183 = arith.constant 0 : index
    %213 = vector.load %arg10[%c0_181, %c0_182, %c0_183] : memref<18x32x4xf32, #tpu.memory_space<vmem>>, vector<18x32x4xf32>
    tpu.vector_store %arg10[%c0_181, %c0_182, %c0_183], %212 {strides = array<i32>} : memref<18x32x4xf32, #tpu.memory_space<vmem>>, vector<18x32x4xf32>,
    %214 = vector.shape_cast %211 : vector<256x4xf32> to vector<16x16x4xf32>
    %c1_184 = arith.constant 1 : index
    %c8_185 = arith.constant 8 : index
    %c0_186 = arith.constant 0 : index
    %215 = vector.load %arg10[%c1_184, %c8_185, %c0_186] : memref<18x32x4xf32, #tpu.memory_space<vmem>>, vector<16x16x4xf32>
    tpu.vector_store %arg10[%c1_184, %c8_185, %c0_186], %214 {strides = array<i32>} : memref<18x32x4xf32, #tpu.memory_space<vmem>>, vector<16x16x4xf32>,
    %cst_187 = arith.constant 0.000000e+00 : f32
    %216 = vector.broadcast %cst_187 : f32 to vector<256x8xf32>
    %c0_188 = arith.constant 0 : index
    %c7_189 = arith.constant 7 : index
    %c0_190 = arith.constant 0 : index
    %217 = vector.load %arg10[%c0_188, %c7_189, %c0_190] : memref<18x32x4xf32, #tpu.memory_space<vmem>>, vector<16x16x4xf32>
    %218 = vector.shape_cast %217 : vector<16x16x4xf32> to vector<256x4xf32>
    %c0_191 = arith.constant 0 : index
    %c0_192 = arith.constant 0 : index
    %c0_193 = arith.constant 0 : index
    %219 = vector.load %arg6[%c0_191, %c0_192, %c0_193] : memref<9x4x8xf32, #tpu.memory_space<vmem>>, vector<1x4x8xf32>
    %220 = vector.shape_cast %219 : vector<1x4x8xf32> to vector<4x8xf32>
    %cst_194 = arith.constant dense<0.000000e+00> : vector<256x8xf32>
    %221 = tpu.matmul %218, %220, %cst_194 {dimension_numbers = #tpu.dot_dimension_numbers<[1], [0], [0], [1], [0, 0, 1, 1], [], []>} : vector<256x4xf32>, vector<4x8xf32>, vector<256x8xf32> -> vector<256x8xf32>
    %222 = arith.addf %216, %221 : vector<256x8xf32>
    %c0_195 = arith.constant 0 : index
    %c8_196 = arith.constant 8 : index
    %c0_197 = arith.constant 0 : index
    %223 = vector.load %arg10[%c0_195, %c8_196, %c0_197] : memref<18x32x4xf32, #tpu.memory_space<vmem>>, vector<16x16x4xf32>
    %224 = vector.shape_cast %223 : vector<16x16x4xf32> to vector<256x4xf32>
    %c1_198 = arith.constant 1 : index
    %c0_199 = arith.constant 0 : index
    %c0_200 = arith.constant 0 : index
    %225 = vector.load %arg6[%c1_198, %c0_199, %c0_200] : memref<9x4x8xf32, #tpu.memory_space<vmem>>, vector<1x4x8xf32>
    %226 = vector.shape_cast %225 : vector<1x4x8xf32> to vector<4x8xf32>
    %cst_201 = arith.constant dense<0.000000e+00> : vector<256x8xf32>
    %227 = tpu.matmul %224, %226, %cst_201 {dimension_numbers = #tpu.dot_dimension_numbers<[1], [0], [0], [1], [0, 0, 1, 1], [], []>} : vector<256x4xf32>, vector<4x8xf32>, vector<256x8xf32> -> vector<256x8xf32>
    %228 = arith.addf %222, %227 : vector<256x8xf32>
    %c0_202 = arith.constant 0 : index
    %c9_203 = arith.constant 9 : index
    %c0_204 = arith.constant 0 : index
    %229 = vector.load %arg10[%c0_202, %c9_203, %c0_204] : memref<18x32x4xf32, #tpu.memory_space<vmem>>, vector<16x16x4xf32>
    %230 = vector.shape_cast %229 : vector<16x16x4xf32> to vector<256x4xf32>
    %c2_205 = arith.constant 2 : index
    %c0_206 = arith.constant 0 : index
    %c0_207 = arith.constant 0 : index
    %231 = vector.load %arg6[%c2_205, %c0_206, %c0_207] : memref<9x4x8xf32, #tpu.memory_space<vmem>>, vector<1x4x8xf32>
    %232 = vector.shape_cast %231 : vector<1x4x8xf32> to vector<4x8xf32>
    %cst_208 = arith.constant dense<0.000000e+00> : vector<256x8xf32>
    %233 = tpu.matmul %230, %232, %cst_208 {dimension_numbers = #tpu.dot_dimension_numbers<[1], [0], [0], [1], [0, 0, 1, 1], [], []>} : vector<256x4xf32>, vector<4x8xf32>, vector<256x8xf32> -> vector<256x8xf32>
    %234 = arith.addf %228, %233 : vector<256x8xf32>
    %c1_209 = arith.constant 1 : index
    %c7_210 = arith.constant 7 : index
    %c0_211 = arith.constant 0 : index
    %235 = vector.load %arg10[%c1_209, %c7_210, %c0_211] : memref<18x32x4xf32, #tpu.memory_space<vmem>>, vector<16x16x4xf32>
    %236 = vector.shape_cast %235 : vector<16x16x4xf32> to vector<256x4xf32>
    %c3_212 = arith.constant 3 : index
    %c0_213 = arith.constant 0 : index
    %c0_214 = arith.constant 0 : index
    %237 = vector.load %arg6[%c3_212, %c0_213, %c0_214] : memref<9x4x8xf32, #tpu.memory_space<vmem>>, vector<1x4x8xf32>
    %238 = vector.shape_cast %237 : vector<1x4x8xf32> to vector<4x8xf32>
    %cst_215 = arith.constant dense<0.000000e+00> : vector<256x8xf32>
    %239 = tpu.matmul %236, %238, %cst_215 {dimension_numbers = #tpu.dot_dimension_numbers<[1], [0], [0], [1], [0, 0, 1, 1], [], []>} : vector<256x4xf32>, vector<4x8xf32>, vector<256x8xf32> -> vector<256x8xf32>
    %240 = arith.addf %234, %239 : vector<256x8xf32>
    %c1_216 = arith.constant 1 : index
    %c8_217 = arith.constant 8 : index
    %c0_218 = arith.constant 0 : index
    %241 = vector.load %arg10[%c1_216, %c8_217, %c0_218] : memref<18x32x4xf32, #tpu.memory_space<vmem>>, vector<16x16x4xf32>
    %242 = vector.shape_cast %241 : vector<16x16x4xf32> to vector<256x4xf32>
    %c4_219 = arith.constant 4 : index
    %c0_220 = arith.constant 0 : index
    %c0_221 = arith.constant 0 : index
    %243 = vector.load %arg6[%c4_219, %c0_220, %c0_221] : memref<9x4x8xf32, #tpu.memory_space<vmem>>, vector<1x4x8xf32>
    %244 = vector.shape_cast %243 : vector<1x4x8xf32> to vector<4x8xf32>
    %cst_222 = arith.constant dense<0.000000e+00> : vector<256x8xf32>
    %245 = tpu.matmul %242, %244, %cst_222 {dimension_numbers = #tpu.dot_dimension_numbers<[1], [0], [0], [1], [0, 0, 1, 1], [], []>} : vector<256x4xf32>, vector<4x8xf32>, vector<256x8xf32> -> vector<256x8xf32>
    %246 = arith.addf %240, %245 : vector<256x8xf32>
    %c1_223 = arith.constant 1 : index
    %c9_224 = arith.constant 9 : index
    %c0_225 = arith.constant 0 : index
    %247 = vector.load %arg10[%c1_223, %c9_224, %c0_225] : memref<18x32x4xf32, #tpu.memory_space<vmem>>, vector<16x16x4xf32>
    %248 = vector.shape_cast %247 : vector<16x16x4xf32> to vector<256x4xf32>
    %c5_226 = arith.constant 5 : index
    %c0_227 = arith.constant 0 : index
    %c0_228 = arith.constant 0 : index
    %249 = vector.load %arg6[%c5_226, %c0_227, %c0_228] : memref<9x4x8xf32, #tpu.memory_space<vmem>>, vector<1x4x8xf32>
    %250 = vector.shape_cast %249 : vector<1x4x8xf32> to vector<4x8xf32>
    %cst_229 = arith.constant dense<0.000000e+00> : vector<256x8xf32>
    %251 = tpu.matmul %248, %250, %cst_229 {dimension_numbers = #tpu.dot_dimension_numbers<[1], [0], [0], [1], [0, 0, 1, 1], [], []>} : vector<256x4xf32>, vector<4x8xf32>, vector<256x8xf32> -> vector<256x8xf32>
    %252 = arith.addf %246, %251 : vector<256x8xf32>
    %c2_230 = arith.constant 2 : index
    %c7_231 = arith.constant 7 : index
    %c0_232 = arith.constant 0 : index
    %253 = vector.load %arg10[%c2_230, %c7_231, %c0_232] : memref<18x32x4xf32, #tpu.memory_space<vmem>>, vector<16x16x4xf32>
    %254 = vector.shape_cast %253 : vector<16x16x4xf32> to vector<256x4xf32>
    %c6_233 = arith.constant 6 : index
    %c0_234 = arith.constant 0 : index
    %c0_235 = arith.constant 0 : index
    %255 = vector.load %arg6[%c6_233, %c0_234, %c0_235] : memref<9x4x8xf32, #tpu.memory_space<vmem>>, vector<1x4x8xf32>
    %256 = vector.shape_cast %255 : vector<1x4x8xf32> to vector<4x8xf32>
    %cst_236 = arith.constant dense<0.000000e+00> : vector<256x8xf32>
    %257 = tpu.matmul %254, %256, %cst_236 {dimension_numbers = #tpu.dot_dimension_numbers<[1], [0], [0], [1], [0, 0, 1, 1], [], []>} : vector<256x4xf32>, vector<4x8xf32>, vector<256x8xf32> -> vector<256x8xf32>
    %258 = arith.addf %252, %257 : vector<256x8xf32>
    %c2_237 = arith.constant 2 : index
    %c8_238 = arith.constant 8 : index
    %c0_239 = arith.constant 0 : index
    %259 = vector.load %arg10[%c2_237, %c8_238, %c0_239] : memref<18x32x4xf32, #tpu.memory_space<vmem>>, vector<16x16x4xf32>
    %260 = vector.shape_cast %259 : vector<16x16x4xf32> to vector<256x4xf32>
    %c7_240 = arith.constant 7 : index
    %c0_241 = arith.constant 0 : index
    %c0_242 = arith.constant 0 : index
    %261 = vector.load %arg6[%c7_240, %c0_241, %c0_242] : memref<9x4x8xf32, #tpu.memory_space<vmem>>, vector<1x4x8xf32>
    %262 = vector.shape_cast %261 : vector<1x4x8xf32> to vector<4x8xf32>
    %cst_243 = arith.constant dense<0.000000e+00> : vector<256x8xf32>
    %263 = tpu.matmul %260, %262, %cst_243 {dimension_numbers = #tpu.dot_dimension_numbers<[1], [0], [0], [1], [0, 0, 1, 1], [], []>} : vector<256x4xf32>, vector<4x8xf32>, vector<256x8xf32> -> vector<256x8xf32>
    %264 = arith.addf %258, %263 : vector<256x8xf32>
    %c2_244 = arith.constant 2 : index
    %c9_245 = arith.constant 9 : index
    %c0_246 = arith.constant 0 : index
    %265 = vector.load %arg10[%c2_244, %c9_245, %c0_246] : memref<18x32x4xf32, #tpu.memory_space<vmem>>, vector<16x16x4xf32>
    %266 = vector.shape_cast %265 : vector<16x16x4xf32> to vector<256x4xf32>
    %c8_247 = arith.constant 8 : index
    %c0_248 = arith.constant 0 : index
    %c0_249 = arith.constant 0 : index
    %267 = vector.load %arg6[%c8_247, %c0_248, %c0_249] : memref<9x4x8xf32, #tpu.memory_space<vmem>>, vector<1x4x8xf32>
    %268 = vector.shape_cast %267 : vector<1x4x8xf32> to vector<4x8xf32>
    %cst_250 = arith.constant dense<0.000000e+00> : vector<256x8xf32>
    %269 = tpu.matmul %266, %268, %cst_250 {dimension_numbers = #tpu.dot_dimension_numbers<[1], [0], [0], [1], [0, 0, 1, 1], [], []>} : vector<256x4xf32>, vector<4x8xf32>, vector<256x8xf32> -> vector<256x8xf32>
    %270 = arith.addf %264, %269 : vector<256x8xf32>
    %c0_251 = arith.constant 0 : index
    %c0_252 = arith.constant 0 : index
    %271 = vector.load %arg7[%c0_251, %c0_252] : memref<1x8xf32, #tpu.memory_space<vmem>>, vector<1x8xf32>
    %272 = vector.broadcast %271 : vector<1x8xf32> to vector<256x8xf32>
    %273 = arith.addf %270, %272 : vector<256x8xf32>
    %cst_253 = arith.constant 0.000000e+00 : f32
    %274 = vector.broadcast %cst_253 : f32 to vector<256x8xf32>
    %275 = arith.maximumf %273, %274 : vector<256x8xf32>
    %276 = vector.shape_cast %275 : vector<256x8xf32> to vector<16x16x8xf32>
    %c0_254 = arith.constant 0 : index
    %c0_255 = arith.constant 0 : index
    %c0_256 = arith.constant 0 : index
    %c0_257 = arith.constant 0 : index
    %277 = vector.load %arg8[%c0_254, %c0_255, %c0_256, %c0_257] : memref<1x16x16x8xf32, #tpu.memory_space<vmem>>, vector<1x16x16x8xf32>
    %278 = vector.shape_cast %277 : vector<1x16x16x8xf32> to vector<16x16x8xf32>
    %279 = vector.shape_cast %276 : vector<16x16x8xf32> to vector<1x16x16x8xf32>
    tpu.vector_store %arg8[%c0_254, %c0_255, %c0_256, %c0_257], %279 {strides = array<i32>} : memref<1x16x16x8xf32, #tpu.memory_space<vmem>>, vector<1x16x16x8xf32>,
    return
  }
  func.func @transform_0(%arg0: i32) -> (i32, i32, i32, i32) {
    %c0_i32 = arith.constant 0 : i32
    %c0_i32_0 = arith.constant 0 : i32
    %c0_i32_1 = arith.constant 0 : i32
    %c0_i32_2 = arith.constant 0 : i32
    return %arg0, %c0_i32, %c0_i32_0, %c0_i32_1 : i32, i32, i32, i32
  }
  func.func @transform_1(%arg0: i32) -> (i32, i32, i32, i32) {
    %c0_i32 = arith.constant 0 : i32
    %c0_i32_0 = arith.constant 0 : i32
    %c0_i32_1 = arith.constant 0 : i32
    %c0_i32_2 = arith.constant 0 : i32
    return %arg0, %c0_i32, %c0_i32_0, %c0_i32_1 : i32, i32, i32, i32
  }
  func.func @transform_2(%arg0: i32) -> (i32, i32) {
    %c0_i32 = arith.constant 0 : i32
    %c0_i32_0 = arith.constant 0 : i32
    %c0_i32_1 = arith.constant 0 : i32
    return %c0_i32, %c0_i32_0 : i32, i32
  }
  func.func @transform_3(%arg0: i32) -> (i32, i32, i32) {
    %c0_i32 = arith.constant 0 : i32
    %c0_i32_0 = arith.constant 0 : i32
    %c0_i32_1 = arith.constant 0 : i32
    %c0_i32_2 = arith.constant 0 : i32
    return %c0_i32, %c0_i32_0, %c0_i32_1 : i32, i32, i32
  }
  func.func @transform_4(%arg0: i32) -> (i32, i32) {
    %c0_i32 = arith.constant 0 : i32
    %c0_i32_0 = arith.constant 0 : i32
    %c0_i32_1 = arith.constant 0 : i32
    return %c0_i32, %c0_i32_0 : i32, i32
  }
  func.func @transform_5(%arg0: i32) -> (i32, i32, i32) {
    %c0_i32 = arith.constant 0 : i32
    %c0_i32_0 = arith.constant 0 : i32
    %c0_i32_1 = arith.constant 0 : i32
    %c0_i32_2 = arith.constant 0 : i32
    return %c0_i32, %c0_i32_0, %c0_i32_1 : i32, i32, i32
  }
  func.func @transform_6(%arg0: i32) -> (i32, i32) {
    %c0_i32 = arith.constant 0 : i32
    %c0_i32_0 = arith.constant 0 : i32
    %c0_i32_1 = arith.constant 0 : i32
    return %c0_i32, %c0_i32_0 : i32, i32
  }
  func.func @transform_7(%arg0: i32) -> (i32, i32, i32, i32) {
    %c0_i32 = arith.constant 0 : i32
    %c0_i32_0 = arith.constant 0 : i32
    %c0_i32_1 = arith.constant 0 : i32
    %c0_i32_2 = arith.constant 0 : i32
    return %arg0, %c0_i32, %c0_i32_0, %c0_i32_1 : i32, i32, i32, i32
  }
}

</mosaic_0001>

<bundles_post_ra>
// kernel: up_forward.1
= control target key start
LH: loop header
LB: loop body
LE: loop exit
PB: predicated region body
PF: predicated region fallthrough
CT: control target
= control target key end

     0   :  { %s11434_s24 = smov 0   ;;  %s13749_s0 = inlined_call_operand.vmem [shape: f32[2,8,8,8], index: 0, kind: input, shape index: {}]   ;;  %s13750_s1 = inlined_call_operand.vmem [shape: f32[2,16,16,4], index: 1, kind: input, shape index: {}]   ;;  %s13751_s2 = inlined_call_operand.vmem [shape: f32[32,8], index: 2, kind: input, shape index: {}]   ;;  %s13752_s3 = inlined_call_operand.vmem [shape: f32[9,8,4], index: 3, kind: input, shape index: {}]   ;;  %s13753_s4 = inlined_call_operand.vmem [shape: f32[1,4], index: 4, kind: input, shape index: {}]   ;;  %s13754_s5 = inlined_call_operand.vmem [shape: f32[9,4,8], index: 5, kind: input, shape index: {}]   ;;  %s13755_s6 = inlined_call_operand.vmem [shape: f32[1,8], index: 6, kind: input, shape index: {}]   ;;  %s13756_s7 = inlined_call_operand.vmem [shape: f32[2,16,16,8], index: 7, kind: output, shape index: {}]  }
   0x1 LB: > { %s8607_s25 = sadd.s32 4294967295, %s11391_s24   ;;  %p8611_p0 = scmp.ge.s32.totalorder %s11391_s24, 1  ;;  %s11391_s24 = sphi %s11434_s24, %s17_s24  }
   0x2   : > { %p247_p1 = scmp.lt.s32.totalorder %s11391_s24, 3 }
   0x4   : > { %p248_p2 = pnand %p8611_p0, %p247_p1 }
   0x6   : > { %251 = sbr.rel (%p248_p2) target bundleno = 1788 (0x6fc), region = 48 }
   0xd   : > { %p11444_p3 = scmp.lt.s32.totalorder %s8607_s25, 1  ;;  %vm299_vm0 = vcmask 64512   ;;  %v11451_v0 = vld [vmem:[%s13751_s2] sm:$0xff]  ;;  %v11393_v1 = vmov 0.0   ;;  %v373_v4 = vld [vmem:[%s13751_s2 + $0x8] sm:$0xff]  ;;  %v374_v6 = vld [vmem:[%s13751_s2 + $0x10] sm:$0xff] }
   0xe   : > { %9901 = vmatprep.mubr.msk.f32.mxu0 %vm299_vm0, %v11451_v0  ;;  %9909 = vmatprep.mubr.msk.f32.mxu1 %vm299_vm0, %v11451_v0  ;;  %305 = vst.msk [vmem:[#allocation2 + $0x28] sm:$0xff] %vm299_vm0, %v11393_v1  ;;  %300 = vst.msk [vmem:[#allocation2] sm:$0xff] %vm299_vm0, %v11393_v1  ;;  %v375_v9 = vld [vmem:[%s13751_s2 + $0x18] sm:$0xff]  ;;  %vm1363_vm1 = vcmask 31744   ;;  %v8657_v13 = vld [vmem:[%s13752_s3 + $0x8] sm:$0xff]  ;;  %vm5153_vm2 = vcmask 1043456  }
   0xf   : > { %301 = vst.msk [vmem:[#allocation2 + $0x8] sm:$0xff] %vm299_vm0, %v11393_v1  ;;  %302 = vst.msk [vmem:[#allocation2 + $0x10] sm:$0xff] %vm299_vm0, %v11393_v1  ;;  %s14017_s25 = smov (!%p11444_p3, %s8607_s25), 1  ;;  %v1428_v16 = vld [vmem:[%s13752_s3] sm:$0xff]  ;;  %v11821_v17 = vld [vmem:[%s13752_s3 + $0x10] sm:$0xff] }
  0x10   : > { %303 = vst.msk [vmem:[#allocation2 + $0x18] sm:$0xff] %vm299_vm0, %v11393_v1  ;;  %304 = vst.msk [vmem:[#allocation2 + $0x20] sm:$0xff] %vm299_vm0, %v11393_v1  ;;  %s9262_s29 = sshll.u32 %s14017_s25, 6  ;;  %s9263_s22 = sshll.u32 %s14017_s25, 8 }
  0x11   : > { %306 = vst.msk [vmem:[#allocation2 + $0x30] sm:$0xff] %vm299_vm0, %v11393_v1  ;;  %307 = vst.msk [vmem:[#allocation2 + $0x38] sm:$0xff] %vm299_vm0, %v11393_v1  ;;  %s11611_s9 = scalar_lea.vmem %s13749_s0, %s9262_s29  ;;  %s11830_s27 = scalar_lea.vmem %s13750_s1, %s9263_s22 }
  0x12   : > { %308 = vst.msk [vmem:[#allocation2 + $0x40] sm:$0xff] %vm299_vm0, %v11393_v1  ;;  %309 = vst.msk [vmem:[#allocation2 + $0x48] sm:$0xff] %vm299_vm0, %v11393_v1  ;;  %v376_v2 = vld [vmem:[%s11611_s9] sm:$0xff]  ;;  %v8622_v3 = vld [vmem:[%s11611_s9 + $0x8] sm:$0xff]  ;;  %s13649_s21 = scalar_lea.vmem %s13756_s7, %s9263_s22 }
  0x13   : > { %310 = vst.msk [vmem:[#allocation2 + $0x50] sm:$0xff] %vm299_vm0, %v11393_v1  ;;  %311 = vst.msk [vmem:[#allocation2 + $0x58] sm:$0xff] %vm299_vm0, %v11393_v1  ;;  %9899 = vmatprep.subr.mxu0 %v376_v2  ;;  %9907 = vmatprep.subr.mxu1 %v8622_v3  ;;  %v8627_v5 = vld [vmem:[%s11611_s9 + $0x10] sm:$0xff]  ;;  %v8632_v7 = vld [vmem:[%s11611_s9 + $0x18] sm:$0xff] }
  0x14   : > { %312 = vst.msk [vmem:[#allocation2 + $0x60] sm:$0xff] %vm299_vm0, %v11393_v1  ;;  %313 = vst.msk [vmem:[#allocation2 + $0x68] sm:$0xff] %vm299_vm0, %v11393_v1  ;;  %9900 = vmatpush3.msra.mxu0 %v376_v2  ;;  %9908 = vmatpush3.msra.mxu1 %v8622_v3  ;;  %v8637_v8 = vld [vmem:[%s11611_s9 + $0x20] sm:$0xff]  ;;  %v8642_v10 = vld [vmem:[%s11611_s9 + $0x28] sm:$0xff] }
  0x15   : > { %314 = vst.msk [vmem:[#allocation2 + $0x70] sm:$0xff] %vm299_vm0, %v11393_v1  ;;  %315 = vst.msk [vmem:[#allocation2 + $0x78] sm:$0xff] %vm299_vm0, %v11393_v1  ;;  %9902 = vmatmul.mubr.msk.f32.vlgmr.msra.gmra.mrb[0].mxu0 %vm299_vm0, %v373_v4  ;;  %9910 = vmatmul.mubr.msk.f32.vlgmr.msra.gmra.mrb[0].mxu1 %vm299_vm0, %v373_v4  ;;  %v8647_v11 = vld [vmem:[%s11611_s9 + $0x30] sm:$0xff]  ;;  %v8652_v12 = vld [vmem:[%s11611_s9 + $0x38] sm:$0xff] }
  0x16   : > { %316 = vst.msk [vmem:[#allocation2 + $0x80] sm:$0xff] %vm299_vm0, %v11393_v1  ;;  %317 = vst.msk [vmem:[#allocation2 + $0x88] sm:$0xff] %vm299_vm0, %v11393_v1  ;;  %9915 = vmatprep.subr.mxu0 %v8627_v5  ;;  %9904 = vmatprep.mubr.msk.f32.mxu0 %vm299_vm0, %v374_v6  ;;  %v1429_v14 = vld [vmem:[#allocation2 + $0x8] sm:$0xff]  ;;  %v1430_v15 = vld [vmem:[#allocation2 + $0x10] sm:$0xff] }
  0x17   : > { %318 = vst.msk [vmem:[#allocation2 + $0x90] sm:$0xff] %vm299_vm0, %v11393_v1  ;;  %319 = vst.msk [vmem:[#allocation2 + $0x98] sm:$0xff] %vm299_vm0, %v11393_v1  ;;  %9916 = vmatpush3.msra.mxu0 %v8627_v5  ;;  %9912 = vmatprep.mubr.msk.f32.mxu1 %vm299_vm0, %v374_v6  ;;  %v1331_v18 = vld [vmem:[%s11830_s27] sm:$0xff]  ;;  %v1333_v26 = vld [vmem:[%s11830_s27 + $0x10] sm:$0xff] }
  0x18   : > { %320 = vst.msk [vmem:[#allocation2 + $0xa0] sm:$0xff] %vm299_vm0, %v11393_v1  ;;  %321 = vst.msk [vmem:[#allocation2 + $0xa8] sm:$0xff] %vm299_vm0, %v11393_v1  ;;  %9923 = vmatprep.subr.mxu1 %v8632_v7  ;;  %9931 = vmatprep.subr.mxu0 %v8637_v8  ;;  %v1335_v27 = vld [vmem:[%s11830_s27 + $0x20] sm:$0xff]  ;;  %v1332_v39 = vld [vmem:[%s11830_s27 + $0x8] sm:$0xff] }
  0x19   : > { %322 = vst.msk [vmem:[#allocation2 + $0xb0] sm:$0xff] %vm299_vm0, %v11393_v1  ;;  %323 = vst.msk [vmem:[#allocation2 + $0xb8] sm:$0xff] %vm299_vm0, %v11393_v1  ;;  %9905 = vmatmul.mubr.msk.f32.gmra.mrb[2].mxu0 %vm299_vm0, %v375_v9  ;;  %9913 = vmatmul.mubr.msk.f32.gmra.mrb[2].mxu1 %vm299_vm0, %v375_v9  ;;  %v1334_v56 = vld [vmem:[%s11830_s27 + $0x18] sm:$0xff]  ;;  %v1336_v60 = vld [vmem:[%s11830_s27 + $0x28] sm:$0xff] }
  0x1a   : > { %324 = vst.msk [vmem:[#allocation2 + $0xc0] sm:$0xff] %vm299_vm0, %v11393_v1  ;;  %325 = vst.msk [vmem:[#allocation2 + $0xc8] sm:$0xff] %vm299_vm0, %v11393_v1  ;;  %9917 = vmatprep.mubr.msk.f32.mxu0 %vm299_vm0, %v11451_v0  ;;  %9924 = vmatpush3.msra.mxu1 %v8632_v7  ;;  %v1339_v7 = vld [vmem:[%s11830_s27 + $0x40] sm:$0xff] }
  0x1b   : > { %326 = vst.msk [vmem:[#allocation2 + $0xd0] sm:$0xff] %vm299_vm0, %v11393_v1  ;;  %327 = vst.msk [vmem:[#allocation2 + $0xd8] sm:$0xff] %vm299_vm0, %v11393_v1  ;;  %9925 = vmatprep.mubr.msk.f32.mxu1 %vm299_vm0, %v11451_v0  ;;  %9939 = vmatprep.subr.mxu1 %v8642_v10 }
  0x1c   : > { %328 = vst.msk [vmem:[#allocation2 + $0xe0] sm:$0xff] %vm299_vm0, %v11393_v1  ;;  %329 = vst.msk [vmem:[#allocation2 + $0xe8] sm:$0xff] %vm299_vm0, %v11393_v1 }
  0x1d   : > { %330 = vst.msk [vmem:[#allocation2 + $0xf0] sm:$0xff] %vm299_vm0, %v11393_v1  ;;  %331 = vst.msk [vmem:[#allocation2 + $0xf8] sm:$0xff] %vm299_vm0, %v11393_v1  ;;  %9918 = vmatmul.mubr.msk.f32.vlgmr.msra.gmra.mrb[4].mxu0 %vm299_vm0, %v373_v4  ;;  %9926 = vmatmul.mubr.msk.f32.vlgmr.msra.gmra.mrb[4].mxu1 %vm299_vm0, %v373_v4 }
  0x1e   : > { %332 = vst.msk [vmem:[#allocation2 + $0x100] sm:$0xff] %vm299_vm0, %v11393_v1  ;;  %333 = vst.msk [vmem:[#allocation2 + $0x108] sm:$0xff] %vm299_vm0, %v11393_v1  ;;  %9920 = vmatprep.mubr.msk.f32.mxu0 %vm299_vm0, %v374_v6  ;;  %9928 = vmatprep.mubr.msk.f32.mxu1 %vm299_vm0, %v374_v6 }
  0x1f   : > { %334 = vst.msk [vmem:[#allocation2 + $0x110] sm:$0xff] %vm299_vm0, %v11393_v1  ;;  %335 = vst.msk [vmem:[#allocation2 + $0x118] sm:$0xff] %vm299_vm0, %v11393_v1  ;;  %9932 = vmatpush3.msra.mxu0 %v8637_v8  ;;  %9940 = vmatpush3.msra.mxu1 %v8642_v10 }
  0x20   : > { %336 = vst.msk [vmem:[#allocation2 + $0x120] sm:$0xff] %vm299_vm0, %v11393_v1  ;;  %337 = vst.msk [vmem:[#allocation2 + $0x128] sm:$0xff] %vm299_vm0, %v11393_v1  ;;  %9947 = vmatprep.subr.mxu0 %v8647_v11  ;;  %9955 = vmatprep.subr.mxu1 %v8652_v12 }
  0x21   : > { %338 = vst.msk [vmem:[#allocation2 + $0x130] sm:$0xff] %vm299_vm0, %v11393_v1  ;;  %339 = vst.msk [vmem:[#allocation2 + $0x138] sm:$0xff] %vm299_vm0, %v11393_v1  ;;  %9921 = vmatmul.mubr.msk.f32.gmra.mrb[6].mxu0 %vm299_vm0, %v375_v9  ;;  %9929 = vmatmul.mubr.msk.f32.gmra.mrb[6].mxu1 %vm299_vm0, %v375_v9 }
  0x22   : > { %340 = vst.msk [vmem:[#allocation2 + $0x140] sm:$0xff] %vm299_vm0, %v11393_v1  ;;  %341 = vst.msk [vmem:[#allocation2 + $0x148] sm:$0xff] %vm299_vm0, %v11393_v1  ;;  %9933 = vmatprep.mubr.msk.f32.mxu0 %vm299_vm0, %v11451_v0  ;;  %9941 = vmatprep.mubr.msk.f32.mxu1 %vm299_vm0, %v11451_v0 }
  0x23   : > { %342 = vst.msk [vmem:[#allocation2 + $0x150] sm:$0xff] %vm299_vm0, %v11393_v1  ;;  %343 = vst.msk [vmem:[#allocation2 + $0x158] sm:$0xff] %vm299_vm0, %v11393_v1 }
  0x24   : > { %344 = vst.msk [vmem:[#allocation2 + $0x160] sm:$0xff] %vm299_vm0, %v11393_v1  ;;  %345 = vst.msk [vmem:[#allocation2 + $0x168] sm:$0xff] %vm299_vm0, %v11393_v1 }
  0x25   : > { %346 = vst.msk [vmem:[#allocation2 + $0x170] sm:$0xff] %vm299_vm0, %v11393_v1  ;;  %347 = vst.msk [vmem:[#allocation2 + $0x178] sm:$0xff] %vm299_vm0, %v11393_v1  ;;  %9934 = vmatmul.mubr.msk.f32.vlgmr.msra.gmra.mrb[8].mxu0 %vm299_vm0, %v373_v4  ;;  %9942 = vmatmul.mubr.msk.f32.vlgmr.msra.gmra.mrb[8].mxu1 %vm299_vm0, %v373_v4 }
  0x26   : > { %348 = vst.msk [vmem:[#allocation2 + $0x180] sm:$0xff] %vm299_vm0, %v11393_v1  ;;  %349 = vst.msk [vmem:[#allocation2 + $0x188] sm:$0xff] %vm299_vm0, %v11393_v1  ;;  %9936 = vmatprep.mubr.msk.f32.mxu0 %vm299_vm0, %v374_v6  ;;  %9944 = vmatprep.mubr.msk.f32.mxu1 %vm299_vm0, %v374_v6 }
  0x27   : > { %350 = vst.msk [vmem:[#allocation2 + $0x190] sm:$0xff] %vm299_vm0, %v11393_v1  ;;  %351 = vst.msk [vmem:[#allocation2 + $0x198] sm:$0xff] %vm299_vm0, %v11393_v1  ;;  %9948 = vmatpush3.msra.mxu0 %v8647_v11  ;;  %9956 = vmatpush3.msra.mxu1 %v8652_v12  ;;  %v1341_v11 = vld [vmem:[%s11830_s27 + $0x50] sm:$0xff]  ;;  %v1343_v12 = vld [vmem:[%s11830_s27 + $0x60] sm:$0xff] }
  0x28   : > { %352 = vst.msk [vmem:[#allocation2 + $0x1a0] sm:$0xff] %vm299_vm0, %v11393_v1  ;;  %353 = vst.msk [vmem:[#allocation2 + $0x1a8] sm:$0xff] %vm299_vm0, %v11393_v1  ;;  %9963 = vmatprep.subr.mxu0 %v8657_v13 }
  0x29   : > { %354 = vst.msk [vmem:[#allocation2 + $0x1b0] sm:$0xff] %vm299_vm0, %v11393_v1  ;;  %355 = vst.msk [vmem:[#allocation2 + $0x1b8] sm:$0xff] %vm299_vm0, %v11393_v1  ;;  %9937 = vmatmul.mubr.msk.f32.gmra.mrb[10].mxu0 %vm299_vm0, %v375_v9  ;;  %9945 = vmatmul.mubr.msk.f32.gmra.mrb[10].mxu1 %vm299_vm0, %v375_v9 }
  0x2a   : > { %356 = vst.msk [vmem:[#allocation2 + $0x1c0] sm:$0xff] %vm299_vm0, %v11393_v1  ;;  %357 = vst.msk [vmem:[#allocation2 + $0x1c8] sm:$0xff] %vm299_vm0, %v11393_v1  ;;  %9949 = vmatprep.mubr.msk.f32.mxu0 %vm299_vm0, %v11451_v0  ;;  %9957 = vmatprep.mubr.msk.f32.mxu1 %vm299_vm0, %v11451_v0 }
  0x2b   : > { %358 = vst.msk [vmem:[#allocation2 + $0x1d0] sm:$0xff] %vm299_vm0, %v11393_v1  ;;  %359 = vst.msk [vmem:[#allocation2 + $0x1d8] sm:$0xff] %vm299_vm0, %v11393_v1 }
  0x2c   : > { %360 = vst.msk [vmem:[#allocation2 + $0x1e0] sm:$0xff] %vm299_vm0, %v11393_v1  ;;  %361 = vst.msk [vmem:[#allocation2 + $0x1e8] sm:$0xff] %vm299_vm0, %v11393_v1 }
  0x2d   : > { %362 = vst.msk [vmem:[#allocation2 + $0x1f0] sm:$0xff] %vm299_vm0, %v11393_v1  ;;  %363 = vst.msk [vmem:[#allocation2 + $0x1f8] sm:$0xff] %vm299_vm0, %v11393_v1  ;;  %9950 = vmatmul.mubr.msk.f32.vlgmr.msra.gmra.mrb[12].mxu0 %vm299_vm0, %v373_v4  ;;  %9958 = vmatmul.mubr.msk.f32.vlgmr.msra.gmra.mrb[12].mxu1 %vm299_vm0, %v373_v4 }
  0x2e   : > { %364 = vst.msk [vmem:[#allocation2 + $0x200] sm:$0xff] %vm299_vm0, %v11393_v1  ;;  %365 = vst.msk [vmem:[#allocation2 + $0x208] sm:$0xff] %vm299_vm0, %v11393_v1  ;;  %9952 = vmatprep.mubr.msk.f32.mxu0 %vm299_vm0, %v374_v6  ;;  %9960 = vmatprep.mubr.msk.f32.mxu1 %vm299_vm0, %v374_v6  ;;  %v1337_v6 = vld [vmem:[%s11830_s27 + $0x30] sm:$0xff] }
  0x2f   : > { %366 = vst.msk [vmem:[#allocation2 + $0x210] sm:$0xff] %vm299_vm0, %v11393_v1  ;;  %367 = vst.msk [vmem:[#allocation2 + $0x218] sm:$0xff] %vm299_vm0, %v11393_v1  ;;  %9964 = vmatpush3.msra.mxu0 %v8657_v13 }
  0x30   : > { %368 = vst.msk [vmem:[#allocation2 + $0x220] sm:$0xff] %vm299_vm0, %v11393_v1  ;;  %369 = vst.msk [vmem:[#allocation2 + $0x228] sm:$0xff] %vm299_vm0, %v11393_v1  ;;  %10013 = vmatprep.subr.mxu0 %v1428_v16 }
  0x31   : > { %370 = vst.msk [vmem:[#allocation2 + $0x230] sm:$0xff] %vm299_vm0, %v11393_v1  ;;  %371 = vst.msk [vmem:[#allocation2 + $0x238] sm:$0xff] %vm299_vm0, %v11393_v1  ;;  %9953 = vmatmul.mubr.msk.f32.gmra.mrb[14].mxu0 %vm299_vm0, %v375_v9  ;;  %9961 = vmatmul.mubr.msk.f32.gmra.mrb[14].mxu1 %vm299_vm0, %v375_v9 }
  0x32   : > { %4885 = vst.msk [vmem:[#allocation3] sm:$0xff] %vm1363_vm1, %v11393_v1  ;;  %4886 = vst.msk [vmem:[#allocation3 + $0x8] sm:$0xff] %vm1363_vm1, %v11393_v1  ;;  %9965 = vmatprep.mubr.msk.f32.mxu0 %vm299_vm0, %v1429_v14 }
  0x33   : > { %4887 = vst.msk [vmem:[#allocation3 + $0x10] sm:$0xff] %vm1363_vm1, %v11393_v1  ;;  %4888 = vst.msk [vmem:[#allocation3 + $0x18] sm:$0xff] %vm1363_vm1, %v11393_v1 }
  0x34   : > { %4889 = vst.msk [vmem:[#allocation3 + $0x20] sm:$0xff] %vm1363_vm1, %v11393_v1  ;;  %4890 = vst.msk [vmem:[#allocation3 + $0x28] sm:$0xff] %vm1363_vm1, %v11393_v1 }
  0x35   : > { %4891 = vst.msk [vmem:[#allocation3 + $0x30] sm:$0xff] %vm1363_vm1, %v11393_v1  ;;  %4892 = vst.msk [vmem:[#allocation3 + $0x38] sm:$0xff] %vm1363_vm1, %v11393_v1  ;;  %9966 = vmatmul.mubr.msk.f32.vlgmr.msra.gmra.mrb[16].mxu0 %vm299_vm0, %v1430_v15 }
  0x36   : > { %4893 = vst.msk [vmem:[#allocation3 + $0x40] sm:$0xff] %vm1363_vm1, %v11393_v1  ;;  %4894 = vst.msk [vmem:[#allocation3 + $0x48] sm:$0xff] %vm1363_vm1, %v11393_v1  ;;  %10014 = vmatpush3.msra.mxu0 %v1428_v16 }
  0x37   : > { %4895 = vst.msk [vmem:[#allocation3 + $0x50] sm:$0xff] %vm1363_vm1, %v11393_v1  ;;  %4896 = vst.msk [vmem:[#allocation3 + $0x58] sm:$0xff] %vm1363_vm1, %v11393_v1  ;;  %10063 = vmatprep.subr.mxu0 %v11821_v17 }
  0x38   : > { %4897 = vst.msk [vmem:[#allocation3 + $0x60] sm:$0xff] %vm1363_vm1, %v11393_v1  ;;  %4898 = vst.msk [vmem:[#allocation3 + $0x68] sm:$0xff] %vm1363_vm1, %v11393_v1 }
  0x39   : > { %4899 = vst.msk [vmem:[#allocation3 + $0x70] sm:$0xff] %vm1363_vm1, %v11393_v1  ;;  %4900 = vst.msk [vmem:[#allocation3 + $0x78] sm:$0xff] %vm1363_vm1, %v11393_v1 }
  0x3a   : > { %4901 = vst.msk [vmem:[#allocation3 + $0x80] sm:$0xff] %vm1363_vm1, %v11393_v1  ;;  %4902 = vst.msk [vmem:[#allocation3 + $0x88] sm:$0xff] %vm1363_vm1, %v11393_v1 }
  0x3b   : > { %4903 = vst.msk [vmem:[#allocation3 + $0x90] sm:$0xff] %vm1363_vm1, %v11393_v1  ;;  %4904 = vst.msk [vmem:[#allocation3 + $0x98] sm:$0xff] %vm1363_vm1, %v11393_v1 }
  0x3c   : > { %4905 = vst.msk [vmem:[#allocation3 + $0xa0] sm:$0xff] %vm1363_vm1, %v11393_v1  ;;  %4906 = vst.msk [vmem:[#allocation3 + $0xa8] sm:$0xff] %vm1363_vm1, %v11393_v1 }
  0x3d   : > { %4907 = vst.msk [vmem:[#allocation3 + $0xb0] sm:$0xff] %vm1363_vm1, %v11393_v1  ;;  %4908 = vst.msk [vmem:[#allocation3 + $0xb8] sm:$0xff] %vm1363_vm1, %v11393_v1 }
  0x3e   : > { %4909 = vst.msk [vmem:[#allocation3 + $0xc0] sm:$0xff] %vm1363_vm1, %v11393_v1  ;;  %4910 = vst.msk [vmem:[#allocation3 + $0xc8] sm:$0xff] %vm1363_vm1, %v11393_v1 }
  0x3f   : > { %4911 = vst.msk [vmem:[#allocation3 + $0xd0] sm:$0xff] %vm1363_vm1, %v11393_v1  ;;  %4912 = vst.msk [vmem:[#allocation3 + $0xd8] sm:$0xff] %vm1363_vm1, %v11393_v1 }
  0x40   : > { %4913 = vst.msk [vmem:[#allocation3 + $0xe0] sm:$0xff] %vm1363_vm1, %v11393_v1  ;;  %4914 = vst.msk [vmem:[#allocation3 + $0xe8] sm:$0xff] %vm1363_vm1, %v11393_v1 }
  0x41   : > { %4915 = vst.msk [vmem:[#allocation3 + $0xf0] sm:$0xff] %vm1363_vm1, %v11393_v1  ;;  %4916 = vst.msk [vmem:[#allocation3 + $0xf8] sm:$0xff] %vm1363_vm1, %v11393_v1 }
  0x42   : > { %4917 = vst.msk [vmem:[#allocation3 + $0x100] sm:$0xff] %vm1363_vm1, %v11393_v1  ;;  %4918 = vst.msk [vmem:[#allocation3 + $0x108] sm:$0xff] %vm1363_vm1, %v11393_v1 }
  0x43   : > { %4919 = vst.msk [vmem:[#allocation3 + $0x110] sm:$0xff] %vm1363_vm1, %v11393_v1  ;;  %4920 = vst.msk [vmem:[#allocation3 + $0x118] sm:$0xff] %vm1363_vm1, %v11393_v1 }
  0x44   : > { %4921 = vst.msk [vmem:[#allocation3 + $0x120] sm:$0xff] %vm1363_vm1, %v11393_v1  ;;  %4922 = vst.msk [vmem:[#allocation3 + $0x128] sm:$0xff] %vm1363_vm1, %v11393_v1 }
  0x45   : > { %4923 = vst.msk [vmem:[#allocation3 + $0x130] sm:$0xff] %vm1363_vm1, %v11393_v1  ;;  %4924 = vst.msk [vmem:[#allocation3 + $0x138] sm:$0xff] %vm1363_vm1, %v11393_v1 }
  0x46   : > { %4925 = vst.msk [vmem:[#allocation3 + $0x140] sm:$0xff] %vm1363_vm1, %v11393_v1  ;;  %4926 = vst.msk [vmem:[#allocation3 + $0x148] sm:$0xff] %vm1363_vm1, %v11393_v1 }
  0x47   : > { %4927 = vst.msk [vmem:[#allocation3 + $0x150] sm:$0xff] %vm1363_vm1, %v11393_v1  ;;  %4928 = vst.msk [vmem:[#allocation3 + $0x158] sm:$0xff] %vm1363_vm1, %v11393_v1 }
  0x48   : > { %4929 = vst.msk [vmem:[#allocation3 + $0x160] sm:$0xff] %vm1363_vm1, %v11393_v1  ;;  %4930 = vst.msk [vmem:[#allocation3 + $0x168] sm:$0xff] %vm1363_vm1, %v11393_v1 }
  0x49   : > { %4931 = vst.msk [vmem:[#allocation3 + $0x170] sm:$0xff] %vm1363_vm1, %v11393_v1  ;;  %4932 = vst.msk [vmem:[#allocation3 + $0x178] sm:$0xff] %vm1363_vm1, %v11393_v1 }
  0x4a   : > { %4933 = vst.msk [vmem:[#allocation3 + $0x180] sm:$0xff] %vm1363_vm1, %v11393_v1  ;;  %4934 = vst.msk [vmem:[#allocation3 + $0x188] sm:$0xff] %vm1363_vm1, %v11393_v1 }
  0x4b   : > { %4935 = vst.msk [vmem:[#allocation3 + $0x190] sm:$0xff] %vm1363_vm1, %v11393_v1  ;;  %4936 = vst.msk [vmem:[#allocation3 + $0x198] sm:$0xff] %vm1363_vm1, %v11393_v1 }
  0x4c   : > { %4937 = vst.msk [vmem:[#allocation3 + $0x1a0] sm:$0xff] %vm1363_vm1, %v11393_v1  ;;  %4938 = vst.msk [vmem:[#allocation3 + $0x1a8] sm:$0xff] %vm1363_vm1, %v11393_v1 }
  0x4d   : > { %4939 = vst.msk [vmem:[#allocation3 + $0x1b0] sm:$0xff] %vm1363_vm1, %v11393_v1  ;;  %4940 = vst.msk [vmem:[#allocation3 + $0x1b8] sm:$0xff] %vm1363_vm1, %v11393_v1 }
  0x4e   : > { %4941 = vst.msk [vmem:[#allocation3 + $0x1c0] sm:$0xff] %vm1363_vm1, %v11393_v1  ;;  %4942 = vst.msk [vmem:[#allocation3 + $0x1c8] sm:$0xff] %vm1363_vm1, %v11393_v1 }
  0x4f   : > { %4943 = vst.msk [vmem:[#allocation3 + $0x1d0] sm:$0xff] %vm1363_vm1, %v11393_v1  ;;  %4944 = vst.msk [vmem:[#allocation3 + $0x1d8] sm:$0xff] %vm1363_vm1, %v11393_v1 }
  0x50   : > { %4945 = vst.msk [vmem:[#allocation3 + $0x1e0] sm:$0xff] %vm1363_vm1, %v11393_v1  ;;  %4946 = vst.msk [vmem:[#allocation3 + $0x1e8] sm:$0xff] %vm1363_vm1, %v11393_v1 }
  0x51   : > { %4947 = vst.msk [vmem:[#allocation3 + $0x1f0] sm:$0xff] %vm1363_vm1, %v11393_v1  ;;  %4948 = vst.msk [vmem:[#allocation3 + $0x1f8] sm:$0xff] %vm1363_vm1, %v11393_v1 }
  0x52   : > { %4949 = vst.msk [vmem:[#allocation3 + $0x200] sm:$0xff] %vm1363_vm1, %v11393_v1  ;;  %4950 = vst.msk [vmem:[#allocation3 + $0x208] sm:$0xff] %vm1363_vm1, %v11393_v1 }
  0x53   : > { %4951 = vst.msk [vmem:[#allocation3 + $0x210] sm:$0xff] %vm1363_vm1, %v11393_v1  ;;  %4952 = vst.msk [vmem:[#allocation3 + $0x218] sm:$0xff] %vm1363_vm1, %v11393_v1 }
  0x54   : > { %4953 = vst.msk [vmem:[#allocation3 + $0x220] sm:$0xff] %vm1363_vm1, %v11393_v1  ;;  %4954 = vst.msk [vmem:[#allocation3 + $0x228] sm:$0xff] %vm1363_vm1, %v11393_v1 }
  0x55   : > { %4955 = vst.msk [vmem:[#allocation3 + $0x230] sm:$0xff] %vm1363_vm1, %v11393_v1  ;;  %4956 = vst.msk [vmem:[#allocation3 + $0x238] sm:$0xff] %vm1363_vm1, %v11393_v1 }
  0xe8   : > { %v9903_v19 = vpop.f32.mrb[0].mxu0  ;;  %v9911_v20 = vpop.f32.mrb[0].mxu1 }
  0xe9   : > { %1085 = vst.msk [vmem:[#allocation2 + $0x28] sm:$0xff] %vm299_vm0, %v9903_v19  ;;  %v1089_v21 = vmul.f32 0.53333336, %v9903_v19  ;;  %v1106_v22 = vmul.f32 0.06666667, %v9903_v19 }
  0xea   : > { %v1093_v23 = vmul.f32 0.46666667, %v9911_v20  ;;  %1364 = vst.msk [vmem:[#allocation2 + $0x28] sm:$0xff] %vm1363_vm1, %v1331_v18  ;;  %v1110_v24 = vmul.f32 0.93333334, %v9911_v20 }
  0xeb   : > { %v455_v28 = vpop.f32.mrb[1].mxu0  ;;  %v542_v29 = vpop.f32.mrb[1].mxu1  ;;  %v1123_v35 = vmul.f32 0.6, %v9911_v20  ;;  %v1140_v44 = vmul.f32 0.13333334, %v9911_v20 }
  0xec   : > { %v1097_v25 = vadd.f32 %v1093_v23, %v1089_v21  ;;  %v1114_v30 = vadd.f32 %v1110_v24, %v1106_v22  ;;  %1084 = vst.msk [vmem:[#allocation2 + $0x20] sm:$0xff] %vm299_vm0, %v455_v28  ;;  %v1088_v31 = vmul.f32 0.53333336, %v455_v28  ;;  %v1105_v32 = vmul.f32 0.06666667, %v455_v28 }
  0xed   : > { %v1092_v33 = vmul.f32 0.46666667, %v542_v29  ;;  %v1109_v34 = vmul.f32 0.93333334, %v542_v29  ;;  %v9906_v37 = vpop.f32.mrb[2].mxu0  ;;  %v9914_v38 = vpop.f32.mrb[2].mxu1 }
  0xee   : > { %1102 = vst.msk [vmem:[#allocation2 + $0x48] sm:$0xff] %vm299_vm0, %v1097_v25  ;;  %1119 = vst.msk [vmem:[#allocation2 + $0x68] sm:$0xff] %vm299_vm0, %v1114_v30  ;;  %v1091_v41 = vmul.f32 0.53333336, %v9906_v37  ;;  %v1108_v42 = vmul.f32 0.06666667, %v9906_v37 }
  0xef   : > { %1366 = vst.msk [vmem:[#allocation2 + $0x48] sm:$0xff] %vm1363_vm1, %v1333_v26  ;;  %v1096_v36 = vadd.f32 %v1092_v33, %v1088_v31  ;;  %1368 = vst.msk [vmem:[#allocation2 + $0x68] sm:$0xff] %vm1363_vm1, %v1335_v27  ;;  %v1113_v40 = vadd.f32 %v1109_v34, %v1105_v32  ;;  %v1095_v43 = vmul.f32 0.46666667, %v9914_v38  ;;  %v11845_v45 = vmul.f32 0.6, %v542_v29 }
  0xf0   : > { %1087 = vst.msk [vmem:[#allocation2 + $0x38] sm:$0xff] %vm299_vm0, %v9906_v37  ;;  %v1112_v46 = vmul.f32 0.93333334, %v9914_v38  ;;  %v1139_v47 = vmul.f32 0.13333334, %v542_v29 }
  0xf1   : > { %1101 = vst.msk [vmem:[#allocation2 + $0x40] sm:$0xff] %vm299_vm0, %v1096_v36  ;;  %1118 = vst.msk [vmem:[#allocation2 + $0x60] sm:$0xff] %vm299_vm0, %v1113_v40  ;;  %v1099_v48 = vadd.f32 %v1095_v43, %v1091_v41  ;;  %v465_v49 = vpop.f32.mrb[3].mxu0  ;;  %v552_v50 = vpop.f32.mrb[3].mxu1  ;;  %v1431_v51 = vld [vmem:[#allocation2 + $0x28] sm:$0xff] }
  0xf2   : > { %v1116_v52 = vadd.f32 %v1112_v46, %v1108_v42  ;;  %1086 = vst.msk [vmem:[#allocation2 + $0x30] sm:$0xff] %vm299_vm0, %v465_v49  ;;  %v1090_v53 = vmul.f32 0.53333336, %v465_v49  ;;  %v1107_v54 = vmul.f32 0.06666667, %v465_v49  ;;  %9968 = vmatprep.mubr.msk.f32.mxu0 %vm299_vm0, %v1431_v51 }
  0xf3   : > { %v1094_v55 = vmul.f32 0.46666667, %v552_v50  ;;  %1104 = vst.msk [vmem:[#allocation2 + $0x58] sm:$0xff] %vm299_vm0, %v1099_v48  ;;  %v11852_v57 = vmul.f32 0.6, %v9914_v38 }
  0xf4   : > { %v11854_v58 = vmul.f32 0.13333334, %v9914_v38  ;;  %1365 = vst.msk [vmem:[#allocation2 + $0x30] sm:$0xff] %vm1363_vm1, %v1332_v39  ;;  %v1111_v59 = vmul.f32 0.93333334, %v552_v50 }
  0xf5   : > { %1121 = vst.msk [vmem:[#allocation2 + $0x78] sm:$0xff] %vm299_vm0, %v1116_v52  ;;  %v1098_v61 = vadd.f32 %v1094_v55, %v1090_v53  ;;  %v11859_v62 = vmul.f32 0.6, %v552_v50  ;;  %v11861_v63 = vmul.f32 0.13333334, %v552_v50  ;;  %v1338_v53 = vld [vmem:[%s11830_s27 + $0x38] sm:$0xff] }
  0xf6   : > { %v9919_v0 = vpop.f32.mrb[4].mxu0  ;;  %v9927_v1 = vpop.f32.mrb[4].mxu1  ;;  %v1115_v2 = vadd.f32 %v1111_v59, %v1107_v54  ;;  %v1340_v54 = vld [vmem:[%s11830_s27 + $0x48] sm:$0xff]  ;;  %v1342_v59 = vld [vmem:[%s11830_s27 + $0x58] sm:$0xff] }
  0xf7   : > { %v1127_v3 = vmul.f32 0.4, %v9919_v0  ;;  %v1144_v4 = vmul.f32 0.8666667, %v9919_v0  ;;  %v1157_v5 = vmul.f32 0.6666667, %v9919_v0 }
  0xf8   : > { %1103 = vst.msk [vmem:[#allocation2 + $0x50] sm:$0xff] %vm299_vm0, %v1098_v61  ;;  %v1174_v8 = vmul.f32 0.2, %v9919_v0  ;;  %v1161_v9 = vmul.f32 0.33333334, %v9927_v1  ;;  %1120 = vst.msk [vmem:[#allocation2 + $0x70] sm:$0xff] %vm299_vm0, %v1115_v2 }
  0xf9   : > { %v1178_v10 = vmul.f32 0.8, %v9927_v1  ;;  %1367 = vst.msk [vmem:[#allocation2 + $0x50] sm:$0xff] %vm1363_vm1, %v1334_v56  ;;  %v1131_v13 = vadd.f32 %v1127_v3, %v1123_v35  ;;  %v1148_v14 = vadd.f32 %v1144_v4, %v1140_v44  ;;  %v11870_v15 = vmul.f32 0.73333335, %v9927_v1  ;;  %1369 = vst.msk [vmem:[#allocation2 + $0x70] sm:$0xff] %vm1363_vm1, %v1336_v60 }
  0xfa   : > { %v11872_v16 = vmul.f32 0.26666668, %v9927_v1  ;;  %v629_v18 = vpop.f32.mrb[5].mxu0  ;;  %v716_v19 = vpop.f32.mrb[5].mxu1  ;;  %v1165_v20 = vadd.f32 %v1161_v9, %v1157_v5  ;;  %v1344_v2 = vld [vmem:[%s11830_s27 + $0x68] sm:$0xff]  ;;  %v1345_v9 = vld [vmem:[%s11830_s27 + $0x70] sm:$0xff] }
  0xfb   : > { %v1182_v21 = vadd.f32 %v1178_v10, %v1174_v8  ;;  %v1126_v22 = vmul.f32 0.4, %v629_v18  ;;  %v1143_v23 = vmul.f32 0.8666667, %v629_v18  ;;  %v9922_v24 = vpop.f32.mrb[6].mxu0  ;;  %v9930_v25 = vpop.f32.mrb[6].mxu1 }
  0xfc   : > { %1136 = vst.msk [vmem:[#allocation2 + $0x88] sm:$0xff] %vm299_vm0, %v1131_v13  ;;  %1153 = vst.msk [vmem:[#allocation2 + $0xa8] sm:$0xff] %vm299_vm0, %v1148_v14  ;;  %v1156_v26 = vmul.f32 0.6666667, %v629_v18  ;;  %v1173_v27 = vmul.f32 0.2, %v629_v18 }
  0xfd   : > { %v1160_v28 = vmul.f32 0.33333334, %v716_v19  ;;  %1370 = vst.msk [vmem:[#allocation2 + $0x88] sm:$0xff] %vm1363_vm1, %v1337_v6  ;;  %1372 = vst.msk [vmem:[#allocation2 + $0xa8] sm:$0xff] %vm1363_vm1, %v1339_v7  ;;  %v1130_v29 = vadd.f32 %v1126_v22, %v11845_v45  ;;  %v1147_v30 = vadd.f32 %v1143_v23, %v1139_v47  ;;  %v1177_v31 = vmul.f32 0.8, %v716_v19 }
  0xfe   : > { %1170 = vst.msk [vmem:[#allocation2 + $0xc8] sm:$0xff] %vm299_vm0, %v1165_v20  ;;  %1187 = vst.msk [vmem:[#allocation2 + $0xe8] sm:$0xff] %vm299_vm0, %v1182_v21  ;;  %v11882_v32 = vmul.f32 0.73333335, %v716_v19  ;;  %v639_v33 = vpop.f32.mrb[7].mxu0  ;;  %v726_v34 = vpop.f32.mrb[7].mxu1 }
  0xff   : > { %1374 = vst.msk [vmem:[#allocation2 + $0xc8] sm:$0xff] %vm1363_vm1, %v1341_v11  ;;  %1376 = vst.msk [vmem:[#allocation2 + $0xe8] sm:$0xff] %vm1363_vm1, %v1343_v12  ;;  %v1164_v35 = vadd.f32 %v1160_v28, %v1156_v26  ;;  %v11886_v36 = vmul.f32 0.26666668, %v716_v19  ;;  %v1129_v37 = vmul.f32 0.4, %v9922_v24  ;;  %v1181_v39 = vadd.f32 %v1177_v31, %v1173_v27 }
 0x100   : > { %v1146_v38 = vmul.f32 0.8666667, %v9922_v24  ;;  %1135 = vst.msk [vmem:[#allocation2 + $0x80] sm:$0xff] %vm299_vm0, %v1130_v29  ;;  %1152 = vst.msk [vmem:[#allocation2 + $0xa0] sm:$0xff] %vm299_vm0, %v1147_v30  ;;  %v1159_v40 = vmul.f32 0.6666667, %v9922_v24 }
 0x101   : > { %v1176_v41 = vmul.f32 0.2, %v9922_v24  ;;  %v1163_v42 = vmul.f32 0.33333334, %v9930_v25  ;;  %1169 = vst.msk [vmem:[#allocation2 + $0xc0] sm:$0xff] %vm299_vm0, %v1164_v35  ;;  %v1133_v43 = vadd.f32 %v1129_v37, %v11852_v57  ;;  %v11895_v47 = vld [vmem:[#allocation2 + $0x30] sm:$0xff] }
 0x102   : > { %v1150_v44 = vadd.f32 %v1146_v38, %v11854_v58  ;;  %v1180_v45 = vmul.f32 0.8, %v9930_v25  ;;  %v11893_v46 = vmul.f32 0.73333335, %v9930_v25  ;;  %v9935_v48 = vpop.f32.mrb[8].mxu0  ;;  %9969 = vmatmul.mubr.msk.f32.gmra.mrb[18].mxu0 %vm299_vm0, %v11895_v47  ;;  %v11911_v4 = vld [vmem:[#allocation2 + $0x48] sm:$0xff] }
 0x103   : > { %1186 = vst.msk [vmem:[#allocation2 + $0xe0] sm:$0xff] %vm299_vm0, %v1181_v39  ;;  %v1167_v49 = vadd.f32 %v1163_v42, %v1159_v40  ;;  %v11898_v50 = vmul.f32 0.26666668, %v9930_v25  ;;  %v1128_v51 = vmul.f32 0.4, %v639_v33  ;;  %1138 = vst.msk [vmem:[#allocation2 + $0x98] sm:$0xff] %vm299_vm0, %v1133_v43  ;;  %9971 = vmatprep.mubr.msk.f32.mxu0 %vm299_vm0, %v11911_v4 }
 0x104   : > { %v1145_v52 = vmul.f32 0.8666667, %v639_v33  ;;  %1155 = vst.msk [vmem:[#allocation2 + $0xb8] sm:$0xff] %vm299_vm0, %v1150_v44  ;;  %v1184_v55 = vadd.f32 %v1180_v45, %v1176_v41  ;;  %v1158_v56 = vmul.f32 0.6666667, %v639_v33  ;;  %v1347_v10 = vld [vmem:[%s11830_s27 + $0x80] sm:$0xff] }
 0x105   : > { %v1175_v57 = vmul.f32 0.2, %v639_v33  ;;  %v1162_v58 = vmul.f32 0.33333334, %v726_v34  ;;  %1172 = vst.msk [vmem:[#allocation2 + $0xd8] sm:$0xff] %vm299_vm0, %v1167_v49  ;;  %v1132_v60 = vadd.f32 %v1128_v51, %v11859_v62  ;;  %v11925_v20 = vld [vmem:[#allocation2 + $0x50] sm:$0xff] }
 0x106   : > { %v1149_v61 = vadd.f32 %v1145_v52, %v11861_v63  ;;  %v1179_v0 = vmul.f32 0.8, %v726_v34  ;;  %v1192_v1 = vmul.f32 0.73333335, %v726_v34  ;;  %v803_v3 = vpop.f32.mrb[9].mxu0  ;;  %9972 = vmatmul.mubr.msk.f32.gmra.mrb[20].mxu0 %vm299_vm0, %v11925_v20  ;;  %v11936_v28 = vld [vmem:[#allocation2 + $0x68] sm:$0xff] }
 0x107   : > { %1189 = vst.msk [vmem:[#allocation2 + $0xf8] sm:$0xff] %vm299_vm0, %v1184_v55  ;;  %v1166_v5 = vadd.f32 %v1162_v58, %v1158_v56  ;;  %v1209_v6 = vmul.f32 0.26666668, %v726_v34  ;;  %v1195_v7 = vmul.f32 0.26666668, %v9935_v48  ;;  %1137 = vst.msk [vmem:[#allocation2 + $0x90] sm:$0xff] %vm299_vm0, %v1132_v60  ;;  %9974 = vmatprep.mubr.msk.f32.mxu0 %vm299_vm0, %v11936_v28 }
 0x108   : > { %v1212_v8 = vmul.f32 0.73333335, %v9935_v48  ;;  %1154 = vst.msk [vmem:[#allocation2 + $0xb0] sm:$0xff] %vm299_vm0, %v1149_v61  ;;  %v1183_v62 = vadd.f32 %v1179_v0, %v1175_v57  ;;  %v1225_v63 = vmul.f32 0.8, %v9935_v48  ;;  %v1346_v33 = vld [vmem:[%s11830_s27 + $0x78] sm:$0xff] }
 0x109   : > { %v1242_v11 = vmul.f32 0.33333334, %v9935_v48  ;;  %v1194_v12 = vmul.f32 0.26666668, %v803_v3  ;;  %1371 = vst.msk [vmem:[#allocation2 + $0x90] sm:$0xff] %vm1363_vm1, %v1338_v53  ;;  %1373 = vst.msk [vmem:[#allocation2 + $0xb0] sm:$0xff] %vm1363_vm1, %v1340_v54  ;;  %v1199_v13 = vadd.f32 %v1195_v7, %v11870_v15 }
 0x10a   : > { %1171 = vst.msk [vmem:[#allocation2 + $0xd0] sm:$0xff] %vm299_vm0, %v1166_v5  ;;  %v1216_v14 = vadd.f32 %v1212_v8, %v11872_v16  ;;  %v1211_v18 = vmul.f32 0.73333335, %v803_v3  ;;  %v1224_v19 = vmul.f32 0.8, %v803_v3  ;;  %1188 = vst.msk [vmem:[#allocation2 + $0xf0] sm:$0xff] %vm299_vm0, %v1183_v62 }
 0x10b   : > { %v9938_v21 = vpop.f32.mrb[10].mxu0  ;;  %1375 = vst.msk [vmem:[#allocation2 + $0xd0] sm:$0xff] %vm1363_vm1, %v1342_v59  ;;  %v1198_v22 = vadd.f32 %v1194_v12, %v11882_v32  ;;  %v1241_v23 = vmul.f32 0.33333334, %v803_v3  ;;  %1377 = vst.msk [vmem:[#allocation2 + $0xf0] sm:$0xff] %vm1363_vm1, %v1344_v2  ;;  %v1348_v34 = vld [vmem:[%s11830_s27 + $0x88] sm:$0xff] }
 0x10c   : > { %v1197_v24 = vmul.f32 0.26666668, %v9938_v21  ;;  %v1214_v25 = vmul.f32 0.73333335, %v9938_v21  ;;  %1204 = vst.msk [vmem:[#allocation2 + $0x108] sm:$0xff] %vm299_vm0, %v1199_v13  ;;  %1221 = vst.msk [vmem:[#allocation2 + $0x128] sm:$0xff] %vm299_vm0, %v1216_v14  ;;  %v1215_v15 = vadd.f32 %v1211_v18, %v11886_v36 }
 0x10d   : > { %v1227_v16 = vmul.f32 0.8, %v9938_v21  ;;  %v1244_v26 = vmul.f32 0.33333334, %v9938_v21  ;;  %v813_v27 = vpop.f32.mrb[11].mxu0  ;;  %v11947_v35 = vld [vmem:[#allocation2 + $0x70] sm:$0xff] }
 0x10e   : > { %1378 = vst.msk [vmem:[#allocation2 + $0x108] sm:$0xff] %vm1363_vm1, %v1345_v9  ;;  %1380 = vst.msk [vmem:[#allocation2 + $0x128] sm:$0xff] %vm1363_vm1, %v1347_v10  ;;  %v1201_v29 = vadd.f32 %v1197_v24, %v11893_v46  ;;  %v1218_v30 = vadd.f32 %v1214_v25, %v11898_v50  ;;  %v1196_v31 = vmul.f32 0.26666668, %v813_v27  ;;  %v1213_v32 = vmul.f32 0.73333335, %v813_v27  ;;  %9975 = vmatmul.mubr.msk.f32.gmra.mrb[22].mxu0 %vm299_vm0, %v11947_v35 }
 0x10f   : > { %1203 = vst.msk [vmem:[#allocation2 + $0x100] sm:$0xff] %vm299_vm0, %v1198_v22  ;;  %v9943_v36 = vpop.f32.mrb[8].mxu1  ;;  %1220 = vst.msk [vmem:[#allocation2 + $0x120] sm:$0xff] %vm299_vm0, %v1215_v15  ;;  %v1226_v37 = vmul.f32 0.8, %v813_v27  ;;  %v1349_v40 = vld [vmem:[%s11830_s27 + $0x90] sm:$0xff] }
 0x110   : > { %v1243_v38 = vmul.f32 0.33333334, %v813_v27  ;;  %v1229_v39 = vmul.f32 0.2, %v9943_v36  ;;  %1206 = vst.msk [vmem:[#allocation2 + $0x118] sm:$0xff] %vm299_vm0, %v1201_v29  ;;  %1223 = vst.msk [vmem:[#allocation2 + $0x138] sm:$0xff] %vm299_vm0, %v1218_v30  ;;  %v1200_v41 = vadd.f32 %v1196_v31, %v1192_v1  ;;  %v1217_v42 = vadd.f32 %v1213_v32, %v1209_v6 }
 0x111   : > { %v1246_v43 = vmul.f32 0.6666667, %v9943_v36  ;;  %v1259_v44 = vmul.f32 0.8666667, %v9943_v36  ;;  %v1351_v45 = vld [vmem:[%s11830_s27 + $0xa0] sm:$0xff]  ;;  %v890_v46 = vpop.f32.mrb[9].mxu1 }
 0x112   : > { %v11956_v48 = vld [vmem:[#allocation2 + $0x88] sm:$0xff]  ;;  %v1233_v49 = vadd.f32 %v1229_v39, %v1225_v63  ;;  %v1276_v50 = vmul.f32 0.4, %v9943_v36  ;;  %v1228_v51 = vmul.f32 0.2, %v890_v46  ;;  %1205 = vst.msk [vmem:[#allocation2 + $0x110] sm:$0xff] %vm299_vm0, %v1200_v41 }
 0x113   : > { %v1245_v52 = vmul.f32 0.6666667, %v890_v46  ;;  %9977 = vmatprep.mubr.msk.f32.mxu0 %vm299_vm0, %v11956_v48  ;;  %1222 = vst.msk [vmem:[#allocation2 + $0x130] sm:$0xff] %vm299_vm0, %v1217_v42  ;;  %v1250_v53 = vadd.f32 %v1246_v43, %v1242_v11  ;;  %v1258_v54 = vmul.f32 0.8666667, %v890_v46  ;;  %v11962_v57 = vld [vmem:[#allocation2 + $0x90] sm:$0xff] }
 0x114   : > { %v1275_v55 = vmul.f32 0.4, %v890_v46  ;;  %v9946_v56 = vpop.f32.mrb[10].mxu1  ;;  %1379 = vst.msk [vmem:[#allocation2 + $0x110] sm:$0xff] %vm1363_vm1, %v1346_v33  ;;  %1381 = vst.msk [vmem:[#allocation2 + $0x130] sm:$0xff] %vm1363_vm1, %v1348_v34  ;;  %v1232_v58 = vadd.f32 %v1228_v51, %v1224_v19  ;;  %v11967_v1 = vld [vmem:[#allocation2 + $0xa8] sm:$0xff]  ;;  %9978 = vmatmul.mubr.msk.f32.gmra.mrb[24].mxu0 %vm299_vm0, %v11962_v57 }
 0x115   : > { %1238 = vst.msk [vmem:[#allocation2 + $0x148] sm:$0xff] %vm299_vm0, %v1233_v49  ;;  %v1249_v59 = vadd.f32 %v1245_v52, %v1241_v23  ;;  %v1231_v60 = vmul.f32 0.2, %v9946_v56  ;;  %v1248_v61 = vmul.f32 0.6666667, %v9946_v56  ;;  %1255 = vst.msk [vmem:[#allocation2 + $0x168] sm:$0xff] %vm299_vm0, %v1250_v53  ;;  %9980 = vmatprep.mubr.msk.f32.mxu0 %vm299_vm0, %v11967_v1 }
 0x116   : > { %v900_v0 = vpop.f32.mrb[11].mxu1  ;;  %1382 = vst.msk [vmem:[#allocation2 + $0x148] sm:$0xff] %vm1363_vm1, %v1349_v40  ;;  %v1261_v2 = vmul.f32 0.8666667, %v9946_v56  ;;  %v1350_v6 = vld [vmem:[%s11830_s27 + $0x98] sm:$0xff]  ;;  %1384 = vst.msk [vmem:[#allocation2 + $0x168] sm:$0xff] %vm1363_vm1, %v1351_v45 }
 0x117   : > { %v1278_v3 = vmul.f32 0.4, %v9946_v56  ;;  %v1230_v5 = vmul.f32 0.2, %v900_v0  ;;  %1237 = vst.msk [vmem:[#allocation2 + $0x140] sm:$0xff] %vm299_vm0, %v1232_v58  ;;  %1254 = vst.msk [vmem:[#allocation2 + $0x160] sm:$0xff] %vm299_vm0, %v1249_v59  ;;  %v1235_v7 = vadd.f32 %v1231_v60, %v1227_v16  ;;  %v1252_v8 = vadd.f32 %v1248_v61, %v1244_v26 }
 0x118   : > { %v1247_v9 = vmul.f32 0.6666667, %v900_v0  ;;  %v1260_v10 = vmul.f32 0.8666667, %v900_v0  ;;  %v1352_v62 = vld [vmem:[%s11830_s27 + $0xa8] sm:$0xff]  ;;  %v11980_v63 = vld [vmem:[#allocation2 + $0xb0] sm:$0xff] }
 0x119   : > { %v9951_v11 = vpop.f32.mrb[12].mxu0  ;;  %v1234_v12 = vadd.f32 %v1230_v5, %v1226_v37  ;;  %v1277_v13 = vmul.f32 0.4, %v900_v0  ;;  %v1353_v19 = vld [vmem:[%s11830_s27 + $0xb0] sm:$0xff]  ;;  %v1355_v21 = vld [vmem:[%s11830_s27 + $0xc0] sm:$0xff]  ;;  %1240 = vst.msk [vmem:[#allocation2 + $0x158] sm:$0xff] %vm299_vm0, %v1235_v7  ;;  %9981 = vmatmul.mubr.msk.f32.gmra.mrb[26].mxu0 %vm299_vm0, %v11980_v63 }
 0x11a   : > { %v1263_v14 = vmul.f32 0.13333334, %v9951_v11  ;;  %v1280_v18 = vmul.f32 0.6, %v9951_v11  ;;  %1257 = vst.msk [vmem:[#allocation2 + $0x178] sm:$0xff] %vm299_vm0, %v1252_v8  ;;  %v1251_v22 = vadd.f32 %v1247_v9, %v1243_v38  ;;  %v11990_v15 = vld [vmem:[#allocation2 + $0xc8] sm:$0xff] }
 0x11b   : > { %v11986_v23 = vmul.f32 0.93333334, %v9951_v11  ;;  %v11988_v24 = vmul.f32 0.46666667, %v9951_v11  ;;  %v977_v25 = vpop.f32.mrb[13].mxu0  ;;  %v11995_v31 = vld [vmem:[#allocation2 + $0xd0] sm:$0xff]  ;;  %9983 = vmatprep.mubr.msk.f32.mxu0 %vm299_vm0, %v11990_v15 }
 0x11c   : > { %1239 = vst.msk [vmem:[#allocation2 + $0x150] sm:$0xff] %vm299_vm0, %v1234_v12  ;;  %v1267_v16 = vadd.f32 %v1263_v14, %v1259_v44  ;;  %v1284_v26 = vadd.f32 %v1280_v18, %v1276_v50  ;;  %v1262_v27 = vmul.f32 0.13333334, %v977_v25  ;;  %v1279_v29 = vmul.f32 0.6, %v977_v25  ;;  %1256 = vst.msk [vmem:[#allocation2 + $0x170] sm:$0xff] %vm299_vm0, %v1251_v22 }
 0x11d   : > { %v9954_v30 = vpop.f32.mrb[14].mxu0  ;;  %1383 = vst.msk [vmem:[#allocation2 + $0x150] sm:$0xff] %vm1363_vm1, %v1350_v6  ;;  %v1292_v32 = vmul.f32 0.93333334, %v977_v25  ;;  %v1361_v36 = vld [vmem:[%s11830_s27 + $0xf0] sm:$0xff]  ;;  %1385 = vst.msk [vmem:[#allocation2 + $0x170] sm:$0xff] %vm1363_vm1, %v1352_v62  ;;  %9984 = vmatmul.mubr.msk.f32.gmra.mrb[28].mxu0 %vm299_vm0, %v11995_v31 }
 0x11e   : > { %v1309_v33 = vmul.f32 0.46666667, %v977_v25  ;;  %v1265_v34 = vmul.f32 0.13333334, %v9954_v30  ;;  %1272 = vst.msk [vmem:[#allocation2 + $0x188] sm:$0xff] %vm299_vm0, %v1267_v16  ;;  %1289 = vst.msk [vmem:[#allocation2 + $0x1a8] sm:$0xff] %vm299_vm0, %v1284_v26  ;;  %v1266_v37 = vadd.f32 %v1262_v27, %v1258_v54  ;;  %v1283_v38 = vadd.f32 %v1279_v29, %v1275_v55 }
 0x11f   : > { %v1282_v39 = vmul.f32 0.6, %v9954_v30  ;;  %v1295_v40 = vmul.f32 0.93333334, %v9954_v30  ;;  %v987_v41 = vpop.f32.mrb[15].mxu0  ;;  %v12005_v42 = vld [vmem:[#allocation2 + $0xe8] sm:$0xff] }
 0x120   : > { %1386 = vst.msk [vmem:[#allocation2 + $0x188] sm:$0xff] %vm1363_vm1, %v1353_v19  ;;  %1388 = vst.msk [vmem:[#allocation2 + $0x1a8] sm:$0xff] %vm1363_vm1, %v1355_v21  ;;  %v1269_v43 = vadd.f32 %v1265_v34, %v1261_v2  ;;  %v1312_v44 = vmul.f32 0.46666667, %v9954_v30  ;;  %v1264_v45 = vmul.f32 0.13333334, %v987_v41  ;;  %9986 = vmatprep.mubr.msk.f32.mxu0 %vm299_vm0, %v12005_v42 }
 0x121   : > { %v1281_v46 = vmul.f32 0.6, %v987_v41  ;;  %v1354_v49 = vld [vmem:[%s11830_s27 + $0xb8] sm:$0xff]  ;;  %v1356_v50 = vld [vmem:[%s11830_s27 + $0xc8] sm:$0xff]  ;;  %1271 = vst.msk [vmem:[#allocation2 + $0x180] sm:$0xff] %vm299_vm0, %v1266_v37  ;;  %1288 = vst.msk [vmem:[#allocation2 + $0x1a0] sm:$0xff] %vm299_vm0, %v1283_v38  ;;  %v1286_v51 = vadd.f32 %v1282_v39, %v1278_v3 }
 0x122   : > { %v1294_v52 = vmul.f32 0.93333334, %v987_v41  ;;  %v1311_v53 = vmul.f32 0.46666667, %v987_v41  ;;  %v9959_v54 = vpop.f32.mrb[12].mxu1  ;;  %v1362_v55 = vld [vmem:[%s11830_s27 + $0xf8] sm:$0xff]  ;;  %v1268_v56 = vadd.f32 %v1264_v45, %v1260_v10 }
 0x123   : > { %1274 = vst.msk [vmem:[#allocation2 + $0x198] sm:$0xff] %vm299_vm0, %v1269_v43  ;;  %v1285_v58 = vadd.f32 %v1281_v46, %v1277_v13  ;;  %v12019_v59 = vld [vmem:[#allocation2 + $0xf0] sm:$0xff]  ;;  %v1297_v60 = vmul.f32 0.06666667, %v9959_v54  ;;  %v1314_v61 = vmul.f32 0.53333336, %v9959_v54 }
 0x124   : > { %1328 = vst.msk [vmem:[#allocation2 + $0x208] sm:$0xff] %vm299_vm0, %v9959_v54  ;;  %v1357_v0 = vld [vmem:[%s11830_s27 + $0xd0] sm:$0xff]  ;;  %v1064_v2 = vpop.f32.mrb[13].mxu1  ;;  %1291 = vst.msk [vmem:[#allocation2 + $0x1b8] sm:$0xff] %vm299_vm0, %v1286_v51  ;;  %v12026_v6 = vld [vmem:[#allocation2 + $0x108] sm:$0xff]  ;;  %9987 = vmatmul.mubr.msk.f32.gmra.mrb[30].mxu0 %vm299_vm0, %v12019_v59 }
 0x125   : > { %1394 = vst.msk [vmem:[#allocation2 + $0x208] sm:$0xff] %vm1363_vm1, %v1361_v36  ;;  %v1296_v3 = vmul.f32 0.06666667, %v1064_v2  ;;  %v1313_v5 = vmul.f32 0.53333336, %v1064_v2  ;;  %v1301_v8 = vadd.f32 %v1297_v60, %v11986_v23  ;;  %v1318_v9 = vadd.f32 %v1314_v61, %v11988_v24  ;;  %v1359_v10 = vld [vmem:[%s11830_s27 + $0xe0] sm:$0xff]  ;;  %9989 = vmatprep.mubr.msk.f32.mxu0 %vm299_vm0, %v12026_v6 }
 0x126   : > { %1327 = vst.msk [vmem:[#allocation2 + $0x200] sm:$0xff] %vm299_vm0, %v1064_v2  ;;  %v9962_v7 = vpop.f32.mrb[14].mxu1  ;;  %1273 = vst.msk [vmem:[#allocation2 + $0x190] sm:$0xff] %vm299_vm0, %v1268_v56  ;;  %v12043_v23 = vld [vmem:[#allocation2 + $0x110] sm:$0xff]  ;;  %v1358_v16 = vld [vmem:[%s11830_s27 + $0xd8] sm:$0xff] }
 0x127   : > { %1290 = vst.msk [vmem:[#allocation2 + $0x1b0] sm:$0xff] %vm299_vm0, %v1285_v58  ;;  %v1299_v62 = vmul.f32 0.06666667, %v9962_v7  ;;  %v1316_v11 = vmul.f32 0.53333336, %v9962_v7  ;;  %1330 = vst.msk [vmem:[#allocation2 + $0x218] sm:$0xff] %vm299_vm0, %v9962_v7  ;;  %v1300_v13 = vadd.f32 %v1296_v3, %v1292_v32  ;;  %v1317_v14 = vadd.f32 %v1313_v5, %v1309_v33 }
 0x128   : > { %v1074_v12 = vpop.f32.mrb[15].mxu1  ;;  %1387 = vst.msk [vmem:[#allocation2 + $0x190] sm:$0xff] %vm1363_vm1, %v1354_v49  ;;  %1389 = vst.msk [vmem:[#allocation2 + $0x1b0] sm:$0xff] %vm1363_vm1, %v1356_v50  ;;  %v1360_v26 = vld [vmem:[%s11830_s27 + $0xe8] sm:$0xff]  ;;  %9990 = vmatmul.mubr.msk.f32.gmra.mrb[32].mxu0 %vm299_vm0, %v12043_v23  ;;  %v12064_v29 = vld [vmem:[#allocation2 + $0x130] sm:$0xff] }
 0x129   : > { %v1298_v18 = vmul.f32 0.06666667, %v1074_v12  ;;  %v1315_v19 = vmul.f32 0.53333336, %v1074_v12  ;;  %1329 = vst.msk [vmem:[#allocation2 + $0x210] sm:$0xff] %vm299_vm0, %v1074_v12  ;;  %1306 = vst.msk [vmem:[#allocation2 + $0x1c8] sm:$0xff] %vm299_vm0, %v1301_v8  ;;  %v1303_v21 = vadd.f32 %v1299_v62, %v1295_v40  ;;  %v1320_v22 = vadd.f32 %v1316_v11, %v1312_v44 }
 0x12a   : > { %1323 = vst.msk [vmem:[#allocation2 + $0x1e8] sm:$0xff] %vm299_vm0, %v1318_v9  ;;  %1305 = vst.msk [vmem:[#allocation2 + $0x1c0] sm:$0xff] %vm299_vm0, %v1300_v13  ;;  %v12052_v27 = vld [vmem:[#allocation2 + $0x128] sm:$0xff]  ;;  %v12072_v32 = vld [vmem:[#allocation2 + $0x150] sm:$0xff] }
 0x12b   : > { %1395 = vst.msk [vmem:[#allocation2 + $0x210] sm:$0xff] %vm1363_vm1, %v1362_v55  ;;  %1390 = vst.msk [vmem:[#allocation2 + $0x1c8] sm:$0xff] %vm1363_vm1, %v1357_v0  ;;  %v1302_v24 = vadd.f32 %v1298_v18, %v1294_v52  ;;  %v1319_v25 = vadd.f32 %v1315_v19, %v1311_v53  ;;  %9992 = vmatprep.mubr.msk.f32.mxu0 %vm299_vm0, %v12052_v27  ;;  %v12066_v30 = vld [vmem:[#allocation2 + $0x148] sm:$0xff]  ;;  %v12080_v34 = vld [vmem:[#allocation2 + $0x170] sm:$0xff] }
 0x12c   : > { %1392 = vst.msk [vmem:[#allocation2 + $0x1e8] sm:$0xff] %vm1363_vm1, %v1359_v10  ;;  %9993 = vmatmul.mubr.msk.f32.gmra.mrb[34].mxu0 %vm299_vm0, %v12064_v29  ;;  %v12074_v33 = vld [vmem:[#allocation2 + $0x168] sm:$0xff]  ;;  %v12120_v49 = vld [vmem:[%s13752_s3 + $0x18] sm:$0xff] }
 0x12d   : > { %1322 = vst.msk [vmem:[#allocation2 + $0x1e0] sm:$0xff] %vm299_vm0, %v1317_v14  ;;  %1308 = vst.msk [vmem:[#allocation2 + $0x1d8] sm:$0xff] %vm299_vm0, %v1303_v21  ;;  %9995 = vmatprep.mubr.msk.f32.mxu0 %vm299_vm0, %v12066_v30  ;;  %v12082_v36 = vld [vmem:[#allocation2 + $0x188] sm:$0xff] }
 0x12e   : > { %1325 = vst.msk [vmem:[#allocation2 + $0x1f8] sm:$0xff] %vm299_vm0, %v1320_v22  ;;  %1307 = vst.msk [vmem:[#allocation2 + $0x1d0] sm:$0xff] %vm299_vm0, %v1302_v24  ;;  %v12090_v38 = vld [vmem:[#allocation2 + $0x1a8] sm:$0xff] }
 0x12f   : > { %1324 = vst.msk [vmem:[#allocation2 + $0x1f0] sm:$0xff] %vm299_vm0, %v1319_v25  ;;  %v12088_v37 = vld [vmem:[#allocation2 + $0x190] sm:$0xff]  ;;  %v1396_v45 = vld [vmem:[#allocation2 + $0x7] sm:$0xff] }
 0x130   : > { %1391 = vst.msk [vmem:[#allocation2 + $0x1d0] sm:$0xff] %vm1363_vm1, %v1358_v16  ;;  %1393 = vst.msk [vmem:[#allocation2 + $0x1f0] sm:$0xff] %vm1363_vm1, %v1360_v26  ;;  %9996 = vmatmul.mubr.msk.f32.gmra.mrb[36].mxu0 %vm299_vm0, %v12072_v32  ;;  %v12096_v39 = vld [vmem:[#allocation2 + $0x1b0] sm:$0xff]  ;;  %v12123_v50 = vld [vmem:[#allocation2 + $0x27] sm:$0xff] }
 0x131   : > { %9998 = vmatprep.mubr.msk.f32.mxu0 %vm299_vm0, %v12074_v33  ;;  %v1397_v46 = vld [vmem:[#allocation2 + $0xf] sm:$0xff]  ;;  %v12133_v52 = vld [vmem:[#allocation2 + $0x47] sm:$0xff] }
 0x132   : > { %v12098_v40 = vld [vmem:[#allocation2 + $0x1c8] sm:$0xff]  ;;  %v2106_v26 = vld [vmem:[#allocation2 + $0x11] sm:$0xff] }
 0x133   : > { %v12106_v43 = vld [vmem:[#allocation2 + $0x1e8] sm:$0xff] }
 0x134   : > { %9999 = vmatmul.mubr.msk.f32.gmra.mrb[38].mxu0 %vm299_vm0, %v12080_v34  ;;  %13867 = vst [vmem:[#allocation4_spill] sm:$0xff] %v12106_v43  ;;  %v12128_v51 = vld [vmem:[#allocation2 + $0x2f] sm:$0xff]  ;;  %v12141_v54 = vld [vmem:[#allocation2 + $0x67] sm:$0xff] }
 0x135   : > { %10001 = vmatprep.mubr.msk.f32.mxu0 %vm299_vm0, %v12082_v36  ;;  %v12137_v53 = vld [vmem:[#allocation2 + $0x4f] sm:$0xff]  ;;  %v12149_v55 = vld [vmem:[#allocation2 + $0x87] sm:$0xff] }
 0x136   : > { %v12153_v56 = vld [vmem:[#allocation2 + $0x8f] sm:$0xff]  ;;  %v12157_v58 = vld [vmem:[#allocation2 + $0xa7] sm:$0xff] }
 0x137   : > { %v12104_v41 = vld [vmem:[#allocation2 + $0x1d0] sm:$0xff]  ;;  %v12165_v61 = vld [vmem:[#allocation2 + $0xc7] sm:$0xff] }
 0x138   : > { %10002 = vmatmul.mubr.msk.f32.gmra.mrb[40].mxu0 %vm299_vm0, %v12088_v37  ;;  %v12112_v44 = vld [vmem:[#allocation2 + $0x1f0] sm:$0xff]  ;;  %v12173_v2 = vld [vmem:[#allocation2 + $0xe7] sm:$0xff] }
 0x139   : > { %10004 = vmatprep.mubr.msk.f32.mxu0 %vm299_vm0, %v12090_v38  ;;  %13868 = vst [vmem:[#allocation5_spill] sm:$0xff] %v12112_v44  ;;  %v12161_v60 = vld [vmem:[#allocation2 + $0xaf] sm:$0xff]  ;;  %v12181_v5 = vld [vmem:[#allocation2 + $0x107] sm:$0xff] }
 0x13a   : > { %v12169_v0 = vld [vmem:[#allocation2 + $0xcf] sm:$0xff]  ;;  %v12189_v8 = vld [vmem:[#allocation2 + $0x127] sm:$0xff] }
 0x13b   : > { %v12177_v3 = vld [vmem:[#allocation2 + $0xef] sm:$0xff]  ;;  %v12197_v10 = vld [vmem:[#allocation2 + $0x147] sm:$0xff] }
 0x13c   : > { %10005 = vmatmul.mubr.msk.f32.gmra.mrb[42].mxu0 %vm299_vm0, %v12096_v39  ;;  %v12185_v7 = vld [vmem:[#allocation2 + $0x10f] sm:$0xff]  ;;  %v12205_v11 = vld [vmem:[#allocation2 + $0x167] sm:$0xff] }
 0x13d   : > { %10007 = vmatprep.mubr.msk.f32.mxu0 %vm299_vm0, %v12098_v40  ;;  %v12193_v9 = vld [vmem:[#allocation2 + $0x12f] sm:$0xff]  ;;  %v12213_v13 = vld [vmem:[#allocation2 + $0x187] sm:$0xff] }
 0x13e   : > { %v12201_v62 = vld [vmem:[#allocation2 + $0x14f] sm:$0xff]  ;;  %v12221_v18 = vld [vmem:[#allocation2 + $0x1a7] sm:$0xff] }
 0x13f   : > { %v12209_v12 = vld [vmem:[#allocation2 + $0x16f] sm:$0xff]  ;;  %v12229_v21 = vld [vmem:[#allocation2 + $0x1c7] sm:$0xff] }
 0x140   : > { %10008 = vmatmul.mubr.msk.f32.gmra.mrb[44].mxu0 %vm299_vm0, %v12104_v41  ;;  %v12217_v14 = vld [vmem:[#allocation2 + $0x18f] sm:$0xff]  ;;  %v12237_v24 = vld [vmem:[#allocation2 + $0x1e7] sm:$0xff] }
 0x141   : > { %10010 = vmatprep.mubr.msk.f32.mxu0 %vm299_vm0, %v12106_v43  ;;  %v12225_v19 = vld [vmem:[#allocation2 + $0x1af] sm:$0xff]  ;;  %13869 = vst [vmem:[#allocation6_spill] sm:$0xff] %v12237_v24 }
 0x142   : > { %v12233_v22 = vld [vmem:[#allocation2 + $0x1cf] sm:$0xff] }
 0x143   : > { %v12241_v25 = vld [vmem:[#allocation2 + $0x1ef] sm:$0xff] }
 0x144   : > { %10011 = vmatmul.mubr.msk.f32.gmra.mrb[46].mxu0 %vm299_vm0, %v12112_v44  ;;  %v2105_v16 = vld [vmem:[#allocation2 + $0x9] sm:$0xff] }
 0x145   : > { %10015 = vmatprep.mubr.msk.f32.mxu0 %vm299_vm0, %v1396_v45  ;;  %v12246_v45 = vld [vmem:[#allocation2 + $0x29] sm:$0xff] }
 0x146   : > { %13870 = vst [vmem:[#allocation7_spill] sm:$0xff] %v12246_v45  ;;  %v12257_v44 = vld [vmem:[#allocation2 + $0x49] sm:$0xff] }
 0x147   : > { %13871 = vst [vmem:[#allocation8_spill] sm:$0xff] %v12257_v44  ;;  %v12266_v43 = vld [vmem:[#allocation2 + $0x69] sm:$0xff] }
 0x148   : > { %10016 = vmatmul.mubr.msk.f32.vlgmr.msra.gmra.mrb[16].mxu0 %vm299_vm0, %v1397_v46  ;;  %v12251_v46 = vld [vmem:[%s13752_s3 + $0x20] sm:$0xff]  ;;  %13873 = vst [vmem:[#allocation10_spill] sm:$0xff] %v12266_v43 }
 0x149   : > { %10018 = vmatprep.mubr.msk.f32.mxu0 %vm299_vm0, %v12123_v50  ;;  %10064 = vmatpush3.msra.mxu0 %v11821_v17  ;;  %v12145_v17 = vld [vmem:[#allocation2 + $0x6f] sm:$0xff] }
 0x14a   : > { %10113 = vmatprep.subr.mxu0 %v12120_v49 }
 0x14c   : > { %10019 = vmatmul.mubr.msk.f32.gmra.mrb[18].mxu0 %vm299_vm0, %v12128_v51 }
 0x14d   : > { %10021 = vmatprep.mubr.msk.f32.mxu0 %vm299_vm0, %v12133_v52 }
 0x150   : > { %10022 = vmatmul.mubr.msk.f32.gmra.mrb[20].mxu0 %vm299_vm0, %v12137_v53 }
 0x151   : > { %10024 = vmatprep.mubr.msk.f32.mxu0 %vm299_vm0, %v12141_v54 }
 0x154   : > { %10025 = vmatmul.mubr.msk.f32.gmra.mrb[22].mxu0 %vm299_vm0, %v12145_v17 }
 0x155   : > { %10027 = vmatprep.mubr.msk.f32.mxu0 %vm299_vm0, %v12149_v55 }
 0x158   : > { %10028 = vmatmul.mubr.msk.f32.gmra.mrb[24].mxu0 %vm299_vm0, %v12153_v56 }
 0x159   : > { %10030 = vmatprep.mubr.msk.f32.mxu0 %vm299_vm0, %v12157_v58 }
 0x15c   : > { %10031 = vmatmul.mubr.msk.f32.gmra.mrb[26].mxu0 %vm299_vm0, %v12161_v60 }
 0x15d   : > { %10033 = vmatprep.mubr.msk.f32.mxu0 %vm299_vm0, %v12165_v61 }
 0x160   : > { %10034 = vmatmul.mubr.msk.f32.gmra.mrb[28].mxu0 %vm299_vm0, %v12169_v0 }
 0x161   : > { %10036 = vmatprep.mubr.msk.f32.mxu0 %vm299_vm0, %v12173_v2 }
 0x164   : > { %10037 = vmatmul.mubr.msk.f32.gmra.mrb[30].mxu0 %vm299_vm0, %v12177_v3 }
 0x165   : > { %10039 = vmatprep.mubr.msk.f32.mxu0 %vm299_vm0, %v12181_v5 }
 0x168   : > { %10040 = vmatmul.mubr.msk.f32.gmra.mrb[32].mxu0 %vm299_vm0, %v12185_v7 }
 0x169   : > { %10042 = vmatprep.mubr.msk.f32.mxu0 %vm299_vm0, %v12189_v8 }
 0x16c   : > { %10043 = vmatmul.mubr.msk.f32.gmra.mrb[34].mxu0 %vm299_vm0, %v12193_v9 }
 0x16d   : > { %10045 = vmatprep.mubr.msk.f32.mxu0 %vm299_vm0, %v12197_v10 }
 0x170   : > { %10046 = vmatmul.mubr.msk.f32.gmra.mrb[36].mxu0 %vm299_vm0, %v12201_v62 }
 0x171   : > { %10048 = vmatprep.mubr.msk.f32.mxu0 %vm299_vm0, %v12205_v11 }
 0x174   : > { %10049 = vmatmul.mubr.msk.f32.gmra.mrb[38].mxu0 %vm299_vm0, %v12209_v12 }
 0x175   : > { %10051 = vmatprep.mubr.msk.f32.mxu0 %vm299_vm0, %v12213_v13 }
 0x178   : > { %10052 = vmatmul.mubr.msk.f32.gmra.mrb[40].mxu0 %vm299_vm0, %v12217_v14 }
 0x179   : > { %10054 = vmatprep.mubr.msk.f32.mxu0 %vm299_vm0, %v12221_v18 }
 0x17c   : > { %10055 = vmatmul.mubr.msk.f32.gmra.mrb[42].mxu0 %vm299_vm0, %v12225_v19 }
 0x17d   : > { %10057 = vmatprep.mubr.msk.f32.mxu0 %vm299_vm0, %v12229_v21 }
 0x180   : > { %10058 = vmatmul.mubr.msk.f32.gmra.mrb[44].mxu0 %vm299_vm0, %v12233_v22 }
 0x181   : > { %10060 = vmatprep.mubr.msk.f32.mxu0 %vm299_vm0, %v12237_v24 }
 0x184   : > { %10061 = vmatmul.mubr.msk.f32.gmra.mrb[46].mxu0 %vm299_vm0, %v12241_v25 }
 0x185   : > { %10065 = vmatprep.mubr.msk.f32.mxu0 %vm299_vm0, %v2105_v16  ;;  %v12260_v16 = vld [vmem:[#allocation2 + $0x31] sm:$0xff] }
 0x186   : > { %13872 = vst [vmem:[#allocation9_spill] sm:$0xff] %v12260_v16 }
 0x188   : > { %10066 = vmatmul.mubr.msk.f32.vlgmr.msra.gmra.mrb[16].mxu0 %vm299_vm0, %v2106_v26  ;;  %v12268_v26 = vld [vmem:[#allocation2 + $0x51] sm:$0xff] }
 0x189   : > { %10114 = vmatpush3.msra.mxu0 %v12120_v49  ;;  %10068 = vmatprep.mubr.msk.f32.mxu0 %vm299_vm0, %v12246_v45  ;;  %13874 = vst [vmem:[#allocation11_spill] sm:$0xff] %v12268_v26  ;;  %v12274_v49 = vld [vmem:[#allocation2 + $0x89] sm:$0xff]  ;;  %v12276_v45 = vld [vmem:[#allocation2 + $0x71] sm:$0xff] }
 0x18a   : > { %10163 = vmatprep.subr.mxu0 %v12251_v46  ;;  %13875 = vst [vmem:[#allocation12_spill] sm:$0xff] %v12274_v49  ;;  %13876 = vst [vmem:[#allocation13_spill] sm:$0xff] %v12276_v45 }
 0x18c   : > { %10069 = vmatmul.mubr.msk.f32.gmra.mrb[18].mxu0 %vm299_vm0, %v12260_v16  ;;  %v12284_v16 = vld [vmem:[#allocation2 + $0x91] sm:$0xff] }
 0x18d   : > { %10071 = vmatprep.mubr.msk.f32.mxu0 %vm299_vm0, %v12257_v44  ;;  %v12282_v44 = vld [vmem:[#allocation2 + $0xa9] sm:$0xff]  ;;  %13878 = vst [vmem:[#allocation15_spill] sm:$0xff] %v12284_v16 }
 0x18e   : > { %13877 = vst [vmem:[#allocation14_spill] sm:$0xff] %v12282_v44 }
 0x190   : > { %10072 = vmatmul.mubr.msk.f32.gmra.mrb[20].mxu0 %vm299_vm0, %v12268_v26  ;;  %v12292_v26 = vld [vmem:[#allocation2 + $0xb1] sm:$0xff] }
 0x191   : > { %10074 = vmatprep.mubr.msk.f32.mxu0 %vm299_vm0, %v12266_v43  ;;  %v12290_v43 = vld [vmem:[#allocation2 + $0xc9] sm:$0xff]  ;;  %13880 = vst [vmem:[#allocation17_spill] sm:$0xff] %v12292_v26 }
 0x192   : > { %13879 = vst [vmem:[#allocation16_spill] sm:$0xff] %v12290_v43 }
 0x194   : > { %10075 = vmatmul.mubr.msk.f32.gmra.mrb[22].mxu0 %vm299_vm0, %v12276_v45  ;;  %v12300_v45 = vld [vmem:[#allocation2 + $0xd1] sm:$0xff] }
 0x195   : > { %10077 = vmatprep.mubr.msk.f32.mxu0 %vm299_vm0, %v12274_v49  ;;  %v12298_v49 = vld [vmem:[#allocation2 + $0xe9] sm:$0xff]  ;;  %13882 = vst [vmem:[#allocation19_spill] sm:$0xff] %v12300_v45 }
 0x196   : > { %13881 = vst [vmem:[#allocation18_spill] sm:$0xff] %v12298_v49 }
 0x198   : > { %10078 = vmatmul.mubr.msk.f32.gmra.mrb[24].mxu0 %vm299_vm0, %v12284_v16  ;;  %v12308_v16 = vld [vmem:[#allocation2 + $0xf1] sm:$0xff] }
 0x199   : > { %10080 = vmatprep.mubr.msk.f32.mxu0 %vm299_vm0, %v12282_v44  ;;  %v12306_v44 = vld [vmem:[#allocation2 + $0x109] sm:$0xff]  ;;  %13884 = vst [vmem:[#allocation21_spill] sm:$0xff] %v12308_v16 }
 0x19a   : > { %13883 = vst [vmem:[#allocation20_spill] sm:$0xff] %v12306_v44 }
 0x19c   : > { %10081 = vmatmul.mubr.msk.f32.gmra.mrb[26].mxu0 %vm299_vm0, %v12292_v26  ;;  %v12316_v26 = vld [vmem:[#allocation2 + $0x111] sm:$0xff] }
 0x19d   : > { %10083 = vmatprep.mubr.msk.f32.mxu0 %vm299_vm0, %v12290_v43  ;;  %v12314_v43 = vld [vmem:[#allocation2 + $0x129] sm:$0xff]  ;;  %13886 = vst [vmem:[#allocation23_spill] sm:$0xff] %v12316_v26 }
 0x19e   : > { %13885 = vst [vmem:[#allocation22_spill] sm:$0xff] %v12314_v43 }
 0x1a0   : > { %10084 = vmatmul.mubr.msk.f32.gmra.mrb[28].mxu0 %vm299_vm0, %v12300_v45  ;;  %v12324_v45 = vld [vmem:[#allocation2 + $0x131] sm:$0xff] }
 0x1a1   : > { %10086 = vmatprep.mubr.msk.f32.mxu0 %vm299_vm0, %v12298_v49  ;;  %v12322_v49 = vld [vmem:[#allocation2 + $0x149] sm:$0xff]  ;;  %13888 = vst [vmem:[#allocation25_spill] sm:$0xff] %v12324_v45 }
 0x1a2   : > { %13887 = vst [vmem:[#allocation24_spill] sm:$0xff] %v12322_v49 }
 0x1a4   : > { %10087 = vmatmul.mubr.msk.f32.gmra.mrb[30].mxu0 %vm299_vm0, %v12308_v16  ;;  %v12332_v16 = vld [vmem:[#allocation2 + $0x151] sm:$0xff] }
 0x1a5   : > { %10089 = vmatprep.mubr.msk.f32.mxu0 %vm299_vm0, %v12306_v44  ;;  %v12330_v44 = vld [vmem:[#allocation2 + $0x169] sm:$0xff]  ;;  %13890 = vst [vmem:[#allocation27_spill] sm:$0xff] %v12332_v16 }
 0x1a6   : > { %13889 = vst [vmem:[#allocation26_spill] sm:$0xff] %v12330_v44 }
 0x1a8   : > { %10090 = vmatmul.mubr.msk.f32.gmra.mrb[32].mxu0 %vm299_vm0, %v12316_v26  ;;  %v12340_v26 = vld [vmem:[#allocation2 + $0x171] sm:$0xff] }
 0x1a9   : > { %10092 = vmatprep.mubr.msk.f32.mxu0 %vm299_vm0, %v12314_v43  ;;  %v12338_v43 = vld [vmem:[#allocation2 + $0x189] sm:$0xff]  ;;  %13892 = vst [vmem:[#allocation29_spill] sm:$0xff] %v12340_v26 }
 0x1aa   : > { %13891 = vst [vmem:[#allocation28_spill] sm:$0xff] %v12338_v43 }
 0x1ac   : > { %10093 = vmatmul.mubr.msk.f32.gmra.mrb[34].mxu0 %vm299_vm0, %v12324_v45  ;;  %v12348_v45 = vld [vmem:[#allocation2 + $0x191] sm:$0xff] }
 0x1ad   : > { %10095 = vmatprep.mubr.msk.f32.mxu0 %vm299_vm0, %v12322_v49  ;;  %v12346_v49 = vld [vmem:[#allocation2 + $0x1a9] sm:$0xff] }
 0x1ae   : > { %13893 = vst [vmem:[#allocation30_spill] sm:$0xff] %v12346_v49 }
 0x1b0   : > { %10096 = vmatmul.mubr.msk.f32.gmra.mrb[36].mxu0 %vm299_vm0, %v12332_v16  ;;  %v12356_v16 = vld [vmem:[#allocation2 + $0x1b1] sm:$0xff] }
 0x1b1   : > { %10098 = vmatprep.mubr.msk.f32.mxu0 %vm299_vm0, %v12330_v44  ;;  %v12354_v44 = vld [vmem:[#allocation2 + $0x1c9] sm:$0xff] }
 0x1b2   : > { %13894 = vst [vmem:[#allocation31_spill] sm:$0xff] %v12354_v44 }
 0x1b4   : > { %10099 = vmatmul.mubr.msk.f32.gmra.mrb[38].mxu0 %vm299_vm0, %v12340_v26  ;;  %v12364_v26 = vld [vmem:[#allocation2 + $0x1d1] sm:$0xff] }
 0x1b5   : > { %10101 = vmatprep.mubr.msk.f32.mxu0 %vm299_vm0, %v12338_v43  ;;  %v12362_v43 = vld [vmem:[#allocation2 + $0x1e9] sm:$0xff] }
 0x1b6   : > { %13895 = vst [vmem:[#allocation32_spill] sm:$0xff] %v12362_v43 }
 0x1b8   : > { %10102 = vmatmul.mubr.msk.f32.gmra.mrb[40].mxu0 %vm299_vm0, %v12348_v45 }
 0x1b9   : > { %10104 = vmatprep.mubr.msk.f32.mxu0 %vm299_vm0, %v12346_v49  ;;  %v12370_v49 = vld [vmem:[#allocation2 + $0x1f1] sm:$0xff] }
 0x1bc   : > { %10105 = vmatmul.mubr.msk.f32.gmra.mrb[42].mxu0 %vm299_vm0, %v12356_v16 }
 0x1bd   : > { %10107 = vmatprep.mubr.msk.f32.mxu0 %vm299_vm0, %v12354_v44  ;;  %v8821_v44 = vld [vmem:[%s13752_s3 + $0x28] sm:$0xff] }
 0x1c0   : > { %10108 = vmatmul.mubr.msk.f32.gmra.mrb[44].mxu0 %vm299_vm0, %v12364_v26 }
 0x1c1   : > { %10110 = vmatprep.mubr.msk.f32.mxu0 %vm299_vm0, %v12362_v43 }
 0x1c4   : > { %10111 = vmatmul.mubr.msk.f32.gmra.mrb[46].mxu0 %vm299_vm0, %v12370_v49 }
 0x1c5   : > { %10115 = vmatprep.mubr.msk.f32.mxu0 %vm299_vm0, %v12123_v50  ;;  %v12438_v50 = vld [vmem:[#allocation2 + $0x207] sm:$0xff] }
 0x1c8   : > { %10116 = vmatmul.mubr.msk.f32.vlgmr.msra.gmra.mrb[16].mxu0 %vm299_vm0, %v12128_v51  ;;  %v12442_v51 = vld [vmem:[#allocation2 + $0x20f] sm:$0xff] }
 0x1c9   : > { %10118 = vmatprep.mubr.msk.f32.mxu0 %vm299_vm0, %v12133_v52  ;;  %10164 = vmatpush3.msra.mxu0 %v12251_v46  ;;  %v11384_v46 = vld [vmem:[#allocation2 + $0x28] sm:$0xff] }
 0x1ca   : > { %10213 = vmatprep.subr.mxu0 %v8821_v44 }
 0x1cc   : > { %10119 = vmatmul.mubr.msk.f32.gmra.mrb[18].mxu0 %vm299_vm0, %v12137_v53 }
 0x1cd   : > { %10121 = vmatprep.mubr.msk.f32.mxu0 %vm299_vm0, %v12141_v54 }
 0x1d0   : > { %10122 = vmatmul.mubr.msk.f32.gmra.mrb[20].mxu0 %vm299_vm0, %v12145_v17 }
 0x1d1   : > { %10124 = vmatprep.mubr.msk.f32.mxu0 %vm299_vm0, %v12149_v55 }
 0x1d4   : > { %10125 = vmatmul.mubr.msk.f32.gmra.mrb[22].mxu0 %vm299_vm0, %v12153_v56 }
 0x1d5   : > { %10127 = vmatprep.mubr.msk.f32.mxu0 %vm299_vm0, %v12157_v58 }
 0x1d8   : > { %10128 = vmatmul.mubr.msk.f32.gmra.mrb[24].mxu0 %vm299_vm0, %v12161_v60 }
 0x1d9   : > { %10130 = vmatprep.mubr.msk.f32.mxu0 %vm299_vm0, %v12165_v61 }
 0x1dc   : > { %10131 = vmatmul.mubr.msk.f32.gmra.mrb[26].mxu0 %vm299_vm0, %v12169_v0 }
 0x1dd   : > { %10133 = vmatprep.mubr.msk.f32.mxu0 %vm299_vm0, %v12173_v2 }
 0x1e0   : > { %10134 = vmatmul.mubr.msk.f32.gmra.mrb[28].mxu0 %vm299_vm0, %v12177_v3 }
 0x1e1   : > { %10136 = vmatprep.mubr.msk.f32.mxu0 %vm299_vm0, %v12181_v5 }
 0x1e4   : > { %10137 = vmatmul.mubr.msk.f32.gmra.mrb[30].mxu0 %vm299_vm0, %v12185_v7 }
 0x1e5   : > { %10139 = vmatprep.mubr.msk.f32.mxu0 %vm299_vm0, %v12189_v8 }
 0x1e8   : > { %10140 = vmatmul.mubr.msk.f32.gmra.mrb[32].mxu0 %vm299_vm0, %v12193_v9 }
 0x1e9   : > { %10142 = vmatprep.mubr.msk.f32.mxu0 %vm299_vm0, %v12197_v10 }
 0x1ec   : > { %10143 = vmatmul.mubr.msk.f32.gmra.mrb[34].mxu0 %vm299_vm0, %v12201_v62 }
 0x1ed   : > { %10145 = vmatprep.mubr.msk.f32.mxu0 %vm299_vm0, %v12205_v11 }
 0x1f0   : > { %10146 = vmatmul.mubr.msk.f32.gmra.mrb[36].mxu0 %vm299_vm0, %v12209_v12 }
 0x1f1   : > { %10148 = vmatprep.mubr.msk.f32.mxu0 %vm299_vm0, %v12213_v13 }
 0x1f4   : > { %10149 = vmatmul.mubr.msk.f32.gmra.mrb[38].mxu0 %vm299_vm0, %v12217_v14 }
 0x1f5   : > { %10151 = vmatprep.mubr.msk.f32.mxu0 %vm299_vm0, %v12221_v18 }
 0x1f8   : > { %10152 = vmatmul.mubr.msk.f32.gmra.mrb[40].mxu0 %vm299_vm0, %v12225_v19 }
 0x1f9   : > { %10154 = vmatprep.mubr.msk.f32.mxu0 %vm299_vm0, %v12229_v21 }
 0x1fc   : > { %10155 = vmatmul.mubr.msk.f32.gmra.mrb[42].mxu0 %vm299_vm0, %v12233_v22 }
 0x1fd   : > { %10157 = vmatprep.mubr.msk.f32.mxu0 %vm299_vm0, %v12237_v24  ;;  %v8854_v24 = vld [vmem:[%s13752_s3 + $0x30] sm:$0xff] }
 0x200   : > { %10158 = vmatmul.mubr.msk.f32.gmra.mrb[44].mxu0 %vm299_vm0, %v12241_v25 }
 0x201   : > { %10160 = vmatprep.mubr.msk.f32.mxu0 %vm299_vm0, %v12438_v50 }
 0x204   : > { %10161 = vmatmul.mubr.msk.f32.gmra.mrb[46].mxu0 %vm299_vm0, %v12442_v51 }
 0x205   : > { %10165 = vmatprep.mubr.msk.f32.mxu0 %vm299_vm0, %v11384_v46  ;;  %v13905_v46 = vld [vmem:[#allocation15_spill] sm:$0xff] }
 0x208   : > { %10166 = vmatmul.mubr.msk.f32.vlgmr.msra.gmra.mrb[16].mxu0 %vm299_vm0, %v11895_v47  ;;  %v13896_v47 = vld [vmem:[#allocation4_spill] sm:$0xff] }
 0x209   : > { %10214 = vmatpush3.msra.mxu0 %v8821_v44  ;;  %10168 = vmatprep.mubr.msk.f32.mxu0 %vm299_vm0, %v11911_v4  ;;  %v12506_v4 = vld [vmem:[#allocation2 + $0x208] sm:$0xff]  ;;  %v13904_v44 = vld [vmem:[#allocation12_spill] sm:$0xff] }
 0x20a   : > { %10263 = vmatprep.subr.mxu0 %v8854_v24 }
 0x20c   : > { %10169 = vmatmul.mubr.msk.f32.gmra.mrb[18].mxu0 %vm299_vm0, %v11925_v20  ;;  %v13897_v20 = vld [vmem:[#allocation5_spill] sm:$0xff] }
 0x20d   : > { %10171 = vmatprep.mubr.msk.f32.mxu0 %vm299_vm0, %v11936_v28  ;;  %v12512_v28 = vld [vmem:[#allocation2 + $0x210] sm:$0xff] }
 0x210   : > { %10172 = vmatmul.mubr.msk.f32.gmra.mrb[20].mxu0 %vm299_vm0, %v11947_v35  ;;  %v13898_v35 = vld [vmem:[#allocation7_spill] sm:$0xff] }
 0x211   : > { %10174 = vmatprep.mubr.msk.f32.mxu0 %vm299_vm0, %v11956_v48  ;;  %v8887_v48 = vld [vmem:[%s13752_s3 + $0x38] sm:$0xff] }
 0x214   : > { %10175 = vmatmul.mubr.msk.f32.gmra.mrb[22].mxu0 %vm299_vm0, %v11962_v57  ;;  %v13899_v57 = vld [vmem:[#allocation9_spill] sm:$0xff] }
 0x215   : > { %10177 = vmatprep.mubr.msk.f32.mxu0 %vm299_vm0, %v11967_v1  ;;  %v13900_v1 = vld [vmem:[#allocation8_spill] sm:$0xff] }
 0x218   : > { %10178 = vmatmul.mubr.msk.f32.gmra.mrb[24].mxu0 %vm299_vm0, %v11980_v63  ;;  %v13901_v63 = vld [vmem:[#allocation11_spill] sm:$0xff] }
 0x219   : > { %10180 = vmatprep.mubr.msk.f32.mxu0 %vm299_vm0, %v11990_v15  ;;  %v13902_v15 = vld [vmem:[#allocation10_spill] sm:$0xff] }
 0x21c   : > { %10181 = vmatmul.mubr.msk.f32.gmra.mrb[26].mxu0 %vm299_vm0, %v11995_v31  ;;  %v13903_v31 = vld [vmem:[#allocation13_spill] sm:$0xff] }
 0x21d   : > { %10183 = vmatprep.mubr.msk.f32.mxu0 %vm299_vm0, %v12005_v42 }
 0x220   : > { %10184 = vmatmul.mubr.msk.f32.gmra.mrb[28].mxu0 %vm299_vm0, %v12019_v59 }
 0x221   : > { %10186 = vmatprep.mubr.msk.f32.mxu0 %vm299_vm0, %v12026_v6 }
 0x224   : > { %10187 = vmatmul.mubr.msk.f32.gmra.mrb[30].mxu0 %vm299_vm0, %v12043_v23 }
 0x225   : > { %10189 = vmatprep.mubr.msk.f32.mxu0 %vm299_vm0, %v12052_v27 }
 0x228   : > { %10190 = vmatmul.mubr.msk.f32.gmra.mrb[32].mxu0 %vm299_vm0, %v12064_v29 }
 0x229   : > { %10192 = vmatprep.mubr.msk.f32.mxu0 %vm299_vm0, %v12066_v30 }
 0x22c   : > { %10193 = vmatmul.mubr.msk.f32.gmra.mrb[34].mxu0 %vm299_vm0, %v12072_v32 }
 0x22d   : > { %10195 = vmatprep.mubr.msk.f32.mxu0 %vm299_vm0, %v12074_v33 }
 0x230   : > { %10196 = vmatmul.mubr.msk.f32.gmra.mrb[36].mxu0 %vm299_vm0, %v12080_v34 }
 0x231   : > { %10198 = vmatprep.mubr.msk.f32.mxu0 %vm299_vm0, %v12082_v36 }
 0x234   : > { %10199 = vmatmul.mubr.msk.f32.gmra.mrb[38].mxu0 %vm299_vm0, %v12088_v37 }
 0x235   : > { %10201 = vmatprep.mubr.msk.f32.mxu0 %vm299_vm0, %v12090_v38 }
 0x238   : > { %10202 = vmatmul.mubr.msk.f32.gmra.mrb[40].mxu0 %vm299_vm0, %v12096_v39 }
 0x239   : > { %10204 = vmatprep.mubr.msk.f32.mxu0 %vm299_vm0, %v12098_v40 }
 0x23c   : > { %10205 = vmatmul.mubr.msk.f32.gmra.mrb[42].mxu0 %vm299_vm0, %v12104_v41 }
 0x23d   : > { %10207 = vmatprep.mubr.msk.f32.mxu0 %vm299_vm0, %v13896_v47 }
 0x240   : > { %10208 = vmatmul.mubr.msk.f32.gmra.mrb[44].mxu0 %vm299_vm0, %v13897_v20 }
 0x241   : > { %10210 = vmatprep.mubr.msk.f32.mxu0 %vm299_vm0, %v12506_v4 }
 0x244   : > { %10211 = vmatmul.mubr.msk.f32.gmra.mrb[46].mxu0 %vm299_vm0, %v12512_v28 }
 0x245   : > { %10215 = vmatprep.mubr.msk.f32.mxu0 %vm299_vm0, %v13898_v35  ;;  %v13907_v35 = vld [vmem:[#allocation17_spill] sm:$0xff] }
 0x248   : > { %10216 = vmatmul.mubr.msk.f32.vlgmr.msra.gmra.mrb[16].mxu0 %vm299_vm0, %v13899_v57  ;;  %v13908_v57 = vld [vmem:[#allocation16_spill] sm:$0xff] }
 0x249   : > { %10264 = vmatpush3.msra.mxu0 %v8854_v24  ;;  %10218 = vmatprep.mubr.msk.f32.mxu0 %vm299_vm0, %v13900_v1  ;;  %v13906_v24 = vld [vmem:[#allocation14_spill] sm:$0xff] }
 0x24a   : > { %10313 = vmatprep.subr.mxu0 %v8887_v48 }
 0x24c   : > { %10219 = vmatmul.mubr.msk.f32.gmra.mrb[18].mxu0 %vm299_vm0, %v13901_v63  ;;  %v13909_v63 = vld [vmem:[#allocation19_spill] sm:$0xff] }
 0x24d   : > { %10221 = vmatprep.mubr.msk.f32.mxu0 %vm299_vm0, %v13902_v15  ;;  %v13910_v15 = vld [vmem:[#allocation18_spill] sm:$0xff] }
 0x250   : > { %10222 = vmatmul.mubr.msk.f32.gmra.mrb[20].mxu0 %vm299_vm0, %v13903_v31  ;;  %v13911_v31 = vld [vmem:[#allocation21_spill] sm:$0xff] }
 0x251   : > { %10224 = vmatprep.mubr.msk.f32.mxu0 %vm299_vm0, %v13904_v44  ;;  %v13912_v44 = vld [vmem:[#allocation20_spill] sm:$0xff] }
 0x254   : > { %10225 = vmatmul.mubr.msk.f32.gmra.mrb[22].mxu0 %vm299_vm0, %v13905_v46  ;;  %v13913_v46 = vld [vmem:[#allocation23_spill] sm:$0xff] }
 0x255   : > { %10227 = vmatprep.mubr.msk.f32.mxu0 %vm299_vm0, %v13906_v24  ;;  %v13914_v24 = vld [vmem:[#allocation22_spill] sm:$0xff] }
 0x258   : > { %10228 = vmatmul.mubr.msk.f32.gmra.mrb[24].mxu0 %vm299_vm0, %v13907_v35  ;;  %v13915_v35 = vld [vmem:[#allocation25_spill] sm:$0xff] }
 0x259   : > { %10230 = vmatprep.mubr.msk.f32.mxu0 %vm299_vm0, %v13908_v57  ;;  %v13916_v57 = vld [vmem:[#allocation24_spill] sm:$0xff] }
 0x25c   : > { %10231 = vmatmul.mubr.msk.f32.gmra.mrb[26].mxu0 %vm299_vm0, %v13909_v63  ;;  %v13917_v63 = vld [vmem:[#allocation27_spill] sm:$0xff] }
 0x25d   : > { %10233 = vmatprep.mubr.msk.f32.mxu0 %vm299_vm0, %v13910_v15  ;;  %v13918_v15 = vld [vmem:[#allocation26_spill] sm:$0xff] }
 0x260   : > { %10234 = vmatmul.mubr.msk.f32.gmra.mrb[28].mxu0 %vm299_vm0, %v13911_v31  ;;  %v13919_v31 = vld [vmem:[#allocation29_spill] sm:$0xff] }
 0x261   : > { %10236 = vmatprep.mubr.msk.f32.mxu0 %vm299_vm0, %v13912_v44  ;;  %v13920_v44 = vld [vmem:[#allocation28_spill] sm:$0xff] }
 0x264   : > { %10237 = vmatmul.mubr.msk.f32.gmra.mrb[30].mxu0 %vm299_vm0, %v13913_v46 }
 0x265   : > { %10239 = vmatprep.mubr.msk.f32.mxu0 %vm299_vm0, %v13914_v24  ;;  %v13921_v24 = vld [vmem:[#allocation30_spill] sm:$0xff] }
 0x268   : > { %10240 = vmatmul.mubr.msk.f32.gmra.mrb[32].mxu0 %vm299_vm0, %v13915_v35 }
 0x269   : > { %10242 = vmatprep.mubr.msk.f32.mxu0 %vm299_vm0, %v13916_v57  ;;  %v13922_v57 = vld [vmem:[#allocation31_spill] sm:$0xff] }
 0x26c   : > { %10243 = vmatmul.mubr.msk.f32.gmra.mrb[34].mxu0 %vm299_vm0, %v13917_v63 }
 0x26d   : > { %10245 = vmatprep.mubr.msk.f32.mxu0 %vm299_vm0, %v13918_v15 }
 0x270   : > { %10246 = vmatmul.mubr.msk.f32.gmra.mrb[36].mxu0 %vm299_vm0, %v13919_v31  ;;  %v12577_v31 = vld [vmem:[#allocation2 + $0x209] sm:$0xff] }
 0x271   : > { %10248 = vmatprep.mubr.msk.f32.mxu0 %vm299_vm0, %v13920_v44 }
 0x274   : > { %10249 = vmatmul.mubr.msk.f32.gmra.mrb[38].mxu0 %vm299_vm0, %v12348_v45 }
 0x275   : > { %10251 = vmatprep.mubr.msk.f32.mxu0 %vm299_vm0, %v13921_v24  ;;  %v12583_v24 = vld [vmem:[#allocation2 + $0x211] sm:$0xff] }
 0x278   : > { %10252 = vmatmul.mubr.msk.f32.gmra.mrb[40].mxu0 %vm299_vm0, %v12356_v16 }
 0x279   : > { %10254 = vmatprep.mubr.msk.f32.mxu0 %vm299_vm0, %v13922_v57 }
 0x27c   : > { %10255 = vmatmul.mubr.msk.f32.gmra.mrb[42].mxu0 %vm299_vm0, %v12364_v26 }
 0x27d   : > { %10257 = vmatprep.mubr.msk.f32.mxu0 %vm299_vm0, %v12362_v43  ;;  %v8920_v43 = vld [vmem:[%s13752_s3 + $0x40] sm:$0xff] }
 0x280   : > { %10258 = vmatmul.mubr.msk.f32.gmra.mrb[44].mxu0 %vm299_vm0, %v12370_v49 }
 0x281   : > { %10260 = vmatprep.mubr.msk.f32.mxu0 %vm299_vm0, %v12577_v31 }
 0x284   : > { %10261 = vmatmul.mubr.msk.f32.gmra.mrb[46].mxu0 %vm299_vm0, %v12583_v24 }
 0x285   : > { %10265 = vmatprep.mubr.msk.f32.mxu0 %vm299_vm0, %v12133_v52  ;;  %v13923_v52 = vld [vmem:[#allocation6_spill] sm:$0xff] }
 0x288   : > { %10266 = vmatmul.mubr.msk.f32.vlgmr.msra.gmra.mrb[16].mxu0 %vm299_vm0, %v12137_v53  ;;  %v3683_v53 = vld [vmem:[#allocation2 + $0x227] sm:$0xff] }
 0x289   : > { %10268 = vmatprep.mubr.msk.f32.mxu0 %vm299_vm0, %v12141_v54  ;;  %10314 = vmatpush3.msra.mxu0 %v8887_v48  ;;  %v3684_v54 = vld [vmem:[#allocation2 + $0x22f] sm:$0xff] }
 0x28a   : > { %10363 = vmatprep.subr.mxu0 %v8920_v43 }
 0x28c   : > { %10269 = vmatmul.mubr.msk.f32.gmra.mrb[18].mxu0 %vm299_vm0, %v12145_v17  ;;  %v4040_v17 = vld [vmem:[#allocation2 + $0x48] sm:$0xff] }
 0x28d   : > { %10271 = vmatprep.mubr.msk.f32.mxu0 %vm299_vm0, %v12149_v55  ;;  %v4041_v55 = vld [vmem:[#allocation2 + $0x50] sm:$0xff] }
 0x290   : > { %10272 = vmatmul.mubr.msk.f32.gmra.mrb[20].mxu0 %vm299_vm0, %v12153_v56  ;;  %v4042_v56 = vld [vmem:[#allocation2 + $0x68] sm:$0xff] }
 0x291   : > { %10274 = vmatprep.mubr.msk.f32.mxu0 %vm299_vm0, %v12157_v58  ;;  %v4043_v58 = vld [vmem:[#allocation2 + $0x70] sm:$0xff] }
 0x294   : > { %10275 = vmatmul.mubr.msk.f32.gmra.mrb[22].mxu0 %vm299_vm0, %v12161_v60  ;;  %v4044_v60 = vld [vmem:[#allocation2 + $0x88] sm:$0xff] }
 0x295   : > { %10277 = vmatprep.mubr.msk.f32.mxu0 %vm299_vm0, %v12165_v61  ;;  %v4045_v61 = vld [vmem:[#allocation2 + $0x90] sm:$0xff] }
 0x298   : > { %10278 = vmatmul.mubr.msk.f32.gmra.mrb[24].mxu0 %vm299_vm0, %v12169_v0  ;;  %v4046_v0 = vld [vmem:[#allocation2 + $0xa8] sm:$0xff] }
 0x299   : > { %10280 = vmatprep.mubr.msk.f32.mxu0 %vm299_vm0, %v12173_v2  ;;  %v4047_v2 = vld [vmem:[#allocation2 + $0xb0] sm:$0xff] }
 0x29c   : > { %10281 = vmatmul.mubr.msk.f32.gmra.mrb[26].mxu0 %vm299_vm0, %v12177_v3  ;;  %v4048_v3 = vld [vmem:[#allocation2 + $0xc8] sm:$0xff] }
 0x29d   : > { %10283 = vmatprep.mubr.msk.f32.mxu0 %vm299_vm0, %v12181_v5  ;;  %v13938_v5 = vld [vmem:[#allocation29_spill] sm:$0xff] }
 0x2a0   : > { %10284 = vmatmul.mubr.msk.f32.gmra.mrb[28].mxu0 %vm299_vm0, %v12185_v7  ;;  %v13939_v7 = vld [vmem:[#allocation30_spill] sm:$0xff] }
 0x2a1   : > { %10286 = vmatprep.mubr.msk.f32.mxu0 %vm299_vm0, %v12189_v8  ;;  %v13940_v8 = vld [vmem:[#allocation32_spill] sm:$0xff] }
 0x2a4   : > { %10287 = vmatmul.mubr.msk.f32.gmra.mrb[30].mxu0 %vm299_vm0, %v12193_v9  ;;  %v4457_v9 = vld [vmem:[#allocation2 + $0x229] sm:$0xff] }
 0x2a5   : > { %10289 = vmatprep.mubr.msk.f32.mxu0 %vm299_vm0, %v12197_v10  ;;  %v4458_v10 = vld [vmem:[#allocation2 + $0x231] sm:$0xff] }
 0x2a8   : > { %10290 = vmatmul.mubr.msk.f32.gmra.mrb[32].mxu0 %vm299_vm0, %v12201_v62  ;;  %v8954_v62 = vld [vmem:[%s13754_s5 + $0x4] sm:$0xf] }
 0x2a9   : > { %10292 = vmatprep.mubr.msk.f32.mxu0 %vm299_vm0, %v12205_v11  ;;  %10413 = vmatprep.subr.msk.mxu1 %vm5153_vm2, %v8954_v62  ;;  %v5023_v11 = vld [vmem:[#allocation3 + $0x8] sm:$0xff] }
 0x2aa   : > { %10414 = vmatpush3.msk.msra.mxu1 %vm5153_vm2, %v8954_v62  ;;  %10415 = vmatprep.mubr.msk.f32.mxu1 %vm1363_vm1, %v5023_v11 }
 0x2ac   : > { %10293 = vmatmul.mubr.msk.f32.gmra.mrb[34].mxu0 %vm299_vm0, %v12209_v12  ;;  %v5024_v12 = vld [vmem:[#allocation3 + $0x10] sm:$0xff] }
 0x2ad   : > { %10295 = vmatprep.mubr.msk.f32.mxu0 %vm299_vm0, %v12213_v13  ;;  %v5022_v13 = vld [vmem:[%s13754_s5] sm:$0xf]  ;;  %10416 = vmatmul.mubr.msk.f32.vlgmr.msra.gmra.mrb[16].mxu1 %vm1363_vm1, %v5024_v12 }
 0x2ae   : > { %10463 = vmatprep.subr.msk.mxu1 %vm5153_vm2, %v5022_v13 }
 0x2af   : > { %10464 = vmatpush3.msk.msra.mxu1 %vm5153_vm2, %v5022_v13 }
 0x2b0   : > { %10296 = vmatmul.mubr.msk.f32.gmra.mrb[36].mxu0 %vm299_vm0, %v12217_v14  ;;  %v12781_v14 = vld [vmem:[%s13754_s5 + $0x8] sm:$0xf] }
 0x2b1   : > { %10298 = vmatprep.mubr.msk.f32.mxu0 %vm299_vm0, %v12221_v18  ;;  %10513 = vmatprep.subr.msk.mxu1 %vm5153_vm2, %v12781_v14  ;;  %v12788_v18 = vld [vmem:[%s13753_s4] ss:$0 sm:$0xff] }
 0x2b4   : > { %10299 = vmatmul.mubr.msk.f32.gmra.mrb[38].mxu0 %vm299_vm0, %v12225_v19 }
 0x2b5   : > { %10301 = vmatprep.mubr.msk.f32.mxu0 %vm299_vm0, %v12229_v21 }
 0x2b8   : > { %10302 = vmatmul.mubr.msk.f32.gmra.mrb[40].mxu0 %vm299_vm0, %v12233_v22 }
 0x2b9   : > { %10304 = vmatprep.mubr.msk.f32.mxu0 %vm299_vm0, %v13923_v52 }
 0x2bc   : > { %10305 = vmatmul.mubr.msk.f32.gmra.mrb[42].mxu0 %vm299_vm0, %v12241_v25 }
 0x2bd   : > { %10307 = vmatprep.mubr.msk.f32.mxu0 %vm299_vm0, %v12438_v50 }
 0x2c0   : > { %10308 = vmatmul.mubr.msk.f32.gmra.mrb[44].mxu0 %vm299_vm0, %v12442_v51 }
 0x2c1   : > { %10310 = vmatprep.mubr.msk.f32.mxu0 %vm299_vm0, %v3683_v53 }
 0x2c4   : > { %10311 = vmatmul.mubr.msk.f32.gmra.mrb[46].mxu0 %vm299_vm0, %v3684_v54 }
 0x2c5   : > { %10315 = vmatprep.mubr.msk.f32.mxu0 %vm299_vm0, %v4040_v17 }
 0x2c8   : > { %10316 = vmatmul.mubr.msk.f32.vlgmr.msra.gmra.mrb[16].mxu0 %vm299_vm0, %v4041_v55 }
 0x2c9   : > { %10364 = vmatpush3.msra.mxu0 %v8920_v43  ;;  %10318 = vmatprep.mubr.msk.f32.mxu0 %vm299_vm0, %v4042_v56  ;;  %v4049_v43 = vld [vmem:[#allocation2 + $0xd0] sm:$0xff] }
 0x2cc   : > { %10319 = vmatmul.mubr.msk.f32.gmra.mrb[18].mxu0 %vm299_vm0, %v4043_v58 }
 0x2cd   : > { %10321 = vmatprep.mubr.msk.f32.mxu0 %vm299_vm0, %v4044_v60 }
 0x2d0   : > { %10322 = vmatmul.mubr.msk.f32.gmra.mrb[20].mxu0 %vm299_vm0, %v4045_v61 }
 0x2d1   : > { %10324 = vmatprep.mubr.msk.f32.mxu0 %vm299_vm0, %v4046_v0 }
 0x2d4   : > { %10325 = vmatmul.mubr.msk.f32.gmra.mrb[22].mxu0 %vm299_vm0, %v4047_v2 }
 0x2d5   : > { %10327 = vmatprep.mubr.msk.f32.mxu0 %vm299_vm0, %v4048_v3 }
 0x2d8   : > { %10328 = vmatmul.mubr.msk.f32.gmra.mrb[24].mxu0 %vm299_vm0, %v4049_v43 }
 0x2d9   : > { %10330 = vmatprep.mubr.msk.f32.mxu0 %vm299_vm0, %v12005_v42  ;;  %v4070_v42 = vld [vmem:[#allocation2 + $0x228] sm:$0xff] }
 0x2dc   : > { %10331 = vmatmul.mubr.msk.f32.gmra.mrb[26].mxu0 %vm299_vm0, %v12019_v59  ;;  %v4071_v59 = vld [vmem:[#allocation2 + $0x230] sm:$0xff] }
 0x2dd   : > { %10333 = vmatprep.mubr.msk.f32.mxu0 %vm299_vm0, %v12026_v6  ;;  %v13924_v6 = vld [vmem:[#allocation11_spill] sm:$0xff] }
 0x2e0   : > { %10334 = vmatmul.mubr.msk.f32.gmra.mrb[28].mxu0 %vm299_vm0, %v12043_v23  ;;  %v13925_v23 = vld [vmem:[#allocation10_spill] sm:$0xff] }
 0x2e1   : > { %10336 = vmatprep.mubr.msk.f32.mxu0 %vm299_vm0, %v12052_v27  ;;  %v13926_v27 = vld [vmem:[#allocation13_spill] sm:$0xff] }
 0x2e4   : > { %10337 = vmatmul.mubr.msk.f32.gmra.mrb[30].mxu0 %vm299_vm0, %v12064_v29  ;;  %v13927_v29 = vld [vmem:[#allocation12_spill] sm:$0xff] }
 0x2e5   : > { %10339 = vmatprep.mubr.msk.f32.mxu0 %vm299_vm0, %v12066_v30  ;;  %v13928_v30 = vld [vmem:[#allocation15_spill] sm:$0xff] }
 0x2e8   : > { %10340 = vmatmul.mubr.msk.f32.gmra.mrb[32].mxu0 %vm299_vm0, %v12072_v32  ;;  %v13929_v32 = vld [vmem:[#allocation14_spill] sm:$0xff] }
 0x2e9   : > { %10342 = vmatprep.mubr.msk.f32.mxu0 %vm299_vm0, %v12074_v33  ;;  %v13930_v33 = vld [vmem:[#allocation17_spill] sm:$0xff] }
 0x2ec   : > { %10343 = vmatmul.mubr.msk.f32.gmra.mrb[34].mxu0 %vm299_vm0, %v12080_v34  ;;  %v13931_v34 = vld [vmem:[#allocation16_spill] sm:$0xff] }
 0x2ed   : > { %10345 = vmatprep.mubr.msk.f32.mxu0 %vm299_vm0, %v12082_v36  ;;  %v13932_v36 = vld [vmem:[#allocation19_spill] sm:$0xff] }
 0x2f0   : > { %10346 = vmatmul.mubr.msk.f32.gmra.mrb[36].mxu0 %vm299_vm0, %v12088_v37  ;;  %v13933_v37 = vld [vmem:[#allocation18_spill] sm:$0xff] }
 0x2f1   : > { %10348 = vmatprep.mubr.msk.f32.mxu0 %vm299_vm0, %v12090_v38  ;;  %v13934_v38 = vld [vmem:[#allocation21_spill] sm:$0xff] }
 0x2f4   : > { %10349 = vmatmul.mubr.msk.f32.gmra.mrb[38].mxu0 %vm299_vm0, %v12096_v39  ;;  %v13935_v39 = vld [vmem:[#allocation20_spill] sm:$0xff] }
 0x2f5   : > { %10351 = vmatprep.mubr.msk.f32.mxu0 %vm299_vm0, %v12098_v40  ;;  %v13936_v40 = vld [vmem:[#allocation22_spill] sm:$0xff] }
 0x2f8   : > { %10352 = vmatmul.mubr.msk.f32.gmra.mrb[40].mxu0 %vm299_vm0, %v12104_v41  ;;  %v13937_v41 = vld [vmem:[#allocation24_spill] sm:$0xff] }
 0x2f9   : > { %10354 = vmatprep.mubr.msk.f32.mxu0 %vm299_vm0, %v13896_v47 }
 0x2fc   : > { %10355 = vmatmul.mubr.msk.f32.gmra.mrb[42].mxu0 %vm299_vm0, %v13897_v20 }
 0x2fd   : > { %10357 = vmatprep.mubr.msk.f32.mxu0 %vm299_vm0, %v12506_v4 }
 0x300   : > { %10358 = vmatmul.mubr.msk.f32.gmra.mrb[44].mxu0 %vm299_vm0, %v12512_v28 }
 0x301   : > { %10360 = vmatprep.mubr.msk.f32.mxu0 %vm299_vm0, %v4070_v42 }
 0x304   : > { %10361 = vmatmul.mubr.msk.f32.gmra.mrb[46].mxu0 %vm299_vm0, %v4071_v59 }
 0x305   : > { %10365 = vmatprep.mubr.msk.f32.mxu0 %vm299_vm0, %v13900_v1 }
 0x308   : > { %10366 = vmatmul.mubr.msk.f32.vlgmr.msra.gmra.mrb[16].mxu0 %vm299_vm0, %v13924_v6 }
 0x309   : > { %10368 = vmatprep.mubr.msk.f32.mxu0 %vm299_vm0, %v13925_v23 }
 0x30c   : > { %10369 = vmatmul.mubr.msk.f32.gmra.mrb[18].mxu0 %vm299_vm0, %v13926_v27 }
 0x30d   : > { %10371 = vmatprep.mubr.msk.f32.mxu0 %vm299_vm0, %v13927_v29 }
 0x310   : > { %10372 = vmatmul.mubr.msk.f32.gmra.mrb[20].mxu0 %vm299_vm0, %v13928_v30 }
 0x311   : > { %10374 = vmatprep.mubr.msk.f32.mxu0 %vm299_vm0, %v13929_v32 }
 0x314   : > { %10375 = vmatmul.mubr.msk.f32.gmra.mrb[22].mxu0 %vm299_vm0, %v13930_v33 }
 0x315   : > { %10377 = vmatprep.mubr.msk.f32.mxu0 %vm299_vm0, %v13931_v34 }
 0x318   : > { %10378 = vmatmul.mubr.msk.f32.gmra.mrb[24].mxu0 %vm299_vm0, %v13932_v36 }
 0x319   : > { %10380 = vmatprep.mubr.msk.f32.mxu0 %vm299_vm0, %v13933_v37 }
 0x31c   : > { %10381 = vmatmul.mubr.msk.f32.gmra.mrb[26].mxu0 %vm299_vm0, %v13934_v38 }
 0x31d   : > { %10383 = vmatprep.mubr.msk.f32.mxu0 %vm299_vm0, %v13935_v39 }
 0x320   : > { %10384 = vmatmul.mubr.msk.f32.gmra.mrb[28].mxu0 %vm299_vm0, %v13913_v46 }
 0x321   : > { %10386 = vmatprep.mubr.msk.f32.mxu0 %vm299_vm0, %v13936_v40 }
 0x324   : > { %10387 = vmatmul.mubr.msk.f32.gmra.mrb[30].mxu0 %vm299_vm0, %v13915_v35 }
 0x325   : > { %10389 = vmatprep.mubr.msk.f32.mxu0 %vm299_vm0, %v13937_v41 }
 0x328   : > { %10390 = vmatmul.mubr.msk.f32.gmra.mrb[32].mxu0 %vm299_vm0, %v13917_v63 }
 0x329   : > { %10392 = vmatprep.mubr.msk.f32.mxu0 %vm299_vm0, %v13918_v15 }
 0x32c   : > { %10393 = vmatmul.mubr.msk.f32.gmra.mrb[34].mxu0 %vm299_vm0, %v13938_v5 }
 0x32d   : > { %10395 = vmatprep.mubr.msk.f32.mxu0 %vm299_vm0, %v13920_v44 }
 0x330   : > { %10396 = vmatmul.mubr.msk.f32.gmra.mrb[36].mxu0 %vm299_vm0, %v12348_v45 }
 0x331   : > { %10398 = vmatprep.mubr.msk.f32.mxu0 %vm299_vm0, %v13939_v7 }
 0x334   : > { %10399 = vmatmul.mubr.msk.f32.gmra.mrb[38].mxu0 %vm299_vm0, %v12356_v16 }
 0x335   : > { %10401 = vmatprep.mubr.msk.f32.mxu0 %vm299_vm0, %v13922_v57 }
 0x338   : > { %10402 = vmatmul.mubr.msk.f32.gmra.mrb[40].mxu0 %vm299_vm0, %v12364_v26 }
 0x339   : > { %10404 = vmatprep.mubr.msk.f32.mxu0 %vm299_vm0, %v13940_v8 }
 0x33c   : > { %10405 = vmatmul.mubr.msk.f32.gmra.mrb[42].mxu0 %vm299_vm0, %v12370_v49 }
 0x33d   : > { %10407 = vmatprep.mubr.msk.f32.mxu0 %vm299_vm0, %v12577_v31 }
 0x340   : > { %10408 = vmatmul.mubr.msk.f32.gmra.mrb[44].mxu0 %vm299_vm0, %v12583_v24 }
 0x341   : > { %10410 = vmatprep.mubr.msk.f32.mxu0 %vm299_vm0, %v4457_v9 }
 0x344   : > { %10411 = vmatmul.mubr.msk.f32.gmra.mrb[46].mxu0 %vm299_vm0, %v4458_v10 }
 0x3db   : > { %v10367_v19 = vpop.f32.mrb[16].mxu0 }
 0x3dc   : > { %v4822_v21 = vadd.f32 %v10367_v19, %v12788_v18  ;;  %v4623_v22 = vpop.f32.mrb[17].mxu0 }
 0x3dd   : > { %v4821_v25 = vadd.f32 %v12788_v18, %v4623_v22 }
 0x3de   : > { %v4854_v45 = vmax.f32 %v4822_v21, 0.0 }
 0x3df   : > { %v4853_v16 = vmax.f32 %v4821_v25, 0.0  ;;  %v10370_v26 = vpop.f32.mrb[18].mxu0 }
 0x3e0   : > { %4959 = vst.msk [vmem:[#allocation3 + $0x30] sm:$0xff] %vm1363_vm1, %v4854_v45  ;;  %v4824_v49 = vadd.f32 %v10370_v26, %v12788_v18  ;;  %v4633_v50 = vpop.f32.mrb[19].mxu0 }
 0x3e1   : > { %4958 = vst.msk [vmem:[#allocation3 + $0x28] sm:$0xff] %vm1363_vm1, %v4853_v16  ;;  %v4823_v51 = vadd.f32 %v12788_v18, %v4633_v50 }
 0x3e2   : > { %v4856_v47 = vmax.f32 %v4824_v49, 0.0 }
 0x3e3   : > { %v4855_v4 = vmax.f32 %v4823_v51, 0.0  ;;  %v10373_v20 = vpop.f32.mrb[20].mxu0 }
 0x3e4   : > { %4961 = vst.msk [vmem:[#allocation3 + $0x50] sm:$0xff] %vm1363_vm1, %v4856_v47  ;;  %v4826_v28 = vadd.f32 %v10373_v20, %v12788_v18  ;;  %v4643_v48 = vpop.f32.mrb[21].mxu0 }
 0x3e5   : > { %4960 = vst.msk [vmem:[#allocation3 + $0x48] sm:$0xff] %vm1363_vm1, %v4855_v4  ;;  %v4825_v1 = vadd.f32 %v12788_v18, %v4643_v48 }
 0x3e6   : > { %v4858_v63 = vmax.f32 %v4826_v28, 0.0 }
 0x3e7   : > { %v4857_v15 = vmax.f32 %v4825_v1, 0.0  ;;  %v10376_v31 = vpop.f32.mrb[22].mxu0  ;;  %v12808_v57 = vld [vmem:[#allocation3 + $0x30] sm:$0xff] }
 0x3e8   : > { %4963 = vst.msk [vmem:[#allocation3 + $0x70] sm:$0xff] %vm1363_vm1, %v4858_v63  ;;  %v4828_v44 = vadd.f32 %v10376_v31, %v12788_v18  ;;  %v4653_v46 = vpop.f32.mrb[23].mxu0  ;;  %v12802_v24 = vld [vmem:[#allocation3 + $0x28] sm:$0xff] }
 0x3e9   : > { %4962 = vst.msk [vmem:[#allocation3 + $0x68] sm:$0xff] %vm1363_vm1, %v4857_v15  ;;  %v4827_v35 = vadd.f32 %v12788_v18, %v4653_v46  ;;  %10418 = vmatprep.mubr.msk.f32.mxu1 %vm1363_vm1, %v12802_v24 }
 0x3ea   : > { %v4860_v52 = vmax.f32 %v4828_v44, 0.0  ;;  %10419 = vmatmul.mubr.msk.f32.gmra.mrb[18].mxu1 %vm1363_vm1, %v12808_v57 }
 0x3eb   : > { %v4859_v53 = vmax.f32 %v4827_v35, 0.0  ;;  %v10379_v54 = vpop.f32.mrb[24].mxu0  ;;  %v12820_v60 = vld [vmem:[#allocation3 + $0x50] sm:$0xff] }
 0x3ec   : > { %4965 = vst.msk [vmem:[#allocation3 + $0x90] sm:$0xff] %vm1363_vm1, %v4860_v52  ;;  %v4830_v17 = vadd.f32 %v10379_v54, %v12788_v18  ;;  %v4663_v55 = vpop.f32.mrb[25].mxu0  ;;  %v12814_v56 = vld [vmem:[#allocation3 + $0x48] sm:$0xff] }
 0x3ed   : > { %4964 = vst.msk [vmem:[#allocation3 + $0x88] sm:$0xff] %vm1363_vm1, %v4859_v53  ;;  %v4829_v58 = vadd.f32 %v12788_v18, %v4663_v55  ;;  %10421 = vmatprep.mubr.msk.f32.mxu1 %vm1363_vm1, %v12814_v56 }
 0x3ee   : > { %v4862_v61 = vmax.f32 %v4830_v17, 0.0  ;;  %10422 = vmatmul.mubr.msk.f32.gmra.mrb[20].mxu1 %vm1363_vm1, %v12820_v60 }
 0x3ef   : > { %v4861_v0 = vmax.f32 %v4829_v58, 0.0  ;;  %v10382_v2 = vpop.f32.mrb[26].mxu0  ;;  %v12832_v6 = vld [vmem:[#allocation3 + $0x70] sm:$0xff] }
 0x3f0   : > { %4967 = vst.msk [vmem:[#allocation3 + $0xb0] sm:$0xff] %vm1363_vm1, %v4862_v61  ;;  %v4832_v3 = vadd.f32 %v10382_v2, %v12788_v18  ;;  %v4673_v43 = vpop.f32.mrb[27].mxu0  ;;  %v12826_v42 = vld [vmem:[#allocation3 + $0x68] sm:$0xff] }
 0x3f1   : > { %4966 = vst.msk [vmem:[#allocation3 + $0xa8] sm:$0xff] %vm1363_vm1, %v4861_v0  ;;  %v4831_v59 = vadd.f32 %v12788_v18, %v4673_v43  ;;  %10424 = vmatprep.mubr.msk.f32.mxu1 %vm1363_vm1, %v12826_v42 }
 0x3f2   : > { %v4864_v23 = vmax.f32 %v4832_v3, 0.0  ;;  %10425 = vmatmul.mubr.msk.f32.gmra.mrb[22].mxu1 %vm1363_vm1, %v12832_v6 }
 0x3f3   : > { %v4863_v27 = vmax.f32 %v4831_v59, 0.0  ;;  %v10385_v29 = vpop.f32.mrb[28].mxu0  ;;  %v12844_v36 = vld [vmem:[#allocation3 + $0x90] sm:$0xff] }
 0x3f4   : > { %4969 = vst.msk [vmem:[#allocation3 + $0xd0] sm:$0xff] %vm1363_vm1, %v4864_v23  ;;  %v4834_v30 = vadd.f32 %v10385_v29, %v12788_v18  ;;  %v4683_v32 = vpop.f32.mrb[29].mxu0  ;;  %v12838_v33 = vld [vmem:[#allocation3 + $0x88] sm:$0xff] }
 0x3f5   : > { %4968 = vst.msk [vmem:[#allocation3 + $0xc8] sm:$0xff] %vm1363_vm1, %v4863_v27  ;;  %v4833_v34 = vadd.f32 %v12788_v18, %v4683_v32  ;;  %10427 = vmatprep.mubr.msk.f32.mxu1 %vm1363_vm1, %v12838_v33 }
 0x3f6   : > { %v4866_v37 = vmax.f32 %v4834_v30, 0.0  ;;  %10428 = vmatmul.mubr.msk.f32.gmra.mrb[24].mxu1 %vm1363_vm1, %v12844_v36 }
 0x3f7   : > { %v4865_v38 = vmax.f32 %v4833_v34, 0.0  ;;  %v10388_v39 = vpop.f32.mrb[30].mxu0  ;;  %v12856_v8 = vld [vmem:[#allocation3 + $0xb0] sm:$0xff] }
 0x3f8   : > { %4971 = vst.msk [vmem:[#allocation3 + $0xf0] sm:$0xff] %vm1363_vm1, %v4866_v37  ;;  %v4836_v40 = vadd.f32 %v10388_v39, %v12788_v18  ;;  %v4693_v41 = vpop.f32.mrb[31].mxu0  ;;  %v12850_v5 = vld [vmem:[#allocation3 + $0xa8] sm:$0xff] }
 0x3f9   : > { %4970 = vst.msk [vmem:[#allocation3 + $0xe8] sm:$0xff] %vm1363_vm1, %v4865_v38  ;;  %v4835_v7 = vadd.f32 %v12788_v18, %v4693_v41  ;;  %10430 = vmatprep.mubr.msk.f32.mxu1 %vm1363_vm1, %v12850_v5 }
 0x3fa   : > { %v4868_v9 = vmax.f32 %v4836_v40, 0.0  ;;  %10431 = vmatmul.mubr.msk.f32.gmra.mrb[26].mxu1 %vm1363_vm1, %v12856_v8 }
 0x3fb   : > { %v4867_v10 = vmax.f32 %v4835_v7, 0.0  ;;  %v10391_v62 = vpop.f32.mrb[32].mxu0  ;;  %v12868_v21 = vld [vmem:[#allocation3 + $0xd0] sm:$0xff] }
 0x3fc   : > { %4973 = vst.msk [vmem:[#allocation3 + $0x110] sm:$0xff] %vm1363_vm1, %v4868_v9  ;;  %v4838_v11 = vadd.f32 %v10391_v62, %v12788_v18  ;;  %v4703_v12 = vpop.f32.mrb[33].mxu0  ;;  %v12862_v13 = vld [vmem:[#allocation3 + $0xc8] sm:$0xff] }
 0x3fd   : > { %4972 = vst.msk [vmem:[#allocation3 + $0x108] sm:$0xff] %vm1363_vm1, %v4867_v10  ;;  %v4837_v19 = vadd.f32 %v12788_v18, %v4703_v12  ;;  %10433 = vmatprep.mubr.msk.f32.mxu1 %vm1363_vm1, %v12862_v13 }
 0x3fe   : > { %v4870_v22 = vmax.f32 %v4838_v11, 0.0  ;;  %10434 = vmatmul.mubr.msk.f32.gmra.mrb[28].mxu1 %vm1363_vm1, %v12868_v21 }
 0x3ff   : > { %v4869_v25 = vmax.f32 %v4837_v19, 0.0  ;;  %v10394_v45 = vpop.f32.mrb[34].mxu0  ;;  %v12880_v51 = vld [vmem:[#allocation3 + $0xf0] sm:$0xff] }
 0x400   : > { %4975 = vst.msk [vmem:[#allocation3 + $0x130] sm:$0xff] %vm1363_vm1, %v4870_v22  ;;  %v4840_v16 = vadd.f32 %v10394_v45, %v12788_v18  ;;  %v4713_v26 = vpop.f32.mrb[35].mxu0  ;;  %v12874_v49 = vld [vmem:[#allocation3 + $0xe8] sm:$0xff] }
 0x401   : > { %4974 = vst.msk [vmem:[#allocation3 + $0x128] sm:$0xff] %vm1363_vm1, %v4869_v25  ;;  %v4839_v50 = vadd.f32 %v12788_v18, %v4713_v26  ;;  %10436 = vmatprep.mubr.msk.f32.mxu1 %vm1363_vm1, %v12874_v49 }
 0x402   : > { %v4872_v47 = vmax.f32 %v4840_v16, 0.0  ;;  %10437 = vmatmul.mubr.msk.f32.gmra.mrb[30].mxu1 %vm1363_vm1, %v12880_v51 }
 0x403   : > { %v4871_v4 = vmax.f32 %v4839_v50, 0.0  ;;  %v10397_v20 = vpop.f32.mrb[36].mxu0  ;;  %v12892_v15 = vld [vmem:[#allocation3 + $0x110] sm:$0xff] }
 0x404   : > { %4977 = vst.msk [vmem:[#allocation3 + $0x150] sm:$0xff] %vm1363_vm1, %v4872_v47  ;;  %v4842_v28 = vadd.f32 %v10397_v20, %v12788_v18  ;;  %v4723_v48 = vpop.f32.mrb[37].mxu0  ;;  %v12886_v1 = vld [vmem:[#allocation3 + $0x108] sm:$0xff] }
 0x405   : > { %4976 = vst.msk [vmem:[#allocation3 + $0x148] sm:$0xff] %vm1363_vm1, %v4871_v4  ;;  %v4841_v63 = vadd.f32 %v12788_v18, %v4723_v48  ;;  %10439 = vmatprep.mubr.msk.f32.mxu1 %vm1363_vm1, %v12886_v1  ;;  %v4990_v48 = vld [vmem:[#allocation3 + $0x7] sm:$0xff] }
 0x406   : > { %v4874_v31 = vmax.f32 %v4842_v28, 0.0  ;;  %10440 = vmatmul.mubr.msk.f32.gmra.mrb[32].mxu1 %vm1363_vm1, %v12892_v15 }
 0x407   : > { %v4873_v44 = vmax.f32 %v4841_v63, 0.0  ;;  %v10400_v46 = vpop.f32.mrb[38].mxu0  ;;  %v12904_v17 = vld [vmem:[#allocation3 + $0x130] sm:$0xff] }
 0x408   : > { %4979 = vst.msk [vmem:[#allocation3 + $0x170] sm:$0xff] %vm1363_vm1, %v4874_v31  ;;  %v4844_v35 = vadd.f32 %v10400_v46, %v12788_v18  ;;  %v4733_v52 = vpop.f32.mrb[39].mxu0  ;;  %v12898_v53 = vld [vmem:[#allocation3 + $0x128] sm:$0xff] }
 0x409   : > { %4978 = vst.msk [vmem:[#allocation3 + $0x168] sm:$0xff] %vm1363_vm1, %v4873_v44  ;;  %v4843_v54 = vadd.f32 %v12788_v18, %v4733_v52  ;;  %10442 = vmatprep.mubr.msk.f32.mxu1 %vm1363_vm1, %v12898_v53  ;;  %v4991_v31 = vld [vmem:[#allocation3 + $0xf] sm:$0xff]  ;;  %v12981_v46 = vld [vmem:[#allocation3 + $0x27] sm:$0xff] }
 0x40a   : > { %v4876_v55 = vmax.f32 %v4844_v35, 0.0  ;;  %10443 = vmatmul.mubr.msk.f32.gmra.mrb[34].mxu1 %vm1363_vm1, %v12904_v17  ;;  %v12978_v44 = vld [vmem:[%s13754_s5 + $0xc] sm:$0xf] }
 0x40b   : > { %v4875_v58 = vmax.f32 %v4843_v54, 0.0  ;;  %v10403_v61 = vpop.f32.mrb[40].mxu0  ;;  %v12916_v59 = vld [vmem:[#allocation3 + $0x150] sm:$0xff]  ;;  %v12993_v52 = vld [vmem:[#allocation3 + $0x47] sm:$0xff] }
 0x40c   : > { %4981 = vst.msk [vmem:[#allocation3 + $0x190] sm:$0xff] %vm1363_vm1, %v4876_v55  ;;  %v4846_v0 = vadd.f32 %v10403_v61, %v12788_v18  ;;  %v4743_v2 = vpop.f32.mrb[41].mxu0  ;;  %v12910_v3 = vld [vmem:[#allocation3 + $0x148] sm:$0xff] }
 0x40d   : > { %4980 = vst.msk [vmem:[#allocation3 + $0x188] sm:$0xff] %vm1363_vm1, %v4875_v58  ;;  %v4845_v43 = vadd.f32 %v12788_v18, %v4743_v2  ;;  %10445 = vmatprep.mubr.msk.f32.mxu1 %vm1363_vm1, %v12910_v3  ;;  %v12989_v35 = vld [vmem:[#allocation3 + $0x2f] sm:$0xff]  ;;  %v13001_v55 = vld [vmem:[#allocation3 + $0x67] sm:$0xff] }
 0x40e   : > { %v4878_v23 = vmax.f32 %v4846_v0, 0.0  ;;  %10446 = vmatmul.mubr.msk.f32.gmra.mrb[36].mxu1 %vm1363_vm1, %v12916_v59  ;;  %v12997_v54 = vld [vmem:[#allocation3 + $0x4f] sm:$0xff]  ;;  %v13009_v58 = vld [vmem:[#allocation3 + $0x87] sm:$0xff] }
 0x40f   : > { %v4877_v27 = vmax.f32 %v4845_v43, 0.0  ;;  %v10406_v29 = vpop.f32.mrb[42].mxu0  ;;  %v12928_v38 = vld [vmem:[#allocation3 + $0x170] sm:$0xff]  ;;  %v13017_v0 = vld [vmem:[#allocation3 + $0xa7] sm:$0xff] }
 0x410   : > { %4983 = vst.msk [vmem:[#allocation3 + $0x1b0] sm:$0xff] %vm1363_vm1, %v4878_v23  ;;  %v4848_v30 = vadd.f32 %v10406_v29, %v12788_v18  ;;  %v4753_v32 = vpop.f32.mrb[43].mxu0  ;;  %v12922_v34 = vld [vmem:[#allocation3 + $0x168] sm:$0xff] }
 0x411   : > { %4982 = vst.msk [vmem:[#allocation3 + $0x1a8] sm:$0xff] %vm1363_vm1, %v4877_v27  ;;  %v4847_v37 = vadd.f32 %v12788_v18, %v4753_v32  ;;  %10448 = vmatprep.mubr.msk.f32.mxu1 %vm1363_vm1, %v12922_v34  ;;  %v13013_v61 = vld [vmem:[#allocation3 + $0x8f] sm:$0xff]  ;;  %v13025_v43 = vld [vmem:[#allocation3 + $0xc7] sm:$0xff] }
 0x412   : > { %v4880_v39 = vmax.f32 %v4848_v30, 0.0  ;;  %10449 = vmatmul.mubr.msk.f32.gmra.mrb[38].mxu1 %vm1363_vm1, %v12928_v38  ;;  %v13021_v2 = vld [vmem:[#allocation3 + $0xaf] sm:$0xff]  ;;  %v13033_v27 = vld [vmem:[#allocation3 + $0xe7] sm:$0xff] }
 0x413   : > { %v4879_v40 = vmax.f32 %v4847_v37, 0.0  ;;  %v10409_v41 = vpop.f32.mrb[44].mxu0  ;;  %v12940_v11 = vld [vmem:[#allocation3 + $0x190] sm:$0xff]  ;;  %v13041_v30 = vld [vmem:[#allocation3 + $0x107] sm:$0xff] }
 0x414   : > { %4985 = vst.msk [vmem:[#allocation3 + $0x1d0] sm:$0xff] %vm1363_vm1, %v4880_v39  ;;  %v4850_v7 = vadd.f32 %v10409_v41, %v12788_v18  ;;  %v4763_v9 = vpop.f32.mrb[45].mxu0  ;;  %v12934_v10 = vld [vmem:[#allocation3 + $0x188] sm:$0xff] }
 0x415   : > { %4984 = vst.msk [vmem:[#allocation3 + $0x1c8] sm:$0xff] %vm1363_vm1, %v4879_v40  ;;  %v4849_v62 = vadd.f32 %v12788_v18, %v4763_v9  ;;  %10451 = vmatprep.mubr.msk.f32.mxu1 %vm1363_vm1, %v12934_v10  ;;  %v13029_v23 = vld [vmem:[#allocation3 + $0xcf] sm:$0xff]  ;;  %v13049_v37 = vld [vmem:[#allocation3 + $0x127] sm:$0xff] }
 0x416   : > { %v4882_v12 = vmax.f32 %v4850_v7, 0.0  ;;  %10452 = vmatmul.mubr.msk.f32.gmra.mrb[40].mxu1 %vm1363_vm1, %v12940_v11  ;;  %v13037_v29 = vld [vmem:[#allocation3 + $0xef] sm:$0xff]  ;;  %v13057_v40 = vld [vmem:[#allocation3 + $0x147] sm:$0xff] }
 0x417   : > { %v4881_v19 = vmax.f32 %v4849_v62, 0.0  ;;  %v10412_v22 = vpop.f32.mrb[46].mxu0  ;;  %v12952_v50 = vld [vmem:[#allocation3 + $0x1b0] sm:$0xff]  ;;  %v13065_v7 = vld [vmem:[#allocation3 + $0x167] sm:$0xff] }
 0x418   : > { %4987 = vst.msk [vmem:[#allocation3 + $0x1f0] sm:$0xff] %vm1363_vm1, %v4882_v12  ;;  %v4852_v25 = vadd.f32 %v10412_v22, %v12788_v18  ;;  %v4773_v45 = vpop.f32.mrb[47].mxu0  ;;  %v12946_v16 = vld [vmem:[#allocation3 + $0x1a8] sm:$0xff] }
 0x419   : > { %4986 = vst.msk [vmem:[#allocation3 + $0x1e8] sm:$0xff] %vm1363_vm1, %v4881_v19  ;;  %v4851_v26 = vadd.f32 %v12788_v18, %v4773_v45  ;;  %10454 = vmatprep.mubr.msk.f32.mxu1 %vm1363_vm1, %v12946_v16  ;;  %v13045_v32 = vld [vmem:[#allocation3 + $0x10f] sm:$0xff]  ;;  %v13073_v62 = vld [vmem:[#allocation3 + $0x187] sm:$0xff] }
 0x41a   : > { %v4884_v47 = vmax.f32 %v4852_v25, 0.0  ;;  %10455 = vmatmul.mubr.msk.f32.gmra.mrb[42].mxu1 %vm1363_vm1, %v12952_v50  ;;  %v13053_v39 = vld [vmem:[#allocation3 + $0x12f] sm:$0xff]  ;;  %v13081_v19 = vld [vmem:[#allocation3 + $0x1a7] sm:$0xff] }
 0x41b   : > { %v4883_v4 = vmax.f32 %v4851_v26, 0.0  ;;  %v12962_v18 = vld [vmem:[#allocation3 + $0x1d0] sm:$0xff] }
 0x41c   : > { %4989 = vst.msk [vmem:[#allocation3 + $0x210] sm:$0xff] %vm1363_vm1, %v4884_v47  ;;  %v12957_v20 = vld [vmem:[#allocation3 + $0x1c8] sm:$0xff] }
 0x41d   : > { %4988 = vst.msk [vmem:[#allocation3 + $0x208] sm:$0xff] %vm1363_vm1, %v4883_v4  ;;  %10457 = vmatprep.mubr.msk.f32.mxu1 %vm1363_vm1, %v12957_v20  ;;  %v13061_v41 = vld [vmem:[#allocation3 + $0x14f] sm:$0xff]  ;;  %v13089_v25 = vld [vmem:[#allocation3 + $0x1c7] sm:$0xff] }
 0x41e   : > { %10458 = vmatmul.mubr.msk.f32.gmra.mrb[44].mxu1 %vm1363_vm1, %v12962_v18  ;;  %v13069_v9 = vld [vmem:[#allocation3 + $0x16f] sm:$0xff] }
 0x41f   : > { %v12970_v63 = vld [vmem:[#allocation3 + $0x1f0] sm:$0xff] }
 0x420   : > { %v12966_v28 = vld [vmem:[#allocation3 + $0x1e8] sm:$0xff]  ;;  %13942 = vst [vmem:[#allocation5_spill] sm:$0xff] %v12970_v63 }
 0x421   : > { %13941 = vst [vmem:[#allocation4_spill] sm:$0xff] %v12966_v28  ;;  %10460 = vmatprep.mubr.msk.f32.mxu1 %vm1363_vm1, %v12966_v28  ;;  %v13077_v12 = vld [vmem:[#allocation3 + $0x18f] sm:$0xff]  ;;  %v13097_v26 = vld [vmem:[#allocation3 + $0x1e7] sm:$0xff] }
 0x422   : > { %10461 = vmatmul.mubr.msk.f32.gmra.mrb[46].mxu1 %vm1363_vm1, %v12970_v63  ;;  %v13085_v22 = vld [vmem:[#allocation3 + $0x1af] sm:$0xff] }
 0x423   : > { %10465 = vmatprep.mubr.msk.f32.mxu1 %vm1363_vm1, %v4990_v48  ;;  %v13093_v45 = vld [vmem:[#allocation3 + $0x1cf] sm:$0xff] }
 0x424   : > { %v5706_v47 = vld [vmem:[#allocation3 + $0x9] sm:$0xff]  ;;  %v5707_v48 = vld [vmem:[#allocation3 + $0x11] sm:$0xff] }
 0x425   : > { %v13101_v4 = vld [vmem:[#allocation3 + $0x1ef] sm:$0xff] }
 0x426   : > { %10466 = vmatmul.mubr.msk.f32.vlgmr.msra.gmra.mrb[16].mxu1 %vm1363_vm1, %v4991_v31  ;;  %v13109_v31 = vld [vmem:[%s13754_s5 + $0x10] sm:$0xf] }
 0x427   : > { %10468 = vmatprep.mubr.msk.f32.mxu1 %vm1363_vm1, %v12981_v46  ;;  %10514 = vmatpush3.msk.msra.mxu1 %vm5153_vm2, %v12781_v14  ;;  %v13005_v14 = vld [vmem:[#allocation3 + $0x6f] sm:$0xff] }
 0x428   : > { %10563 = vmatprep.subr.msk.mxu1 %vm5153_vm2, %v12978_v44  ;;  %v13112_v63 = vld [vmem:[#allocation3 + $0x29] sm:$0xff] }
 0x429   : > { %13943 = vst [vmem:[#allocation7_spill] sm:$0xff] %v13112_v63  ;;  %v13124_v28 = vld [vmem:[#allocation3 + $0x49] sm:$0xff] }
 0x42a   : > { %10469 = vmatmul.mubr.msk.f32.gmra.mrb[18].mxu1 %vm1363_vm1, %v12989_v35  ;;  %13945 = vst [vmem:[#allocation8_spill] sm:$0xff] %v13124_v28 }
 0x42b   : > { %10471 = vmatprep.mubr.msk.f32.mxu1 %vm1363_vm1, %v12993_v52 }
 0x42e   : > { %10472 = vmatmul.mubr.msk.f32.gmra.mrb[20].mxu1 %vm1363_vm1, %v12997_v54 }
 0x42f   : > { %10474 = vmatprep.mubr.msk.f32.mxu1 %vm1363_vm1, %v13001_v55 }
 0x432   : > { %10475 = vmatmul.mubr.msk.f32.gmra.mrb[22].mxu1 %vm1363_vm1, %v13005_v14 }
 0x433   : > { %10477 = vmatprep.mubr.msk.f32.mxu1 %vm1363_vm1, %v13009_v58 }
 0x436   : > { %10478 = vmatmul.mubr.msk.f32.gmra.mrb[24].mxu1 %vm1363_vm1, %v13013_v61 }
 0x437   : > { %10480 = vmatprep.mubr.msk.f32.mxu1 %vm1363_vm1, %v13017_v0 }
 0x43a   : > { %10481 = vmatmul.mubr.msk.f32.gmra.mrb[26].mxu1 %vm1363_vm1, %v13021_v2 }
 0x43b   : > { %10483 = vmatprep.mubr.msk.f32.mxu1 %vm1363_vm1, %v13025_v43 }
 0x43e   : > { %10484 = vmatmul.mubr.msk.f32.gmra.mrb[28].mxu1 %vm1363_vm1, %v13029_v23 }
 0x43f   : > { %10486 = vmatprep.mubr.msk.f32.mxu1 %vm1363_vm1, %v13033_v27 }
 0x442   : > { %10487 = vmatmul.mubr.msk.f32.gmra.mrb[30].mxu1 %vm1363_vm1, %v13037_v29 }
 0x443   : > { %10489 = vmatprep.mubr.msk.f32.mxu1 %vm1363_vm1, %v13041_v30 }
 0x446   : > { %10490 = vmatmul.mubr.msk.f32.gmra.mrb[32].mxu1 %vm1363_vm1, %v13045_v32 }
 0x447   : > { %10492 = vmatprep.mubr.msk.f32.mxu1 %vm1363_vm1, %v13049_v37 }
 0x44a   : > { %10493 = vmatmul.mubr.msk.f32.gmra.mrb[34].mxu1 %vm1363_vm1, %v13053_v39 }
 0x44b   : > { %10495 = vmatprep.mubr.msk.f32.mxu1 %vm1363_vm1, %v13057_v40 }
 0x44e   : > { %10496 = vmatmul.mubr.msk.f32.gmra.mrb[36].mxu1 %vm1363_vm1, %v13061_v41 }
 0x44f   : > { %10498 = vmatprep.mubr.msk.f32.mxu1 %vm1363_vm1, %v13065_v7 }
 0x452   : > { %10499 = vmatmul.mubr.msk.f32.gmra.mrb[38].mxu1 %vm1363_vm1, %v13069_v9 }
 0x453   : > { %10501 = vmatprep.mubr.msk.f32.mxu1 %vm1363_vm1, %v13073_v62 }
 0x456   : > { %10502 = vmatmul.mubr.msk.f32.gmra.mrb[40].mxu1 %vm1363_vm1, %v13077_v12 }
 0x457   : > { %10504 = vmatprep.mubr.msk.f32.mxu1 %vm1363_vm1, %v13081_v19 }
 0x45a   : > { %10505 = vmatmul.mubr.msk.f32.gmra.mrb[42].mxu1 %vm1363_vm1, %v13085_v22 }
 0x45b   : > { %10507 = vmatprep.mubr.msk.f32.mxu1 %vm1363_vm1, %v13089_v25 }
 0x45e   : > { %10508 = vmatmul.mubr.msk.f32.gmra.mrb[44].mxu1 %vm1363_vm1, %v13093_v45 }
 0x45f   : > { %10510 = vmatprep.mubr.msk.f32.mxu1 %vm1363_vm1, %v13097_v26 }
 0x462   : > { %10511 = vmatmul.mubr.msk.f32.gmra.mrb[46].mxu1 %vm1363_vm1, %v13101_v4 }
 0x463   : > { %10515 = vmatprep.mubr.msk.f32.mxu1 %vm1363_vm1, %v5706_v47  ;;  %v13120_v47 = vld [vmem:[#allocation3 + $0x31] sm:$0xff] }
 0x464   : > { %13944 = vst [vmem:[#allocation9_spill] sm:$0xff] %v13120_v47 }
 0x466   : > { %10516 = vmatmul.mubr.msk.f32.vlgmr.msra.gmra.mrb[16].mxu1 %vm1363_vm1, %v5707_v48  ;;  %v13128_v48 = vld [vmem:[#allocation3 + $0x51] sm:$0xff] }
 0x467   : > { %10518 = vmatprep.mubr.msk.f32.mxu1 %vm1363_vm1, %v13112_v63  ;;  %10564 = vmatpush3.msk.msra.mxu1 %vm5153_vm2, %v12978_v44  ;;  %13946 = vst [vmem:[#allocation23_spill] sm:$0xff] %v13128_v48  ;;  %v13132_v63 = vld [vmem:[#allocation3 + $0x69] sm:$0xff]  ;;  %v13136_v44 = vld [vmem:[#allocation3 + $0x71] sm:$0xff] }
 0x468   : > { %10613 = vmatprep.subr.msk.mxu1 %vm5153_vm2, %v13109_v31  ;;  %13947 = vst [vmem:[#allocation25_spill] sm:$0xff] %v13132_v63  ;;  %13948 = vst [vmem:[#allocation27_spill] sm:$0xff] %v13136_v44 }
 0x46a   : > { %10519 = vmatmul.mubr.msk.f32.gmra.mrb[18].mxu1 %vm1363_vm1, %v13120_v47  ;;  %v13140_v47 = vld [vmem:[#allocation3 + $0x89] sm:$0xff] }
 0x46b   : > { %10521 = vmatprep.mubr.msk.f32.mxu1 %vm1363_vm1, %v13124_v28  ;;  %13949 = vst [vmem:[#allocation26_spill] sm:$0xff] %v13140_v47  ;;  %v13144_v28 = vld [vmem:[#allocation3 + $0x91] sm:$0xff] }
 0x46c   : > { %13950 = vst [vmem:[#allocation28_spill] sm:$0xff] %v13144_v28 }
 0x46e   : > { %10522 = vmatmul.mubr.msk.f32.gmra.mrb[20].mxu1 %vm1363_vm1, %v13128_v48  ;;  %v13148_v48 = vld [vmem:[#allocation3 + $0xa9] sm:$0xff] }
 0x46f   : > { %10524 = vmatprep.mubr.msk.f32.mxu1 %vm1363_vm1, %v13132_v63  ;;  %13951 = vst [vmem:[#allocation31_spill] sm:$0xff] %v13148_v48  ;;  %v13152_v63 = vld [vmem:[#allocation3 + $0xb1] sm:$0xff] }
 0x470   : > { %13952 = vst [vmem:[#allocation6_spill] sm:$0xff] %v13152_v63 }
 0x472   : > { %10525 = vmatmul.mubr.msk.f32.gmra.mrb[22].mxu1 %vm1363_vm1, %v13136_v44  ;;  %v13156_v44 = vld [vmem:[#allocation3 + $0xc9] sm:$0xff] }
 0x473   : > { %10527 = vmatprep.mubr.msk.f32.mxu1 %vm1363_vm1, %v13140_v47  ;;  %13953 = vst [vmem:[#allocation11_spill] sm:$0xff] %v13156_v44  ;;  %v13160_v47 = vld [vmem:[#allocation3 + $0xd1] sm:$0xff] }
 0x474   : > { %13954 = vst [vmem:[#allocation10_spill] sm:$0xff] %v13160_v47 }
 0x476   : > { %10528 = vmatmul.mubr.msk.f32.gmra.mrb[24].mxu1 %vm1363_vm1, %v13144_v28  ;;  %v13164_v28 = vld [vmem:[#allocation3 + $0xe9] sm:$0xff] }
 0x477   : > { %10530 = vmatprep.mubr.msk.f32.mxu1 %vm1363_vm1, %v13148_v48  ;;  %13955 = vst [vmem:[#allocation13_spill] sm:$0xff] %v13164_v28  ;;  %v13168_v48 = vld [vmem:[#allocation3 + $0xf1] sm:$0xff] }
 0x478   : > { %13956 = vst [vmem:[#allocation12_spill] sm:$0xff] %v13168_v48 }
 0x47a   : > { %10531 = vmatmul.mubr.msk.f32.gmra.mrb[26].mxu1 %vm1363_vm1, %v13152_v63  ;;  %v13172_v63 = vld [vmem:[#allocation3 + $0x109] sm:$0xff] }
 0x47b   : > { %10533 = vmatprep.mubr.msk.f32.mxu1 %vm1363_vm1, %v13156_v44  ;;  %13957 = vst [vmem:[#allocation15_spill] sm:$0xff] %v13172_v63  ;;  %v13176_v44 = vld [vmem:[#allocation3 + $0x111] sm:$0xff] }
 0x47c   : > { %13958 = vst [vmem:[#allocation14_spill] sm:$0xff] %v13176_v44 }
 0x47e   : > { %10534 = vmatmul.mubr.msk.f32.gmra.mrb[28].mxu1 %vm1363_vm1, %v13160_v47  ;;  %v13180_v47 = vld [vmem:[#allocation3 + $0x129] sm:$0xff] }
 0x47f   : > { %10536 = vmatprep.mubr.msk.f32.mxu1 %vm1363_vm1, %v13164_v28  ;;  %13959 = vst [vmem:[#allocation17_spill] sm:$0xff] %v13180_v47  ;;  %v13184_v28 = vld [vmem:[#allocation3 + $0x131] sm:$0xff] }
 0x480   : > { %13960 = vst [vmem:[#allocation16_spill] sm:$0xff] %v13184_v28 }
 0x482   : > { %10537 = vmatmul.mubr.msk.f32.gmra.mrb[30].mxu1 %vm1363_vm1, %v13168_v48  ;;  %v13188_v48 = vld [vmem:[#allocation3 + $0x149] sm:$0xff] }
 0x483   : > { %10539 = vmatprep.mubr.msk.f32.mxu1 %vm1363_vm1, %v13172_v63  ;;  %13961 = vst [vmem:[#allocation19_spill] sm:$0xff] %v13188_v48  ;;  %v13192_v63 = vld [vmem:[#allocation3 + $0x151] sm:$0xff] }
 0x484   : > { %13962 = vst [vmem:[#allocation18_spill] sm:$0xff] %v13192_v63 }
 0x486   : > { %10540 = vmatmul.mubr.msk.f32.gmra.mrb[32].mxu1 %vm1363_vm1, %v13176_v44  ;;  %v13196_v44 = vld [vmem:[#allocation3 + $0x169] sm:$0xff] }
 0x487   : > { %10542 = vmatprep.mubr.msk.f32.mxu1 %vm1363_vm1, %v13180_v47  ;;  %13963 = vst [vmem:[#allocation21_spill] sm:$0xff] %v13196_v44  ;;  %v13200_v47 = vld [vmem:[#allocation3 + $0x171] sm:$0xff] }
 0x488   : > { %13964 = vst [vmem:[#allocation20_spill] sm:$0xff] %v13200_v47 }
 0x48a   : > { %10543 = vmatmul.mubr.msk.f32.gmra.mrb[34].mxu1 %vm1363_vm1, %v13184_v28  ;;  %v13204_v28 = vld [vmem:[#allocation3 + $0x189] sm:$0xff] }
 0x48b   : > { %10545 = vmatprep.mubr.msk.f32.mxu1 %vm1363_vm1, %v13188_v48  ;;  %13965 = vst [vmem:[#allocation22_spill] sm:$0xff] %v13204_v28  ;;  %v13208_v48 = vld [vmem:[#allocation3 + $0x191] sm:$0xff] }
 0x48c   : > { %13966 = vst [vmem:[#allocation24_spill] sm:$0xff] %v13208_v48 }
 0x48e   : > { %10546 = vmatmul.mubr.msk.f32.gmra.mrb[36].mxu1 %vm1363_vm1, %v13192_v63  ;;  %v13212_v63 = vld [vmem:[#allocation3 + $0x1a9] sm:$0xff] }
 0x48f   : > { %10548 = vmatprep.mubr.msk.f32.mxu1 %vm1363_vm1, %v13196_v44  ;;  %13967 = vst [vmem:[#allocation29_spill] sm:$0xff] %v13212_v63  ;;  %v13216_v44 = vld [vmem:[#allocation3 + $0x1b1] sm:$0xff] }
 0x492   : > { %10549 = vmatmul.mubr.msk.f32.gmra.mrb[38].mxu1 %vm1363_vm1, %v13200_v47  ;;  %v13220_v47 = vld [vmem:[#allocation3 + $0x1c9] sm:$0xff] }
 0x493   : > { %10551 = vmatprep.mubr.msk.f32.mxu1 %vm1363_vm1, %v13204_v28  ;;  %13968 = vst [vmem:[#allocation30_spill] sm:$0xff] %v13220_v47  ;;  %v13224_v28 = vld [vmem:[#allocation3 + $0x1d1] sm:$0xff] }
 0x496   : > { %10552 = vmatmul.mubr.msk.f32.gmra.mrb[40].mxu1 %vm1363_vm1, %v13208_v48  ;;  %v13228_v48 = vld [vmem:[#allocation3 + $0x1e9] sm:$0xff] }
 0x497   : > { %10554 = vmatprep.mubr.msk.f32.mxu1 %vm1363_vm1, %v13212_v63  ;;  %13969 = vst [vmem:[#allocation32_spill] sm:$0xff] %v13228_v48  ;;  %v13232_v63 = vld [vmem:[#allocation3 + $0x1f1] sm:$0xff] }
 0x49a   : > { %10555 = vmatmul.mubr.msk.f32.gmra.mrb[42].mxu1 %vm1363_vm1, %v13216_v44 }
 0x49b   : > { %10557 = vmatprep.mubr.msk.f32.mxu1 %vm1363_vm1, %v13220_v47  ;;  %v9123_v47 = vld [vmem:[%s13754_s5 + $0x14] sm:$0xf] }
 0x49e   : > { %10558 = vmatmul.mubr.msk.f32.gmra.mrb[44].mxu1 %vm1363_vm1, %v13224_v28 }
 0x49f   : > { %10560 = vmatprep.mubr.msk.f32.mxu1 %vm1363_vm1, %v13228_v48 }
 0x4a2   : > { %10561 = vmatmul.mubr.msk.f32.gmra.mrb[46].mxu1 %vm1363_vm1, %v13232_v63 }
 0x4a3   : > { %10565 = vmatprep.mubr.msk.f32.mxu1 %vm1363_vm1, %v12981_v46  ;;  %v13302_v46 = vld [vmem:[#allocation3 + $0x207] sm:$0xff] }
 0x4a6   : > { %10566 = vmatmul.mubr.msk.f32.vlgmr.msra.gmra.mrb[16].mxu1 %vm1363_vm1, %v12989_v35  ;;  %v13306_v35 = vld [vmem:[#allocation3 + $0x20f] sm:$0xff] }
 0x4a7   : > { %10568 = vmatprep.mubr.msk.f32.mxu1 %vm1363_vm1, %v12993_v52  ;;  %10614 = vmatpush3.msk.msra.mxu1 %vm5153_vm2, %v13109_v31  ;;  %v9157_v31 = vld [vmem:[%s13754_s5 + $0x18] sm:$0xf] }
 0x4a8   : > { %10663 = vmatprep.subr.msk.mxu1 %vm5153_vm2, %v9123_v47 }
 0x4aa   : > { %10569 = vmatmul.mubr.msk.f32.gmra.mrb[18].mxu1 %vm1363_vm1, %v12997_v54 }
 0x4ab   : > { %10571 = vmatprep.mubr.msk.f32.mxu1 %vm1363_vm1, %v13001_v55 }
 0x4ae   : > { %10572 = vmatmul.mubr.msk.f32.gmra.mrb[20].mxu1 %vm1363_vm1, %v13005_v14 }
 0x4af   : > { %10574 = vmatprep.mubr.msk.f32.mxu1 %vm1363_vm1, %v13009_v58 }
 0x4b2   : > { %10575 = vmatmul.mubr.msk.f32.gmra.mrb[22].mxu1 %vm1363_vm1, %v13013_v61 }
 0x4b3   : > { %10577 = vmatprep.mubr.msk.f32.mxu1 %vm1363_vm1, %v13017_v0 }
 0x4b6   : > { %10578 = vmatmul.mubr.msk.f32.gmra.mrb[24].mxu1 %vm1363_vm1, %v13021_v2 }
 0x4b7   : > { %10580 = vmatprep.mubr.msk.f32.mxu1 %vm1363_vm1, %v13025_v43 }
 0x4ba   : > { %10581 = vmatmul.mubr.msk.f32.gmra.mrb[26].mxu1 %vm1363_vm1, %v13029_v23 }
 0x4bb   : > { %10583 = vmatprep.mubr.msk.f32.mxu1 %vm1363_vm1, %v13033_v27 }
 0x4be   : > { %10584 = vmatmul.mubr.msk.f32.gmra.mrb[28].mxu1 %vm1363_vm1, %v13037_v29 }
 0x4bf   : > { %10586 = vmatprep.mubr.msk.f32.mxu1 %vm1363_vm1, %v13041_v30 }
 0x4c2   : > { %10587 = vmatmul.mubr.msk.f32.gmra.mrb[30].mxu1 %vm1363_vm1, %v13045_v32 }
 0x4c3   : > { %10589 = vmatprep.mubr.msk.f32.mxu1 %vm1363_vm1, %v13049_v37 }
 0x4c6   : > { %10590 = vmatmul.mubr.msk.f32.gmra.mrb[32].mxu1 %vm1363_vm1, %v13053_v39 }
 0x4c7   : > { %10592 = vmatprep.mubr.msk.f32.mxu1 %vm1363_vm1, %v13057_v40 }
 0x4ca   : > { %10593 = vmatmul.mubr.msk.f32.gmra.mrb[34].mxu1 %vm1363_vm1, %v13061_v41 }
 0x4cb   : > { %10595 = vmatprep.mubr.msk.f32.mxu1 %vm1363_vm1, %v13065_v7 }
 0x4ce   : > { %10596 = vmatmul.mubr.msk.f32.gmra.mrb[36].mxu1 %vm1363_vm1, %v13069_v9 }
 0x4cf   : > { %10598 = vmatprep.mubr.msk.f32.mxu1 %vm1363_vm1, %v13073_v62 }
 0x4d2   : > { %10599 = vmatmul.mubr.msk.f32.gmra.mrb[38].mxu1 %vm1363_vm1, %v13077_v12 }
 0x4d3   : > { %10601 = vmatprep.mubr.msk.f32.mxu1 %vm1363_vm1, %v13081_v19 }
 0x4d6   : > { %10602 = vmatmul.mubr.msk.f32.gmra.mrb[40].mxu1 %vm1363_vm1, %v13085_v22 }
 0x4d7   : > { %10604 = vmatprep.mubr.msk.f32.mxu1 %vm1363_vm1, %v13089_v25 }
 0x4da   : > { %10605 = vmatmul.mubr.msk.f32.gmra.mrb[42].mxu1 %vm1363_vm1, %v13093_v45 }
 0x4db   : > { %10607 = vmatprep.mubr.msk.f32.mxu1 %vm1363_vm1, %v13097_v26 }
 0x4de   : > { %10608 = vmatmul.mubr.msk.f32.gmra.mrb[44].mxu1 %vm1363_vm1, %v13101_v4 }
 0x4df   : > { %10610 = vmatprep.mubr.msk.f32.mxu1 %vm1363_vm1, %v13302_v46 }
 0x4e2   : > { %10611 = vmatmul.mubr.msk.f32.gmra.mrb[46].mxu1 %vm1363_vm1, %v13306_v35 }
 0x4e3   : > { %10615 = vmatprep.mubr.msk.f32.mxu1 %vm1363_vm1, %v12802_v24  ;;  %v13970_v24 = vld [vmem:[#allocation4_spill] sm:$0xff] }
 0x4e6   : > { %10616 = vmatmul.mubr.msk.f32.vlgmr.msra.gmra.mrb[16].mxu1 %vm1363_vm1, %v12808_v57  ;;  %v13971_v57 = vld [vmem:[#allocation5_spill] sm:$0xff] }
 0x4e7   : > { %10618 = vmatprep.mubr.msk.f32.mxu1 %vm1363_vm1, %v12814_v56  ;;  %10664 = vmatpush3.msk.msra.mxu1 %vm5153_vm2, %v9123_v47  ;;  %v13375_v56 = vld [vmem:[#allocation3 + $0x208] sm:$0xff]  ;;  %v13979_v47 = vld [vmem:[#allocation28_spill] sm:$0xff] }
 0x4e8   : > { %10713 = vmatprep.subr.msk.mxu1 %vm5153_vm2, %v9157_v31 }
 0x4ea   : > { %10619 = vmatmul.mubr.msk.f32.gmra.mrb[18].mxu1 %vm1363_vm1, %v12820_v60  ;;  %v13379_v60 = vld [vmem:[#allocation3 + $0x210] sm:$0xff] }
 0x4eb   : > { %10621 = vmatprep.mubr.msk.f32.mxu1 %vm1363_vm1, %v12826_v42  ;;  %v13972_v42 = vld [vmem:[#allocation7_spill] sm:$0xff] }
 0x4ee   : > { %10622 = vmatmul.mubr.msk.f32.gmra.mrb[20].mxu1 %vm1363_vm1, %v12832_v6  ;;  %v9191_v6 = vld [vmem:[%s13754_s5 + $0x1c] sm:$0xf] }
 0x4ef   : > { %10624 = vmatprep.mubr.msk.f32.mxu1 %vm1363_vm1, %v12838_v33  ;;  %v13973_v33 = vld [vmem:[#allocation9_spill] sm:$0xff] }
 0x4f2   : > { %10625 = vmatmul.mubr.msk.f32.gmra.mrb[22].mxu1 %vm1363_vm1, %v12844_v36  ;;  %v13974_v36 = vld [vmem:[#allocation8_spill] sm:$0xff] }
 0x4f3   : > { %10627 = vmatprep.mubr.msk.f32.mxu1 %vm1363_vm1, %v12850_v5  ;;  %v13975_v5 = vld [vmem:[#allocation23_spill] sm:$0xff] }
 0x4f6   : > { %10628 = vmatmul.mubr.msk.f32.gmra.mrb[24].mxu1 %vm1363_vm1, %v12856_v8  ;;  %v13976_v8 = vld [vmem:[#allocation25_spill] sm:$0xff] }
 0x4f7   : > { %10630 = vmatprep.mubr.msk.f32.mxu1 %vm1363_vm1, %v12862_v13  ;;  %v13977_v13 = vld [vmem:[#allocation27_spill] sm:$0xff] }
 0x4fa   : > { %10631 = vmatmul.mubr.msk.f32.gmra.mrb[26].mxu1 %vm1363_vm1, %v12868_v21  ;;  %v13978_v21 = vld [vmem:[#allocation26_spill] sm:$0xff] }
 0x4fb   : > { %10633 = vmatprep.mubr.msk.f32.mxu1 %vm1363_vm1, %v12874_v49 }
 0x4fe   : > { %10634 = vmatmul.mubr.msk.f32.gmra.mrb[28].mxu1 %vm1363_vm1, %v12880_v51 }
 0x4ff   : > { %10636 = vmatprep.mubr.msk.f32.mxu1 %vm1363_vm1, %v12886_v1 }
 0x502   : > { %10637 = vmatmul.mubr.msk.f32.gmra.mrb[30].mxu1 %vm1363_vm1, %v12892_v15 }
 0x503   : > { %10639 = vmatprep.mubr.msk.f32.mxu1 %vm1363_vm1, %v12898_v53 }
 0x506   : > { %10640 = vmatmul.mubr.msk.f32.gmra.mrb[32].mxu1 %vm1363_vm1, %v12904_v17 }
 0x507   : > { %10642 = vmatprep.mubr.msk.f32.mxu1 %vm1363_vm1, %v12910_v3 }
 0x50a   : > { %10643 = vmatmul.mubr.msk.f32.gmra.mrb[34].mxu1 %vm1363_vm1, %v12916_v59 }
 0x50b   : > { %10645 = vmatprep.mubr.msk.f32.mxu1 %vm1363_vm1, %v12922_v34 }
 0x50e   : > { %10646 = vmatmul.mubr.msk.f32.gmra.mrb[36].mxu1 %vm1363_vm1, %v12928_v38 }
 0x50f   : > { %10648 = vmatprep.mubr.msk.f32.mxu1 %vm1363_vm1, %v12934_v10 }
 0x512   : > { %10649 = vmatmul.mubr.msk.f32.gmra.mrb[38].mxu1 %vm1363_vm1, %v12940_v11 }
 0x513   : > { %10651 = vmatprep.mubr.msk.f32.mxu1 %vm1363_vm1, %v12946_v16 }
 0x516   : > { %10652 = vmatmul.mubr.msk.f32.gmra.mrb[40].mxu1 %vm1363_vm1, %v12952_v50 }
 0x517   : > { %10654 = vmatprep.mubr.msk.f32.mxu1 %vm1363_vm1, %v12957_v20 }
 0x51a   : > { %10655 = vmatmul.mubr.msk.f32.gmra.mrb[42].mxu1 %vm1363_vm1, %v12962_v18 }
 0x51b   : > { %10657 = vmatprep.mubr.msk.f32.mxu1 %vm1363_vm1, %v13970_v24 }
 0x51e   : > { %10658 = vmatmul.mubr.msk.f32.gmra.mrb[44].mxu1 %vm1363_vm1, %v13971_v57 }
 0x51f   : > { %10660 = vmatprep.mubr.msk.f32.mxu1 %vm1363_vm1, %v13375_v56 }
 0x522   : > { %10661 = vmatmul.mubr.msk.f32.gmra.mrb[46].mxu1 %vm1363_vm1, %v13379_v60 }
 0x523   : > { %10665 = vmatprep.mubr.msk.f32.mxu1 %vm1363_vm1, %v13972_v42  ;;  %v13980_v42 = vld [vmem:[#allocation31_spill] sm:$0xff] }
 0x526   : > { %10666 = vmatmul.mubr.msk.f32.vlgmr.msra.gmra.mrb[16].mxu1 %vm1363_vm1, %v13973_v33  ;;  %v13982_v33 = vld [vmem:[#allocation11_spill] sm:$0xff] }
 0x527   : > { %10668 = vmatprep.mubr.msk.f32.mxu1 %vm1363_vm1, %v13974_v36  ;;  %10714 = vmatpush3.msk.msra.mxu1 %vm5153_vm2, %v9157_v31  ;;  %v13981_v31 = vld [vmem:[#allocation6_spill] sm:$0xff] }
 0x528   : > { %10763 = vmatprep.subr.msk.mxu1 %vm5153_vm2, %v9191_v6 }
 0x52a   : > { %10669 = vmatmul.mubr.msk.f32.gmra.mrb[18].mxu1 %vm1363_vm1, %v13975_v5  ;;  %v13983_v5 = vld [vmem:[#allocation10_spill] sm:$0xff] }
 0x52b   : > { %10671 = vmatprep.mubr.msk.f32.mxu1 %vm1363_vm1, %v13976_v8  ;;  %v13984_v8 = vld [vmem:[#allocation13_spill] sm:$0xff] }
 0x52e   : > { %10672 = vmatmul.mubr.msk.f32.gmra.mrb[20].mxu1 %vm1363_vm1, %v13977_v13  ;;  %v13985_v13 = vld [vmem:[#allocation12_spill] sm:$0xff] }
 0x52f   : > { %10674 = vmatprep.mubr.msk.f32.mxu1 %vm1363_vm1, %v13978_v21  ;;  %v13986_v21 = vld [vmem:[#allocation15_spill] sm:$0xff] }
 0x532   : > { %10675 = vmatmul.mubr.msk.f32.gmra.mrb[22].mxu1 %vm1363_vm1, %v13979_v47  ;;  %v13987_v47 = vld [vmem:[#allocation14_spill] sm:$0xff] }
 0x533   : > { %10677 = vmatprep.mubr.msk.f32.mxu1 %vm1363_vm1, %v13980_v42  ;;  %v13988_v42 = vld [vmem:[#allocation17_spill] sm:$0xff] }
 0x536   : > { %10678 = vmatmul.mubr.msk.f32.gmra.mrb[24].mxu1 %vm1363_vm1, %v13981_v31  ;;  %v13989_v31 = vld [vmem:[#allocation16_spill] sm:$0xff] }
 0x537   : > { %10680 = vmatprep.mubr.msk.f32.mxu1 %vm1363_vm1, %v13982_v33  ;;  %v13990_v33 = vld [vmem:[#allocation19_spill] sm:$0xff] }
 0x53a   : > { %10681 = vmatmul.mubr.msk.f32.gmra.mrb[26].mxu1 %vm1363_vm1, %v13983_v5  ;;  %v13991_v5 = vld [vmem:[#allocation18_spill] sm:$0xff] }
 0x53b   : > { %10683 = vmatprep.mubr.msk.f32.mxu1 %vm1363_vm1, %v13984_v8  ;;  %v13992_v8 = vld [vmem:[#allocation21_spill] sm:$0xff] }
 0x53e   : > { %10684 = vmatmul.mubr.msk.f32.gmra.mrb[28].mxu1 %vm1363_vm1, %v13985_v13  ;;  %v13993_v13 = vld [vmem:[#allocation20_spill] sm:$0xff] }
 0x53f   : > { %10686 = vmatprep.mubr.msk.f32.mxu1 %vm1363_vm1, %v13986_v21  ;;  %v13994_v21 = vld [vmem:[#allocation22_spill] sm:$0xff] }
 0x542   : > { %10687 = vmatmul.mubr.msk.f32.gmra.mrb[30].mxu1 %vm1363_vm1, %v13987_v47  ;;  %v13995_v47 = vld [vmem:[#allocation24_spill] sm:$0xff] }
 0x543   : > { %10689 = vmatprep.mubr.msk.f32.mxu1 %vm1363_vm1, %v13988_v42  ;;  %v13996_v42 = vld [vmem:[#allocation29_spill] sm:$0xff] }
 0x546   : > { %10690 = vmatmul.mubr.msk.f32.gmra.mrb[32].mxu1 %vm1363_vm1, %v13989_v31 }
 0x547   : > { %10692 = vmatprep.mubr.msk.f32.mxu1 %vm1363_vm1, %v13990_v33  ;;  %v13997_v33 = vld [vmem:[#allocation30_spill] sm:$0xff] }
 0x54a   : > { %10693 = vmatmul.mubr.msk.f32.gmra.mrb[34].mxu1 %vm1363_vm1, %v13991_v5 }
 0x54b   : > { %10695 = vmatprep.mubr.msk.f32.mxu1 %vm1363_vm1, %v13992_v8 }
 0x54e   : > { %10696 = vmatmul.mubr.msk.f32.gmra.mrb[36].mxu1 %vm1363_vm1, %v13993_v13 }
 0x54f   : > { %10698 = vmatprep.mubr.msk.f32.mxu1 %vm1363_vm1, %v13994_v21  ;;  %v13448_v21 = vld [vmem:[#allocation3 + $0x209] sm:$0xff] }
 0x552   : > { %10699 = vmatmul.mubr.msk.f32.gmra.mrb[38].mxu1 %vm1363_vm1, %v13995_v47 }
 0x553   : > { %10701 = vmatprep.mubr.msk.f32.mxu1 %vm1363_vm1, %v13996_v42  ;;  %v13452_v42 = vld [vmem:[#allocation3 + $0x211] sm:$0xff] }
 0x556   : > { %10702 = vmatmul.mubr.msk.f32.gmra.mrb[40].mxu1 %vm1363_vm1, %v13216_v44 }
 0x557   : > { %10704 = vmatprep.mubr.msk.f32.mxu1 %vm1363_vm1, %v13997_v33 }
 0x55a   : > { %10705 = vmatmul.mubr.msk.f32.gmra.mrb[42].mxu1 %vm1363_vm1, %v13224_v28 }
 0x55b   : > { %10707 = vmatprep.mubr.msk.f32.mxu1 %vm1363_vm1, %v13228_v48  ;;  %v9225_v48 = vld [vmem:[%s13754_s5 + $0x20] sm:$0xf] }
 0x55e   : > { %10708 = vmatmul.mubr.msk.f32.gmra.mrb[44].mxu1 %vm1363_vm1, %v13232_v63 }
 0x55f   : > { %10710 = vmatprep.mubr.msk.f32.mxu1 %vm1363_vm1, %v13448_v21 }
 0x562   : > { %10711 = vmatmul.mubr.msk.f32.gmra.mrb[46].mxu1 %vm1363_vm1, %v13452_v42 }
 0x563   : > { %10715 = vmatprep.mubr.msk.f32.mxu1 %vm1363_vm1, %v12993_v52  ;;  %v7297_v52 = vld [vmem:[#allocation3 + $0x227] sm:$0xff] }
 0x566   : > { %10716 = vmatmul.mubr.msk.f32.vlgmr.msra.gmra.mrb[16].mxu1 %vm1363_vm1, %v12997_v54  ;;  %v7298_v54 = vld [vmem:[#allocation3 + $0x22f] sm:$0xff] }
 0x567   : > { %10718 = vmatprep.mubr.msk.f32.mxu1 %vm1363_vm1, %v13001_v55  ;;  %10764 = vmatpush3.msk.msra.mxu1 %vm5153_vm2, %v9191_v6  ;;  %v7657_v55 = vld [vmem:[#allocation3 + $0x48] sm:$0xff] }
 0x568   : > { %10813 = vmatprep.subr.msk.mxu1 %vm5153_vm2, %v9225_v48 }
 0x56a   : > { %10719 = vmatmul.mubr.msk.f32.gmra.mrb[18].mxu1 %vm1363_vm1, %v13005_v14  ;;  %v7658_v14 = vld [vmem:[#allocation3 + $0x50] sm:$0xff] }
 0x56b   : > { %10721 = vmatprep.mubr.msk.f32.mxu1 %vm1363_vm1, %v13009_v58  ;;  %v7659_v58 = vld [vmem:[#allocation3 + $0x68] sm:$0xff] }
 0x56e   : > { %10722 = vmatmul.mubr.msk.f32.gmra.mrb[20].mxu1 %vm1363_vm1, %v13013_v61  ;;  %v7660_v61 = vld [vmem:[#allocation3 + $0x70] sm:$0xff] }
 0x56f   : > { %10724 = vmatprep.mubr.msk.f32.mxu1 %vm1363_vm1, %v13017_v0  ;;  %v7661_v0 = vld [vmem:[#allocation3 + $0x88] sm:$0xff] }
 0x572   : > { %10725 = vmatmul.mubr.msk.f32.gmra.mrb[22].mxu1 %vm1363_vm1, %v13021_v2  ;;  %v7662_v2 = vld [vmem:[#allocation3 + $0x90] sm:$0xff] }
 0x573   : > { %10727 = vmatprep.mubr.msk.f32.mxu1 %vm1363_vm1, %v13025_v43  ;;  %v7663_v43 = vld [vmem:[#allocation3 + $0xa8] sm:$0xff] }
 0x576   : > { %10728 = vmatmul.mubr.msk.f32.gmra.mrb[24].mxu1 %vm1363_vm1, %v13029_v23  ;;  %v7664_v23 = vld [vmem:[#allocation3 + $0xb0] sm:$0xff] }
 0x577   : > { %10730 = vmatprep.mubr.msk.f32.mxu1 %vm1363_vm1, %v13033_v27  ;;  %v7665_v27 = vld [vmem:[#allocation3 + $0xc8] sm:$0xff] }
 0x57a   : > { %10731 = vmatmul.mubr.msk.f32.gmra.mrb[26].mxu1 %vm1363_vm1, %v13037_v29  ;;  %v7666_v29 = vld [vmem:[#allocation3 + $0xd0] sm:$0xff] }
 0x57b   : > { %10733 = vmatprep.mubr.msk.f32.mxu1 %vm1363_vm1, %v13041_v30  ;;  %v14012_v30 = vld [vmem:[#allocation19_spill] sm:$0xff] }
 0x57e   : > { %10734 = vmatmul.mubr.msk.f32.gmra.mrb[28].mxu1 %vm1363_vm1, %v13045_v32  ;;  %v14013_v32 = vld [vmem:[#allocation22_spill] sm:$0xff] }
 0x57f   : > { %10736 = vmatprep.mubr.msk.f32.mxu1 %vm1363_vm1, %v13049_v37  ;;  %v14014_v37 = vld [vmem:[#allocation29_spill] sm:$0xff] }
 0x582   : > { %10737 = vmatmul.mubr.msk.f32.gmra.mrb[30].mxu1 %vm1363_vm1, %v13053_v39  ;;  %v14015_v39 = vld [vmem:[#allocation32_spill] sm:$0xff] }
 0x583   : > { %10739 = vmatprep.mubr.msk.f32.mxu1 %vm1363_vm1, %v13057_v40  ;;  %v8077_v40 = vld [vmem:[#allocation3 + $0x229] sm:$0xff] }
 0x586   : > { %10740 = vmatmul.mubr.msk.f32.gmra.mrb[32].mxu1 %vm1363_vm1, %v13061_v41  ;;  %v8078_v41 = vld [vmem:[#allocation3 + $0x231] sm:$0xff] }
 0x587   : > { %10742 = vmatprep.mubr.msk.f32.mxu1 %vm1363_vm1, %v13065_v7 }
 0x58a   : > { %10743 = vmatmul.mubr.msk.f32.gmra.mrb[34].mxu1 %vm1363_vm1, %v13069_v9 }
 0x58b   : > { %10745 = vmatprep.mubr.msk.f32.mxu1 %vm1363_vm1, %v13073_v62 }
 0x58e   : > { %10746 = vmatmul.mubr.msk.f32.gmra.mrb[36].mxu1 %vm1363_vm1, %v13077_v12 }
 0x58f   : > { %10748 = vmatprep.mubr.msk.f32.mxu1 %vm1363_vm1, %v13081_v19 }
 0x592   : > { %10749 = vmatmul.mubr.msk.f32.gmra.mrb[38].mxu1 %vm1363_vm1, %v13085_v22 }
 0x593   : > { %10751 = vmatprep.mubr.msk.f32.mxu1 %vm1363_vm1, %v13089_v25 }
 0x596   : > { %10752 = vmatmul.mubr.msk.f32.gmra.mrb[40].mxu1 %vm1363_vm1, %v13093_v45 }
 0x597   : > { %10754 = vmatprep.mubr.msk.f32.mxu1 %vm1363_vm1, %v13097_v26 }
 0x59a   : > { %10755 = vmatmul.mubr.msk.f32.gmra.mrb[42].mxu1 %vm1363_vm1, %v13101_v4 }
 0x59b   : > { %10757 = vmatprep.mubr.msk.f32.mxu1 %vm1363_vm1, %v13302_v46 }
 0x59e   : > { %10758 = vmatmul.mubr.msk.f32.gmra.mrb[44].mxu1 %vm1363_vm1, %v13306_v35 }
 0x59f   : > { %10760 = vmatprep.mubr.msk.f32.mxu1 %vm1363_vm1, %v7297_v52 }
 0x5a2   : > { %10761 = vmatmul.mubr.msk.f32.gmra.mrb[46].mxu1 %vm1363_vm1, %v7298_v54 }
 0x5a3   : > { %10765 = vmatprep.mubr.msk.f32.mxu1 %vm1363_vm1, %v7657_v55 }
 0x5a6   : > { %10766 = vmatmul.mubr.msk.f32.vlgmr.msra.gmra.mrb[16].mxu1 %vm1363_vm1, %v7658_v14 }
 0x5a7   : > { %10768 = vmatprep.mubr.msk.f32.mxu1 %vm1363_vm1, %v7659_v58  ;;  %10814 = vmatpush3.msk.msra.mxu1 %vm5153_vm2, %v9225_v48 }
 0x5aa   : > { %10769 = vmatmul.mubr.msk.f32.gmra.mrb[18].mxu1 %vm1363_vm1, %v7660_v61 }
 0x5ab   : > { %10771 = vmatprep.mubr.msk.f32.mxu1 %vm1363_vm1, %v7661_v0 }
 0x5ae   : > { %10772 = vmatmul.mubr.msk.f32.gmra.mrb[20].mxu1 %vm1363_vm1, %v7662_v2 }
 0x5af   : > { %10774 = vmatprep.mubr.msk.f32.mxu1 %vm1363_vm1, %v7663_v43 }
 0x5b2   : > { %10775 = vmatmul.mubr.msk.f32.gmra.mrb[22].mxu1 %vm1363_vm1, %v7664_v23 }
 0x5b3   : > { %10777 = vmatprep.mubr.msk.f32.mxu1 %vm1363_vm1, %v7665_v27 }
 0x5b6   : > { %10778 = vmatmul.mubr.msk.f32.gmra.mrb[24].mxu1 %vm1363_vm1, %v7666_v29 }
 0x5b7   : > { %10780 = vmatprep.mubr.msk.f32.mxu1 %vm1363_vm1, %v12874_v49  ;;  %v7687_v49 = vld [vmem:[#allocation3 + $0x228] sm:$0xff] }
 0x5ba   : > { %10781 = vmatmul.mubr.msk.f32.gmra.mrb[26].mxu1 %vm1363_vm1, %v12880_v51  ;;  %v7688_v51 = vld [vmem:[#allocation3 + $0x230] sm:$0xff] }
 0x5bb   : > { %10783 = vmatprep.mubr.msk.f32.mxu1 %vm1363_vm1, %v12886_v1  ;;  %v13998_v1 = vld [vmem:[#allocation23_spill] sm:$0xff] }
 0x5be   : > { %10784 = vmatmul.mubr.msk.f32.gmra.mrb[28].mxu1 %vm1363_vm1, %v12892_v15  ;;  %v13999_v15 = vld [vmem:[#allocation25_spill] sm:$0xff] }
 0x5bf   : > { %10786 = vmatprep.mubr.msk.f32.mxu1 %vm1363_vm1, %v12898_v53  ;;  %v14000_v53 = vld [vmem:[#allocation27_spill] sm:$0xff] }
 0x5c2   : > { %10787 = vmatmul.mubr.msk.f32.gmra.mrb[30].mxu1 %vm1363_vm1, %v12904_v17  ;;  %v14001_v17 = vld [vmem:[#allocation26_spill] sm:$0xff] }
 0x5c3   : > { %10789 = vmatprep.mubr.msk.f32.mxu1 %vm1363_vm1, %v12910_v3  ;;  %v14002_v3 = vld [vmem:[#allocation28_spill] sm:$0xff] }
 0x5c6   : > { %10790 = vmatmul.mubr.msk.f32.gmra.mrb[32].mxu1 %vm1363_vm1, %v12916_v59  ;;  %v14003_v59 = vld [vmem:[#allocation31_spill] sm:$0xff] }
 0x5c7   : > { %10792 = vmatprep.mubr.msk.f32.mxu1 %vm1363_vm1, %v12922_v34  ;;  %v14004_v34 = vld [vmem:[#allocation6_spill] sm:$0xff] }
 0x5ca   : > { %10793 = vmatmul.mubr.msk.f32.gmra.mrb[34].mxu1 %vm1363_vm1, %v12928_v38  ;;  %v14005_v38 = vld [vmem:[#allocation11_spill] sm:$0xff] }
 0x5cb   : > { %10795 = vmatprep.mubr.msk.f32.mxu1 %vm1363_vm1, %v12934_v10  ;;  %v14006_v10 = vld [vmem:[#allocation10_spill] sm:$0xff] }
 0x5ce   : > { %10796 = vmatmul.mubr.msk.f32.gmra.mrb[36].mxu1 %vm1363_vm1, %v12940_v11  ;;  %v14007_v11 = vld [vmem:[#allocation13_spill] sm:$0xff] }
 0x5cf   : > { %10798 = vmatprep.mubr.msk.f32.mxu1 %vm1363_vm1, %v12946_v16  ;;  %v14008_v16 = vld [vmem:[#allocation12_spill] sm:$0xff] }
 0x5d2   : > { %10799 = vmatmul.mubr.msk.f32.gmra.mrb[38].mxu1 %vm1363_vm1, %v12952_v50  ;;  %v14009_v50 = vld [vmem:[#allocation15_spill] sm:$0xff] }
 0x5d3   : > { %10801 = vmatprep.mubr.msk.f32.mxu1 %vm1363_vm1, %v12957_v20  ;;  %v14010_v20 = vld [vmem:[#allocation14_spill] sm:$0xff] }
 0x5d6   : > { %10802 = vmatmul.mubr.msk.f32.gmra.mrb[40].mxu1 %vm1363_vm1, %v12962_v18  ;;  %v14011_v18 = vld [vmem:[#allocation17_spill] sm:$0xff] }
 0x5d7   : > { %10804 = vmatprep.mubr.msk.f32.mxu1 %vm1363_vm1, %v13970_v24 }
 0x5da   : > { %10805 = vmatmul.mubr.msk.f32.gmra.mrb[42].mxu1 %vm1363_vm1, %v13971_v57 }
 0x5db   : > { %10807 = vmatprep.mubr.msk.f32.mxu1 %vm1363_vm1, %v13375_v56 }
 0x5de   : > { %10808 = vmatmul.mubr.msk.f32.gmra.mrb[44].mxu1 %vm1363_vm1, %v13379_v60 }
 0x5df   : > { %10810 = vmatprep.mubr.msk.f32.mxu1 %vm1363_vm1, %v7687_v49 }
 0x5e2   : > { %10811 = vmatmul.mubr.msk.f32.gmra.mrb[46].mxu1 %vm1363_vm1, %v7688_v51 }
 0x5e3   : > { %10815 = vmatprep.mubr.msk.f32.mxu1 %vm1363_vm1, %v13974_v36 }
 0x5e6   : > { %10816 = vmatmul.mubr.msk.f32.vlgmr.msra.gmra.mrb[16].mxu1 %vm1363_vm1, %v13998_v1 }
 0x5e7   : > { %10818 = vmatprep.mubr.msk.f32.mxu1 %vm1363_vm1, %v13999_v15 }
 0x5ea   : > { %10819 = vmatmul.mubr.msk.f32.gmra.mrb[18].mxu1 %vm1363_vm1, %v14000_v53 }
 0x5eb   : > { %10821 = vmatprep.mubr.msk.f32.mxu1 %vm1363_vm1, %v14001_v17 }
 0x5ee   : > { %10822 = vmatmul.mubr.msk.f32.gmra.mrb[20].mxu1 %vm1363_vm1, %v14002_v3 }
 0x5ef   : > { %10824 = vmatprep.mubr.msk.f32.mxu1 %vm1363_vm1, %v14003_v59 }
 0x5f2   : > { %10825 = vmatmul.mubr.msk.f32.gmra.mrb[22].mxu1 %vm1363_vm1, %v14004_v34 }
 0x5f3   : > { %10827 = vmatprep.mubr.msk.f32.mxu1 %vm1363_vm1, %v14005_v38 }
 0x5f6   : > { %10828 = vmatmul.mubr.msk.f32.gmra.mrb[24].mxu1 %vm1363_vm1, %v14006_v10 }
 0x5f7   : > { %10830 = vmatprep.mubr.msk.f32.mxu1 %vm1363_vm1, %v14007_v11 }
 0x5fa   : > { %10831 = vmatmul.mubr.msk.f32.gmra.mrb[26].mxu1 %vm1363_vm1, %v14008_v16 }
 0x5fb   : > { %10833 = vmatprep.mubr.msk.f32.mxu1 %vm1363_vm1, %v14009_v50 }
 0x5fe   : > { %10834 = vmatmul.mubr.msk.f32.gmra.mrb[28].mxu1 %vm1363_vm1, %v14010_v20 }
 0x5ff   : > { %10836 = vmatprep.mubr.msk.f32.mxu1 %vm1363_vm1, %v14011_v18 }
 0x602   : > { %10837 = vmatmul.mubr.msk.f32.gmra.mrb[30].mxu1 %vm1363_vm1, %v13989_v31 }
 0x603   : > { %10839 = vmatprep.mubr.msk.f32.mxu1 %vm1363_vm1, %v14012_v30 }
 0x606   : > { %10840 = vmatmul.mubr.msk.f32.gmra.mrb[32].mxu1 %vm1363_vm1, %v13991_v5 }
 0x607   : > { %10842 = vmatprep.mubr.msk.f32.mxu1 %vm1363_vm1, %v13992_v8 }
 0x60a   : > { %10843 = vmatmul.mubr.msk.f32.gmra.mrb[34].mxu1 %vm1363_vm1, %v13993_v13 }
 0x60b   : > { %10845 = vmatprep.mubr.msk.f32.mxu1 %vm1363_vm1, %v14013_v32 }
 0x60e   : > { %10846 = vmatmul.mubr.msk.f32.gmra.mrb[36].mxu1 %vm1363_vm1, %v13995_v47 }
 0x60f   : > { %10848 = vmatprep.mubr.msk.f32.mxu1 %vm1363_vm1, %v14014_v37 }
 0x612   : > { %10849 = vmatmul.mubr.msk.f32.gmra.mrb[38].mxu1 %vm1363_vm1, %v13216_v44 }
 0x613   : > { %10851 = vmatprep.mubr.msk.f32.mxu1 %vm1363_vm1, %v13997_v33 }
 0x616   : > { %10852 = vmatmul.mubr.msk.f32.gmra.mrb[40].mxu1 %vm1363_vm1, %v13224_v28  ;;  %v13641_v28 = vld [vmem:[%s13755_s6] ss:$0 sm:$0xff] }
 0x617   : > { %10854 = vmatprep.mubr.msk.f32.mxu1 %vm1363_vm1, %v14015_v39 }
 0x61a   : > { %10855 = vmatmul.mubr.msk.f32.gmra.mrb[42].mxu1 %vm1363_vm1, %v13232_v63 }
 0x61b   : > { %10857 = vmatprep.mubr.msk.f32.mxu1 %vm1363_vm1, %v13448_v21 }
 0x61e   : > { %10858 = vmatmul.mubr.msk.f32.gmra.mrb[44].mxu1 %vm1363_vm1, %v13452_v42 }
 0x61f   : > { %10860 = vmatprep.mubr.msk.f32.mxu1 %vm1363_vm1, %v8077_v40 }
 0x622   : > { %10861 = vmatmul.mubr.msk.f32.gmra.mrb[46].mxu1 %vm1363_vm1, %v8078_v41 }
 0x6b9   : > { %v10817_v7 = vpop.f32.mrb[16].mxu1 }
 0x6ba   : > { %v8445_v63 = vadd.f32 %v10817_v7, %v13641_v28  ;;  %v8246_v9 = vpop.f32.mrb[17].mxu1 }
 0x6bb   : > { %v8444_v62 = vadd.f32 %v13641_v28, %v8246_v9 }
 0x6bc   : > { %v8477_v12 = vmax.f32 %v8445_v63, 0.0 }
 0x6bd   : > { %v8476_v19 = vmax.f32 %v8444_v62, 0.0  ;;  %v10820_v22 = vpop.f32.mrb[18].mxu1 }
 0x6be   : > { %8509 = vst.msk [vmem:[%s13649_s21 + $0x8] sm:$0xff] %vm299_vm0, %v8477_v12  ;;  %v8447_v25 = vadd.f32 %v10820_v22, %v13641_v28  ;;  %v8256_v45 = vpop.f32.mrb[19].mxu1 }
 0x6bf   : > { %8508 = vst.msk [vmem:[%s13649_s21] sm:$0xff] %vm299_vm0, %v8476_v19  ;;  %v8446_v26 = vadd.f32 %v13641_v28, %v8256_v45 }
 0x6c0   : > { %v8479_v4 = vmax.f32 %v8447_v25, 0.0 }
 0x6c1   : > { %v8478_v48 = vmax.f32 %v8446_v26, 0.0  ;;  %v10823_v44 = vpop.f32.mrb[20].mxu1 }
 0x6c2   : > { %8511 = vst.msk [vmem:[%s13649_s21 + $0x18] sm:$0xff] %vm299_vm0, %v8479_v4  ;;  %v8449_v46 = vadd.f32 %v10823_v44, %v13641_v28  ;;  %v8266_v35 = vpop.f32.mrb[21].mxu1 }
 0x6c3   : > { %8510 = vst.msk [vmem:[%s13649_s21 + $0x10] sm:$0xff] %vm299_vm0, %v8478_v48  ;;  %v8448_v24 = vadd.f32 %v13641_v28, %v8266_v35 }
 0x6c4   : > { %v8481_v57 = vmax.f32 %v8449_v46, 0.0 }
 0x6c5   : > { %v8480_v56 = vmax.f32 %v8448_v24, 0.0  ;;  %v10826_v60 = vpop.f32.mrb[22].mxu1 }
 0x6c6   : > { %8513 = vst.msk [vmem:[%s13649_s21 + $0x28] sm:$0xff] %vm299_vm0, %v8481_v57  ;;  %v8451_v6 = vadd.f32 %v10826_v60, %v13641_v28  ;;  %v8276_v36 = vpop.f32.mrb[23].mxu1 }
 0x6c7   : > { %8512 = vst.msk [vmem:[%s13649_s21 + $0x20] sm:$0xff] %vm299_vm0, %v8480_v56  ;;  %v8450_v5 = vadd.f32 %v13641_v28, %v8276_v36 }
 0x6c8   : > { %v8483_v8 = vmax.f32 %v8451_v6, 0.0 }
 0x6c9   : > { %v8482_v13 = vmax.f32 %v8450_v5, 0.0  ;;  %v10829_v21 = vpop.f32.mrb[24].mxu1 }
 0x6ca   : > { %8515 = vst.msk [vmem:[%s13649_s21 + $0x38] sm:$0xff] %vm299_vm0, %v8483_v8  ;;  %v8453_v47 = vadd.f32 %v10829_v21, %v13641_v28  ;;  %v8286_v42 = vpop.f32.mrb[25].mxu1 }
 0x6cb   : > { %8514 = vst.msk [vmem:[%s13649_s21 + $0x30] sm:$0xff] %vm299_vm0, %v8482_v13  ;;  %v8452_v31 = vadd.f32 %v13641_v28, %v8286_v42 }
 0x6cc   : > { %v8485_v33 = vmax.f32 %v8453_v47, 0.0 }
 0x6cd   : > { %v8484_v52 = vmax.f32 %v8452_v31, 0.0  ;;  %v10832_v54 = vpop.f32.mrb[26].mxu1 }
 0x6ce   : > { %8517 = vst.msk [vmem:[%s13649_s21 + $0x48] sm:$0xff] %vm299_vm0, %v8485_v33  ;;  %v8455_v55 = vadd.f32 %v10832_v54, %v13641_v28  ;;  %v8296_v14 = vpop.f32.mrb[27].mxu1 }
 0x6cf   : > { %8516 = vst.msk [vmem:[%s13649_s21 + $0x40] sm:$0xff] %vm299_vm0, %v8484_v52  ;;  %v8454_v58 = vadd.f32 %v13641_v28, %v8296_v14 }
 0x6d0   : > { %v8487_v61 = vmax.f32 %v8455_v55, 0.0 }
 0x6d1   : > { %v8486_v0 = vmax.f32 %v8454_v58, 0.0  ;;  %v10835_v2 = vpop.f32.mrb[28].mxu1 }
 0x6d2   : > { %8519 = vst.msk [vmem:[%s13649_s21 + $0x58] sm:$0xff] %vm299_vm0, %v8487_v61  ;;  %v8457_v43 = vadd.f32 %v10835_v2, %v13641_v28  ;;  %v8306_v23 = vpop.f32.mrb[29].mxu1 }
 0x6d3   : > { %8518 = vst.msk [vmem:[%s13649_s21 + $0x50] sm:$0xff] %vm299_vm0, %v8486_v0  ;;  %v8456_v27 = vadd.f32 %v13641_v28, %v8306_v23 }
 0x6d4   : > { %v8489_v29 = vmax.f32 %v8457_v43, 0.0 }
 0x6d5   : > { %v8488_v49 = vmax.f32 %v8456_v27, 0.0  ;;  %v10838_v51 = vpop.f32.mrb[30].mxu1 }
 0x6d6   : > { %8521 = vst.msk [vmem:[%s13649_s21 + $0x68] sm:$0xff] %vm299_vm0, %v8489_v29  ;;  %v8459_v1 = vadd.f32 %v10838_v51, %v13641_v28  ;;  %v8316_v15 = vpop.f32.mrb[31].mxu1 }
 0x6d7   : > { %8520 = vst.msk [vmem:[%s13649_s21 + $0x60] sm:$0xff] %vm299_vm0, %v8488_v49  ;;  %v8458_v53 = vadd.f32 %v13641_v28, %v8316_v15 }
 0x6d8   : > { %v8491_v17 = vmax.f32 %v8459_v1, 0.0 }
 0x6d9   : > { %v8490_v3 = vmax.f32 %v8458_v53, 0.0  ;;  %v10841_v59 = vpop.f32.mrb[32].mxu1 }
 0x6da   : > { %8523 = vst.msk [vmem:[%s13649_s21 + $0x78] sm:$0xff] %vm299_vm0, %v8491_v17  ;;  %v8461_v34 = vadd.f32 %v10841_v59, %v13641_v28  ;;  %v8326_v38 = vpop.f32.mrb[33].mxu1 }
 0x6db   : > { %8522 = vst.msk [vmem:[%s13649_s21 + $0x70] sm:$0xff] %vm299_vm0, %v8490_v3  ;;  %v8460_v10 = vadd.f32 %v13641_v28, %v8326_v38 }
 0x6dc   : > { %v8493_v11 = vmax.f32 %v8461_v34, 0.0 }
 0x6dd   : > { %v8492_v16 = vmax.f32 %v8460_v10, 0.0  ;;  %v10844_v50 = vpop.f32.mrb[34].mxu1 }
 0x6de   : > { %8525 = vst.msk [vmem:[%s13649_s21 + $0x88] sm:$0xff] %vm299_vm0, %v8493_v11  ;;  %v8463_v20 = vadd.f32 %v10844_v50, %v13641_v28  ;;  %v8336_v18 = vpop.f32.mrb[35].mxu1 }
 0x6df   : > { %8524 = vst.msk [vmem:[%s13649_s21 + $0x80] sm:$0xff] %vm299_vm0, %v8492_v16  ;;  %v8462_v30 = vadd.f32 %v13641_v28, %v8336_v18 }
 0x6e0   : > { %v8495_v32 = vmax.f32 %v8463_v20, 0.0 }
 0x6e1   : > { %v8494_v37 = vmax.f32 %v8462_v30, 0.0  ;;  %v10847_v39 = vpop.f32.mrb[36].mxu1 }
 0x6e2   : > { %8527 = vst.msk [vmem:[%s13649_s21 + $0x98] sm:$0xff] %vm299_vm0, %v8495_v32  ;;  %v8465_v40 = vadd.f32 %v10847_v39, %v13641_v28  ;;  %v8346_v41 = vpop.f32.mrb[37].mxu1 }
 0x6e3   : > { %8526 = vst.msk [vmem:[%s13649_s21 + $0x90] sm:$0xff] %vm299_vm0, %v8494_v37  ;;  %v8464_v7 = vadd.f32 %v13641_v28, %v8346_v41 }
 0x6e4   : > { %v8497_v63 = vmax.f32 %v8465_v40, 0.0 }
 0x6e5   : > { %v8496_v9 = vmax.f32 %v8464_v7, 0.0  ;;  %v10850_v62 = vpop.f32.mrb[38].mxu1 }
 0x6e6   : > { %8529 = vst.msk [vmem:[%s13649_s21 + $0xa8] sm:$0xff] %vm299_vm0, %v8497_v63  ;;  %v8467_v12 = vadd.f32 %v10850_v62, %v13641_v28  ;;  %v8356_v19 = vpop.f32.mrb[39].mxu1 }
 0x6e7   : > { %8528 = vst.msk [vmem:[%s13649_s21 + $0xa0] sm:$0xff] %vm299_vm0, %v8496_v9  ;;  %v8466_v22 = vadd.f32 %v13641_v28, %v8356_v19 }
 0x6e8   : > { %v8499_v25 = vmax.f32 %v8467_v12, 0.0 }
 0x6e9   : > { %v8498_v45 = vmax.f32 %v8466_v22, 0.0  ;;  %v10853_v26 = vpop.f32.mrb[40].mxu1 }
 0x6ea   : > { %8531 = vst.msk [vmem:[%s13649_s21 + $0xb8] sm:$0xff] %vm299_vm0, %v8499_v25  ;;  %v8469_v4 = vadd.f32 %v10853_v26, %v13641_v28  ;;  %v8366_v48 = vpop.f32.mrb[41].mxu1 }
 0x6eb   : > { %8530 = vst.msk [vmem:[%s13649_s21 + $0xb0] sm:$0xff] %vm299_vm0, %v8498_v45  ;;  %v8468_v44 = vadd.f32 %v13641_v28, %v8366_v48 }
 0x6ec   : > { %v8501_v46 = vmax.f32 %v8469_v4, 0.0 }
 0x6ed   : > { %v8500_v35 = vmax.f32 %v8468_v44, 0.0  ;;  %v10856_v24 = vpop.f32.mrb[42].mxu1 }
 0x6ee   : > { %8533 = vst.msk [vmem:[%s13649_s21 + $0xc8] sm:$0xff] %vm299_vm0, %v8501_v46  ;;  %v8471_v57 = vadd.f32 %v10856_v24, %v13641_v28  ;;  %v8376_v56 = vpop.f32.mrb[43].mxu1 }
 0x6ef   : > { %8532 = vst.msk [vmem:[%s13649_s21 + $0xc0] sm:$0xff] %vm299_vm0, %v8500_v35  ;;  %v8470_v60 = vadd.f32 %v13641_v28, %v8376_v56 }
 0x6f0   : > { %v8503_v6 = vmax.f32 %v8471_v57, 0.0 }
 0x6f1   : > { %v8502_v36 = vmax.f32 %v8470_v60, 0.0  ;;  %v10859_v5 = vpop.f32.mrb[44].mxu1 }
 0x6f2   : > { %8535 = vst.msk [vmem:[%s13649_s21 + $0xd8] sm:$0xff] %vm299_vm0, %v8503_v6  ;;  %v8473_v8 = vadd.f32 %v10859_v5, %v13641_v28  ;;  %v8386_v13 = vpop.f32.mrb[45].mxu1 }
 0x6f3   : > { %8534 = vst.msk [vmem:[%s13649_s21 + $0xd0] sm:$0xff] %vm299_vm0, %v8502_v36  ;;  %v8472_v21 = vadd.f32 %v13641_v28, %v8386_v13 }
 0x6f4   : > { %v8505_v47 = vmax.f32 %v8473_v8, 0.0 }
 0x6f5   : > { %v8504_v42 = vmax.f32 %v8472_v21, 0.0  ;;  %v10862_v31 = vpop.f32.mrb[46].mxu1 }
 0x6f6   : > { %8537 = vst.msk [vmem:[%s13649_s21 + $0xe8] sm:$0xff] %vm299_vm0, %v8505_v47  ;;  %v8475_v33 = vadd.f32 %v10862_v31, %v13641_v28  ;;  %v8396_v52 = vpop.f32.mrb[47].mxu1 }
 0x6f7   : > { %8536 = vst.msk [vmem:[%s13649_s21 + $0xe0] sm:$0xff] %vm299_vm0, %v8504_v42  ;;  %v8474_v54 = vadd.f32 %v13641_v28, %v8396_v52 }
 0x6f8   : > { %v8507_v55 = vmax.f32 %v8475_v33, 0.0 }
 0x6f9   : > { %v8506_v14 = vmax.f32 %v8474_v54, 0.0 }
 0x6fa   : > { %8539 = vst.msk [vmem:[%s13649_s21 + $0xf8] sm:$0xff] %vm299_vm0, %v8507_v55 }
 0x6fb   : > { %8538 = vst.msk [vmem:[%s13649_s21 + $0xf0] sm:$0xff] %vm299_vm0, %v8506_v14 }
 0x6fc PF: > { %s17_s24 = sadd.s32 1, %s11391_s24  }
 0x6fd   : > { %p14_p4 = scmp.ge.s32.totalorder %s17_s24, 4  }
 0x6ff   :  { %16 = sbr.rel (!%p14_p4) target bundleno = 1 (0x1), region = 122 }

</bundles_post_ra>
